<compile_context>
chip_gen: v7x
topology: tpu7x:2x2x1
jax: 0.10.0
libtpu: 0.0.40
codegen_flags: <defaults>
</compile_context>

<pallas_src>
import functools
import math

import jax
import jax.numpy as jnp
from jax.experimental import pallas as pl
from jax.experimental.pallas import tpu as pltpu

_EPS = 1e-5
_VMEM_LIMIT = 48 * 1024 * 1024


# ---------------------------------------------------------------------------
# In-kernel helpers (values / refs already in VMEM)
# ---------------------------------------------------------------------------

def _bf16(x):
    return x.astype(jnp.bfloat16)


def _layernorm(x, g, b, eps=_EPS):
    mean = jnp.mean(x, axis=-1, keepdims=True)
    var = jnp.mean((x - mean) ** 2, axis=-1, keepdims=True)   # biased, like torch
    return (x - mean) * jax.lax.rsqrt(var + eps) * g + b


def _mha(q, k, v, mask, wo_bf16, bo, ctx_ref, nhead):
    """Multi-head attention + output projection.

    The 1/sqrt(d_head) scale is pre-folded into the Q projection weights, so q
    arrives already scaled.  Each head's (Sq, dh) context is stored at a static
    lane offset into the (Sq, D) VMEM scratch `ctx_ref`; the output projection
    is then one full-K (Sq,D)@(D,D) MXU push (no per-head tiny-K out-proj).
    Softmax / mask math stays in f32; MXU operands are bf16, f32 accumulation.
    """
    d = q.shape[-1]
    dh = d // nhead
    for h in range(nhead):                      # nhead is small & static
        sl = slice(h * dh, (h + 1) * dh)
        s = jax.lax.dot_general(
            _bf16(q[:, sl]), _bf16(k[:, sl]),
            dimension_numbers=(((1,), (1,)), ((), ())),
            preferred_element_type=jnp.float32)          # (Sq, Sk) f32
        s = s + mask
        s = s - jnp.max(s, axis=-1, keepdims=True)
        p = jnp.exp(s)
        p = p * pl.reciprocal(jnp.sum(p, axis=-1, keepdims=True), approx=False)
        ctx_ref[:, sl] = jnp.dot(_bf16(p), _bf16(v[:, sl]),
                                 preferred_element_type=jnp.float32)
    return jnp.dot(_bf16(ctx_ref[...]), wo_bf16,
                   preferred_element_type=jnp.float32) + bo


# ---------------------------------------------------------------------------
# Fused layer-stack kernels: grid = (batch, layer), layer axis "arbitrary",
# output block constant over the layer axis (activations VMEM-resident).
# ---------------------------------------------------------------------------

def _encoder_stack_kernel(x_ref, amask_ref, pad_ref,
                          wqkv_ref, bqkv_ref, wo_ref, bo_ref,
                          g1_ref, be1_ref,
                          w1_ref, b1_ref, w2_ref, b2_ref,
                          g2_ref, be2_ref,
                          o_ref, ctx_ref, *, nhead):
    layer = pl.program_id(1)

    @pl.when(layer == 0)
    def _():
        o_ref[0] = x_ref[0]          # seed the resident activation block

    x = o_ref[0]                     # (S, D) f32, carried across layers
    d = x.shape[-1]
    mask = amask_ref[...] + pad_ref[0]            # (S,S) + (1,S) -> (S,S), f32

    qkv = (jnp.dot(_bf16(x), wqkv_ref[0], preferred_element_type=jnp.float32)
           + bqkv_ref[0])
    q, k, v = qkv[:, :d], qkv[:, d:2 * d], qkv[:, 2 * d:]
    attn = _mha(q, k, v, mask, wo_ref[0], bo_ref[0], ctx_ref, nhead)
    x1 = _layernorm(x + attn, g1_ref[0], be1_ref[0])

    h1 = jnp.maximum(
        jnp.dot(_bf16(x1), w1_ref[0], preferred_element_type=jnp.float32)
        + b1_ref[0], 0.0)
    ff = (jnp.dot(_bf16(h1), w2_ref[0], preferred_element_type=jnp.float32)
          + b2_ref[0])
    o_ref[0] = _layernorm(x1 + ff, g2_ref[0], be2_ref[0]).astype(o_ref.dtype)


def _decoder_stack_kernel(y_ref, mem_ref, tmask_ref, tpad_ref, mpad_ref,
                          s_wqkv_ref, s_bqkv_ref, s_wo_ref, s_bo_ref,
                          c_wq_ref, c_bq_ref, c_wkv_ref, c_bkv_ref,
                          c_wo_ref, c_bo_ref,
                          g1_ref, be1_ref, g2_ref, be2_ref, g3_ref, be3_ref,
                          w1_ref, b1_ref, w2_ref, b2_ref,
                          o_ref, ctx_ref, *, nhead):
    layer = pl.program_id(1)

    @pl.when(layer == 0)
    def _():
        o_ref[0] = y_ref[0]

    y = o_ref[0]                     # (St, D) f32, carried across layers
    mem = mem_ref[0]                 # (Ss, D) f32
    d = y.shape[-1]
    self_mask = tmask_ref[...] + tpad_ref[0]      # (St,St)
    cross_mask = mpad_ref[0]                      # (1,Ss), broadcasts over rows

    # --- masked self-attention ---
    qkv = (jnp.dot(_bf16(y), s_wqkv_ref[0], preferred_element_type=jnp.float32)
           + s_bqkv_ref[0])
    q, k, v = qkv[:, :d], qkv[:, d:2 * d], qkv[:, 2 * d:]
    sa = _mha(q, k, v, self_mask, s_wo_ref[0], s_bo_ref[0], ctx_ref, nhead)
    y1 = _layernorm(y + sa, g1_ref[0], be1_ref[0])

    # --- cross-attention (fused K/V projection of memory) ---
    q = (jnp.dot(_bf16(y1), c_wq_ref[0], preferred_element_type=jnp.float32)
         + c_bq_ref[0])
    kv = (jnp.dot(_bf16(mem), c_wkv_ref[0], preferred_element_type=jnp.float32)
          + c_bkv_ref[0])
    k, v = kv[:, :d], kv[:, d:]
    ca = _mha(q, k, v, cross_mask, c_wo_ref[0], c_bo_ref[0], ctx_ref, nhead)
    y2 = _layernorm(y1 + ca, g2_ref[0], be2_ref[0])

    # --- feed-forward ---
    h1 = jnp.maximum(
        jnp.dot(_bf16(y2), w1_ref[0], preferred_element_type=jnp.float32)
        + b1_ref[0], 0.0)
    ff = (jnp.dot(_bf16(h1), w2_ref[0], preferred_element_type=jnp.float32)
          + b2_ref[0])
    o_ref[0] = _layernorm(y2 + ff, g3_ref[0], be3_ref[0]).astype(o_ref.dtype)


# ---------------------------------------------------------------------------
# pallas_call wrappers
# ---------------------------------------------------------------------------

def _layer_spec(a):
    """Per-layer stacked weight: block (1, ...), indexed by the layer axis."""
    nzeros = a.ndim - 1
    return pl.BlockSpec((1,) + a.shape[1:], lambda b, l: (l,) + (0,) * nzeros)


_ENC_W = ["wqkv", "bqkv", "wo", "bo", "ln1_g", "ln1_b",
          "w1", "b1", "w2", "b2", "ln2_g", "ln2_b"]
_DEC_W = ["self_wqkv", "self_bqkv", "self_wo", "self_bo",
          "cross_wq", "cross_bq", "cross_wkv", "cross_bkv",
          "cross_wo", "cross_bo",
          "ln1_g", "ln1_b", "ln2_g", "ln2_b", "ln3_g", "ln3_b",
          "w1", "b1", "w2", "b2"]


def encoder_stack(x, attn_mask, pad_add, stacked, nhead):
    """All encoder layers in one pallas_call. x: (B,S,D), attn_mask: (S,S),
    pad_add: (B,1,S) additive f32."""
    bsz, s, d = x.shape
    n_layers = stacked["wqkv"].shape[0]
    ws = [stacked[n] for n in _ENC_W]
    return pl.pallas_call(
        functools.partial(_encoder_stack_kernel, nhead=nhead),
        out_shape=jax.ShapeDtypeStruct((bsz, s, d), x.dtype),
        grid=(bsz, n_layers),
        in_specs=[pl.BlockSpec((1, s, d), lambda b, l: (b, 0, 0)),
                  pl.BlockSpec((s, s), lambda b, l: (0, 0)),
                  pl.BlockSpec((1, 1, s), lambda b, l: (b, 0, 0))]
                 + [_layer_spec(w) for w in ws],
        out_specs=pl.BlockSpec((1, s, d), lambda b, l: (b, 0, 0)),
        scratch_shapes=[pltpu.VMEM((s, d), jnp.float32)],
        compiler_params=pltpu.CompilerParams(
            dimension_semantics=("parallel", "arbitrary"),
            vmem_limit_bytes=_VMEM_LIMIT),
    )(x, attn_mask, pad_add, *ws)


def decoder_stack(y, memory, tgt_mask, tgt_pad_add, mem_pad_add, stacked, nhead):
    """All decoder layers in one pallas_call. y: (B,St,D), memory: (B,Ss,D)."""
    bsz, st, d = y.shape
    ss = memory.shape[1]
    n_layers = stacked["self_wqkv"].shape[0]
    ws = [stacked[n] for n in _DEC_W]
    return pl.pallas_call(
        functools.partial(_decoder_stack_kernel, nhead=nhead),
        out_shape=jax.ShapeDtypeStruct((bsz, st, d), y.dtype),
        grid=(bsz, n_layers),
        in_specs=[pl.BlockSpec((1, st, d), lambda b, l: (b, 0, 0)),
                  pl.BlockSpec((1, ss, d), lambda b, l: (b, 0, 0)),
                  pl.BlockSpec((st, st), lambda b, l: (0, 0)),
                  pl.BlockSpec((1, 1, st), lambda b, l: (b, 0, 0)),
                  pl.BlockSpec((1, 1, ss), lambda b, l: (b, 0, 0))]
                 + [_layer_spec(w) for w in ws],
        out_specs=pl.BlockSpec((1, st, d), lambda b, l: (b, 0, 0)),
        scratch_shapes=[pltpu.VMEM((st, d), jnp.float32)],
        compiler_params=pltpu.CompilerParams(
            dimension_semantics=("parallel", "arbitrary"),
            vmem_limit_bytes=_VMEM_LIMIT),
    )(y, memory, tgt_mask, tgt_pad_add, mem_pad_add, *ws)


# ---------------------------------------------------------------------------
# Final generator linear (tiled over rows x vocab)
# ---------------------------------------------------------------------------

def _generator_kernel(x_ref, w_ref, b_ref, o_ref):
    o_ref[...] = (jnp.dot(_bf16(x_ref[...]), w_ref[...],
                          preferred_element_type=jnp.float32)
                  + b_ref[...]).astype(o_ref.dtype)


def generator_linear(x, w_bf16, b):
    """y = x @ w + b, w pre-transposed (d_in, vocab) bf16; x: (N, d_in) f32."""
    n, d = x.shape
    v = w_bf16.shape[1]
    tm = n if n <= 256 else 256          # 256 % 8 == 0 -> tiling-legal
    tn = v if v <= 2048 else 2048        # 2048 % 128 == 0 -> lane-dense stores
    grid = (pl.cdiv(n, tm), pl.cdiv(v, tn))
    return pl.pallas_call(
        _generator_kernel,
        out_shape=jax.ShapeDtypeStruct((n, v), jnp.float32),
        grid=grid,
        in_specs=[pl.BlockSpec((tm, d), lambda i, j: (i, 0)),
                  pl.BlockSpec((d, tn), lambda i, j: (0, j)),
                  pl.BlockSpec((1, tn), lambda i, j: (0, j))],
        out_specs=pl.BlockSpec((tm, tn), lambda i, j: (i, j)),
        compiler_params=pltpu.CompilerParams(
            dimension_semantics=("parallel", "parallel"),
            vmem_limit_bytes=_VMEM_LIMIT),
    )(x, w_bf16, b)


# ---------------------------------------------------------------------------
# Orchestration (plain JAX glue: embeddings, masks, reshapes)
# ---------------------------------------------------------------------------

def make_positional_encoding(max_len, d_model):
    pos = jnp.arange(max_len, dtype=jnp.float32)[:, None]
    div = jnp.exp(jnp.arange(0, d_model, 2, dtype=jnp.float32)
                  * (-math.log(10000.0) / d_model))
    pe = jnp.zeros((max_len, d_model), dtype=jnp.float32)
    pe = pe.at[:, 0::2].set(jnp.sin(pos * div))
    pe = pe.at[:, 1::2].set(jnp.cos(pos * div))
    return pe


def _pad_to_additive(pad_bool):
    """(B, Sk) bool -> (B, 1, Sk) additive f32 (0 / -1e9)."""
    return jnp.where(pad_bool, -1e9, 0.0).astype(jnp.float32)[:, None, :]


def sep_seq2seq_transformer_forward(params, cfg, src, src_mask, trg, tgt_mask,
                                    src_padding_mask, tgt_padding_mask,
                                    memory_key_padding_mask):
    d_model, nhead = cfg["d_model"], cfg["nhead"]
    s_src, bsz = src.shape
    s_tgt = trg.shape[0]
    pe = params["pe"]

    # Embed directly in batch-major (B, S, D).
    src_emb = (jnp.take(params["src_tok_emb"], src.T, axis=0) * math.sqrt(d_model)
               + pe[None, :s_src, :])
    tgt_emb = (jnp.take(params["tgt_tok_emb"], trg.T, axis=0) * math.sqrt(d_model)
               + pe[None, :s_tgt, :])
    # Dropout: identity (eval mode).

    src_pad_add = _pad_to_additive(src_padding_mask)              # (B,1,Ss)
    tgt_pad_add = _pad_to_additive(tgt_padding_mask)              # (B,1,St)
    mem_pad_add = _pad_to_additive(memory_key_padding_mask)       # (B,1,Ss)

    memory = encoder_stack(src_emb, src_mask.astype(jnp.float32), src_pad_add,
                           params["encoder"], nhead)
    y = decoder_stack(tgt_emb, memory, tgt_mask.astype(jnp.float32),
                      tgt_pad_add, mem_pad_add, params["decoder"], nhead)

    out = generator_linear(y.reshape(bsz * s_tgt, d_model),
                           params["decoder_w"], params["decoder_b"])
    out = out.reshape(bsz, s_tgt, -1)
    return jnp.transpose(out, (1, 0, 2))   # (S_tgt, B, vocab), PyTorch convention


# ---------------------------------------------------------------------------
# Deterministic parameter construction. Matmul weights are pre-transposed
# (d_in, d_out), stacked along a leading layer dim, and stored in bf16;
# biases / LayerNorm params stay f32. The attention scale is folded into the
# Q projection (weights + bias) at init time.
# ---------------------------------------------------------------------------

def _uniform(key, shape, scale=0.1):
    return jax.random.uniform(key, shape, minval=-scale, maxval=scale,
                              dtype=jnp.float32)


def init_encoder_stack_params(key, n_layers, d, dff, nhead):
    scale = 1.0 / math.sqrt(d // nhead)
    ks = jax.random.split(key, 8)
    wqkv = _uniform(ks[0], (n_layers, d, 3 * d))
    bqkv = _uniform(ks[1], (n_layers, 1, 3 * d))
    wqkv = wqkv.at[:, :, :d].multiply(scale)        # fold 1/sqrt(dh) into Q
    bqkv = bqkv.at[:, :, :d].multiply(scale)
    return {
        "wqkv": wqkv.astype(jnp.bfloat16),
        "bqkv": bqkv,
        "wo": _uniform(ks[2], (n_layers, d, d)).astype(jnp.bfloat16),
        "bo": _uniform(ks[3], (n_layers, 1, d)),
        "w1": _uniform(ks[4], (n_layers, d, dff)).astype(jnp.bfloat16),
        "b1": _uniform(ks[5], (n_layers, 1, dff)),
        "w2": _uniform(ks[6], (n_layers, dff, d)).astype(jnp.bfloat16),
        "b2": _uniform(ks[7], (n_layers, 1, d)),
        "ln1_g": jnp.ones((n_layers, 1, d), jnp.float32),
        "ln1_b": jnp.zeros((n_layers, 1, d), jnp.float32),
        "ln2_g": jnp.ones((n_layers, 1, d), jnp.float32),
        "ln2_b": jnp.zeros((n_layers, 1, d), jnp.float32),
    }


def init_decoder_stack_params(key, n_layers, d, dff, nhead):
    scale = 1.0 / math.sqrt(d // nhead)
    ks = jax.random.split(key, 14)
    s_wqkv = _uniform(ks[0], (n_layers, d, 3 * d))
    s_bqkv = _uniform(ks[1], (n_layers, 1, 3 * d))
    s_wqkv = s_wqkv.at[:, :, :d].multiply(scale)
    s_bqkv = s_bqkv.at[:, :, :d].multiply(scale)
    p = {
        "self_wqkv": s_wqkv.astype(jnp.bfloat16),
        "self_bqkv": s_bqkv,
        "self_wo": _uniform(ks[2], (n_layers, d, d)).astype(jnp.bfloat16),
        "self_bo": _uniform(ks[3], (n_layers, 1, d)),
        "cross_wq": (_uniform(ks[4], (n_layers, d, d)) * scale).astype(jnp.bfloat16),
        "cross_bq": _uniform(ks[5], (n_layers, 1, d)) * scale,
        "cross_wkv": _uniform(ks[6], (n_layers, d, 2 * d)).astype(jnp.bfloat16),
        "cross_bkv": _uniform(ks[7], (n_layers, 1, 2 * d)),
        "cross_wo": _uniform(ks[8], (n_layers, d, d)).astype(jnp.bfloat16),
        "cross_bo": _uniform(ks[9], (n_layers, 1, d)),
        "w1": _uniform(ks[10], (n_layers, d, dff)).astype(jnp.bfloat16),
        "b1": _uniform(ks[11], (n_layers, 1, dff)),
        "w2": _uniform(ks[12], (n_layers, dff, d)).astype(jnp.bfloat16),
        "b2": _uniform(ks[13], (n_layers, 1, d)),
    }
    for i in (1, 2, 3):
        p[f"ln{i}_g"] = jnp.ones((n_layers, 1, d), jnp.float32)
        p[f"ln{i}_b"] = jnp.zeros((n_layers, 1, d), jnp.float32)
    return p


def init_params(cfg, max_len=5000):
    key = jax.random.PRNGKey(0)
    ks = jax.random.split(key, 5)
    return {
        "src_tok_emb": _uniform(ks[0], (cfg["src_vocab_size"], cfg["d_model"])),
        "tgt_tok_emb": _uniform(ks[1], (cfg["tgt_vocab_size"], cfg["d_model"])),
        "decoder_w": _uniform(ks[2], (cfg["d_model"], cfg["tgt_vocab_size"])
                              ).astype(jnp.bfloat16),
        "decoder_b": jnp.zeros((1, cfg["tgt_vocab_size"]), jnp.float32),
        "pe": make_positional_encoding(max_len, cfg["d_model"]),
        "encoder": init_encoder_stack_params(
            ks[3], cfg["num_encoder_layer"], cfg["d_model"],
            cfg["dim_feedforward"], cfg["nhead"]),
        "decoder": init_decoder_stack_params(
            ks[4], cfg["num_decoder_layer"], cfg["d_model"],
            cfg["dim_feedforward"], cfg["nhead"]),
    }


# ---------------------------------------------------------------------------
# Main
# ---------------------------------------------------------------------------

if __name__ == "__main__":
    cfg = dict(src_vocab_size=50, tgt_vocab_size=60, d_model=32, nhead=4,
               dim_feedforward=64, num_encoder_layer=2, num_decoder_layer=2,
               dropout=0.1)

    S_SRC, S_TGT, B = 10, 8, 2

    key = jax.random.PRNGKey(0)
    k_src, k_tgt = jax.random.split(key)
    src = jax.random.randint(k_src, (S_SRC, B), 0, cfg["src_vocab_size"], jnp.int32)
    trg = jax.random.randint(k_tgt, (S_TGT, B), 0, cfg["tgt_vocab_size"], jnp.int32)

    # PyTorch-style masks: additive attn masks + boolean key-padding masks.
    src_mask = jnp.zeros((S_SRC, S_SRC), jnp.float32)
    tgt_mask = jnp.where(
        jnp.triu(jnp.ones((S_TGT, S_TGT), bool), k=1), -1e9, 0.0
    ).astype(jnp.float32)
    src_padding_mask = jnp.zeros((B, S_SRC), bool).at[1, -2:].set(True)
    tgt_padding_mask = jnp.zeros((B, S_TGT), bool).at[1, -1:].set(True)
    memory_key_padding_mask = src_padding_mask

    params = init_params(cfg)

    fwd = jax.jit(functools.partial(sep_seq2seq_transformer_forward, params, cfg))
    out = fwd(src, src_mask, trg, tgt_mask,
              src_padding_mask, tgt_padding_mask, memory_key_padding_mask)
    out = jax.block_until_ready(out)

    assert out.shape == (S_TGT, B, cfg["tgt_vocab_size"]), out.shape
    assert bool(jnp.all(jnp.isfinite(out)))
    print("KERNEL_OK")
</pallas_src>

<mosaic_0001>
module attributes {stable_mosaic.version = 11 : i64} {
  func.func @_generator_kernel(%arg0: i32, %arg1: i32, %arg2: memref<16x32xf32, #tpu.memory_space<vmem>>, %arg3: memref<32x60xbf16, #tpu.memory_space<vmem>>, %arg4: memref<1x60xf32, #tpu.memory_space<vmem>>, %arg5: memref<16x60xf32, #tpu.memory_space<vmem>>) attributes {dimension_semantics = [#tpu.dimension_semantics<parallel>, #tpu.dimension_semantics<parallel>], iteration_bounds = array<i64: 1, 1>, scalar_prefetch = 0 : i64, scratch_operands = 0 : i64, tpu.core_type = #tpu.core_type<tc>, window_params = [{transform_indices = @transform_0, window_bounds = array<i64: 16, 32>}, {transform_indices = @transform_1, window_bounds = array<i64: 32, 60>}, {transform_indices = @transform_2, window_bounds = array<i64: 1, 60>}, {transform_indices = @transform_3, window_bounds = array<i64: 16, 60>}]} {
    %c0 = arith.constant 0 : index
    %c0_0 = arith.constant 0 : index
    %0 = vector.load %arg2[%c0, %c0_0] : memref<16x32xf32, #tpu.memory_space<vmem>>, vector<16x32xf32>
    %1 = arith.truncf %0 : vector<16x32xf32> to vector<16x32xbf16>
    %c0_1 = arith.constant 0 : index
    %c0_2 = arith.constant 0 : index
    %2 = vector.load %arg3[%c0_1, %c0_2] : memref<32x60xbf16, #tpu.memory_space<vmem>>, vector<32x60xbf16>
    %cst = arith.constant dense<0.000000e+00> : vector<16x60xf32>
    %3 = tpu.matmul %1, %2, %cst {dimension_numbers = #tpu.dot_dimension_numbers<[1], [0], [0], [1], [0, 0, 1, 1], [], []>} : vector<16x32xbf16>, vector<32x60xbf16>, vector<16x60xf32> -> vector<16x60xf32>
    %c0_3 = arith.constant 0 : index
    %c0_4 = arith.constant 0 : index
    %4 = vector.load %arg4[%c0_3, %c0_4] : memref<1x60xf32, #tpu.memory_space<vmem>>, vector<1x60xf32>
    %5 = vector.broadcast %4 : vector<1x60xf32> to vector<16x60xf32>
    %6 = arith.addf %3, %5 : vector<16x60xf32>
    %c0_5 = arith.constant 0 : index
    %c0_6 = arith.constant 0 : index
    %7 = vector.load %arg5[%c0_5, %c0_6] : memref<16x60xf32, #tpu.memory_space<vmem>>, vector<16x60xf32>
    tpu.vector_store %arg5[%c0_5, %c0_6], %6 {strides = array<i32>} : memref<16x60xf32, #tpu.memory_space<vmem>>, vector<16x60xf32>,
    return
  }
  func.func @transform_0(%arg0: i32, %arg1: i32) -> (i32, i32) {
    %c0_i32 = arith.constant 0 : i32
    %c0_i32_0 = arith.constant 0 : i32
    return %arg0, %c0_i32 : i32, i32
  }
  func.func @transform_1(%arg0: i32, %arg1: i32) -> (i32, i32) {
    %c0_i32 = arith.constant 0 : i32
    %c0_i32_0 = arith.constant 0 : i32
    return %c0_i32, %arg1 : i32, i32
  }
  func.func @transform_2(%arg0: i32, %arg1: i32) -> (i32, i32) {
    %c0_i32 = arith.constant 0 : i32
    %c0_i32_0 = arith.constant 0 : i32
    return %c0_i32, %arg1 : i32, i32
  }
  func.func @transform_3(%arg0: i32, %arg1: i32) -> (i32, i32) {
    %c0_i32 = arith.constant 0 : i32
    return %arg0, %arg1 : i32, i32
  }
}

module attributes {stable_mosaic.version = 11 : i64} {
  func.func @_encoder_stack_kernel(%arg0: i32, %arg1: i32, %arg2: memref<1x10x32xf32, #tpu.memory_space<vmem>>, %arg3: memref<10x10xf32, #tpu.memory_space<vmem>>, %arg4: memref<1x1x10xf32, #tpu.memory_space<vmem>>, %arg5: memref<1x32x96xbf16, #tpu.memory_space<vmem>>, %arg6: memref<1x1x96xf32, #tpu.memory_space<vmem>>, %arg7: memref<1x32x32xbf16, #tpu.memory_space<vmem>>, %arg8: memref<1x1x32xf32, #tpu.memory_space<vmem>>, %arg9: memref<1x1x32xf32, #tpu.memory_space<vmem>>, %arg10: memref<1x1x32xf32, #tpu.memory_space<vmem>>, %arg11: memref<1x32x64xbf16, #tpu.memory_space<vmem>>, %arg12: memref<1x1x64xf32, #tpu.memory_space<vmem>>, %arg13: memref<1x64x32xbf16, #tpu.memory_space<vmem>>, %arg14: memref<1x1x32xf32, #tpu.memory_space<vmem>>, %arg15: memref<1x1x32xf32, #tpu.memory_space<vmem>>, %arg16: memref<1x1x32xf32, #tpu.memory_space<vmem>>, %arg17: memref<1x10x32xf32, #tpu.memory_space<vmem>>, %arg18: memref<10x32xf32, #tpu.memory_space<vmem>>) attributes {dimension_semantics = [#tpu.dimension_semantics<parallel>, #tpu.dimension_semantics<arbitrary>], iteration_bounds = array<i64: 2, 2>, scalar_prefetch = 0 : i64, scratch_operands = 1 : i64, tpu.core_type = #tpu.core_type<tc>, window_params = [{transform_indices = @transform_0, window_bounds = array<i64: 1, 10, 32>}, {pipeline_mode = #tpu.pipeline_mode<synchronous>, transform_indices = @transform_1, window_bounds = array<i64: 10, 10>}, {transform_indices = @transform_2, window_bounds = array<i64: 1, 1, 10>}, {transform_indices = @transform_3, window_bounds = array<i64: 1, 32, 96>}, {transform_indices = @transform_4, window_bounds = array<i64: 1, 1, 96>}, {transform_indices = @transform_5, window_bounds = array<i64: 1, 32, 32>}, {transform_indices = @transform_6, window_bounds = array<i64: 1, 1, 32>}, {transform_indices = @transform_7, window_bounds = array<i64: 1, 1, 32>}, {transform_indices = @transform_8, window_bounds = array<i64: 1, 1, 32>}, {transform_indices = @transform_9, window_bounds = array<i64: 1, 32, 64>}, {transform_indices = @transform_10, window_bounds = array<i64: 1, 1, 64>}, {transform_indices = @transform_11, window_bounds = array<i64: 1, 64, 32>}, {transform_indices = @transform_12, window_bounds = array<i64: 1, 1, 32>}, {transform_indices = @transform_13, window_bounds = array<i64: 1, 1, 32>}, {transform_indices = @transform_14, window_bounds = array<i64: 1, 1, 32>}, {transform_indices = @transform_15, window_bounds = array<i64: 1, 10, 32>}]} {
    %c0_i32 = arith.constant 0 : i32
    %0 = arith.cmpi eq, %arg1, %c0_i32 : i32
    %1 = arith.extui %0 : i1 to i32
    %c0_i32_0 = arith.constant 0 : i32
    %2 = arith.cmpi ne, %1, %c0_i32_0 : i32
    scf.if %2 {
      %c0_84 = arith.constant 0 : index
      %c0_85 = arith.constant 0 : index
      %c0_86 = arith.constant 0 : index
      %189 = vector.load %arg2[%c0_84, %c0_85, %c0_86] : memref<1x10x32xf32, #tpu.memory_space<vmem>>, vector<1x10x32xf32>
      %190 = vector.shape_cast %189 : vector<1x10x32xf32> to vector<10x32xf32>
      %c0_87 = arith.constant 0 : index
      %c0_88 = arith.constant 0 : index
      %c0_89 = arith.constant 0 : index
      %191 = vector.load %arg17[%c0_87, %c0_88, %c0_89] : memref<1x10x32xf32, #tpu.memory_space<vmem>>, vector<1x10x32xf32>
      %192 = vector.shape_cast %191 : vector<1x10x32xf32> to vector<10x32xf32>
      %193 = vector.shape_cast %190 : vector<10x32xf32> to vector<1x10x32xf32>
      tpu.vector_store %arg17[%c0_87, %c0_88, %c0_89], %193 {strides = array<i32>} : memref<1x10x32xf32, #tpu.memory_space<vmem>>, vector<1x10x32xf32>,
    } else {
    }
    %c0 = arith.constant 0 : index
    %c0_1 = arith.constant 0 : index
    %c0_2 = arith.constant 0 : index
    %3 = vector.load %arg17[%c0, %c0_1, %c0_2] : memref<1x10x32xf32, #tpu.memory_space<vmem>>, vector<1x10x32xf32>
    %4 = vector.shape_cast %3 : vector<1x10x32xf32> to vector<10x32xf32>
    %c0_3 = arith.constant 0 : index
    %c0_4 = arith.constant 0 : index
    %5 = vector.load %arg3[%c0_3, %c0_4] : memref<10x10xf32, #tpu.memory_space<vmem>>, vector<10x10xf32>
    %c0_5 = arith.constant 0 : index
    %c0_6 = arith.constant 0 : index
    %c0_7 = arith.constant 0 : index
    %6 = vector.load %arg4[%c0_5, %c0_6, %c0_7] : memref<1x1x10xf32, #tpu.memory_space<vmem>>, vector<1x1x10xf32>
    %7 = vector.shape_cast %6 : vector<1x1x10xf32> to vector<1x10xf32>
    %8 = vector.broadcast %7 : vector<1x10xf32> to vector<10x10xf32>
    %9 = arith.addf %5, %8 : vector<10x10xf32>
    %10 = arith.truncf %4 : vector<10x32xf32> to vector<10x32xbf16>
    %c0_8 = arith.constant 0 : index
    %c0_9 = arith.constant 0 : index
    %c0_10 = arith.constant 0 : index
    %11 = vector.load %arg5[%c0_8, %c0_9, %c0_10] : memref<1x32x96xbf16, #tpu.memory_space<vmem>>, vector<1x32x96xbf16>
    %12 = vector.shape_cast %11 : vector<1x32x96xbf16> to vector<32x96xbf16>
    %cst = arith.constant dense<0.000000e+00> : vector<10x96xf32>
    %13 = tpu.matmul %10, %12, %cst {dimension_numbers = #tpu.dot_dimension_numbers<[1], [0], [0], [1], [0, 0, 1, 1], [], []>} : vector<10x32xbf16>, vector<32x96xbf16>, vector<10x96xf32> -> vector<10x96xf32>
    %c0_11 = arith.constant 0 : index
    %c0_12 = arith.constant 0 : index
    %c0_13 = arith.constant 0 : index
    %14 = vector.load %arg6[%c0_11, %c0_12, %c0_13] : memref<1x1x96xf32, #tpu.memory_space<vmem>>, vector<1x1x96xf32>
    %15 = vector.shape_cast %14 : vector<1x1x96xf32> to vector<1x96xf32>
    %16 = vector.broadcast %15 : vector<1x96xf32> to vector<10x96xf32>
    %17 = arith.addf %13, %16 : vector<10x96xf32>
    %18 = vector.extract_strided_slice %17 {offsets = [0, 0], sizes = [10, 32], strides = [1, 1]} : vector<10x96xf32> to vector<10x32xf32>
    %19 = vector.extract_strided_slice %17 {offsets = [0, 32], sizes = [10, 32], strides = [1, 1]} : vector<10x96xf32> to vector<10x32xf32>
    %20 = vector.extract_strided_slice %17 {offsets = [0, 64], sizes = [10, 32], strides = [1, 1]} : vector<10x96xf32> to vector<10x32xf32>
    %c0_14 = arith.constant 0 : index
    %c0_15 = arith.constant 0 : index
    %c0_16 = arith.constant 0 : index
    %21 = vector.load %arg7[%c0_14, %c0_15, %c0_16] : memref<1x32x32xbf16, #tpu.memory_space<vmem>>, vector<1x32x32xbf16>
    %22 = vector.shape_cast %21 : vector<1x32x32xbf16> to vector<32x32xbf16>
    %c0_17 = arith.constant 0 : index
    %c0_18 = arith.constant 0 : index
    %c0_19 = arith.constant 0 : index
    %23 = vector.load %arg8[%c0_17, %c0_18, %c0_19] : memref<1x1x32xf32, #tpu.memory_space<vmem>>, vector<1x1x32xf32>
    %24 = vector.shape_cast %23 : vector<1x1x32xf32> to vector<1x32xf32>
    %25 = vector.extract_strided_slice %18 {offsets = [0, 0], sizes = [10, 8], strides = [1, 1]} : vector<10x32xf32> to vector<10x8xf32>
    %26 = arith.truncf %25 : vector<10x8xf32> to vector<10x8xbf16>
    %27 = vector.extract_strided_slice %19 {offsets = [0, 0], sizes = [10, 8], strides = [1, 1]} : vector<10x32xf32> to vector<10x8xf32>
    %28 = arith.truncf %27 : vector<10x8xf32> to vector<10x8xbf16>
    %cst_20 = arith.constant dense<0.000000e+00> : vector<10x10xf32>
    %29 = tpu.matmul %26, %28, %cst_20 {dimension_numbers = #tpu.dot_dimension_numbers<[1], [1], [0], [0], [0, 0, 1, 0], [], []>} : vector<10x8xbf16>, vector<10x8xbf16>, vector<10x10xf32> -> vector<10x10xf32>
    %30 = arith.addf %29, %9 : vector<10x10xf32>
    %cst_21 = arith.constant dense<0xFF800000> : vector<10xf32>
    %31 = vector.multi_reduction <maximumf>, %30, %cst_21 [1] : vector<10x10xf32> to vector<10xf32>
    %32 = vector.shape_cast %31 : vector<10xf32> to vector<10x1xf32>
    %33 = vector.broadcast %32 : vector<10x1xf32> to vector<10x10xf32>
    %34 = arith.subf %30, %33 : vector<10x10xf32>
    %35 = math.exp %34 : vector<10x10xf32>
    %cst_22 = arith.constant dense<0.000000e+00> : vector<10xf32>
    %36 = vector.multi_reduction <add>, %35, %cst_22 [1] : vector<10x10xf32> to vector<10xf32>
    %37 = vector.shape_cast %36 : vector<10xf32> to vector<10x1xf32>
    %38 = tpu.reciprocal %37 : vector<10x1xf32> -> vector<10x1xf32>
    %39 = vector.broadcast %38 : vector<10x1xf32> to vector<10x10xf32>
    %40 = arith.mulf %35, %39 : vector<10x10xf32>
    %41 = arith.truncf %40 : vector<10x10xf32> to vector<10x10xbf16>
    %42 = vector.extract_strided_slice %20 {offsets = [0, 0], sizes = [10, 8], strides = [1, 1]} : vector<10x32xf32> to vector<10x8xf32>
    %43 = arith.truncf %42 : vector<10x8xf32> to vector<10x8xbf16>
    %cst_23 = arith.constant dense<0.000000e+00> : vector<10x8xf32>
    %44 = tpu.matmul %41, %43, %cst_23 {dimension_numbers = #tpu.dot_dimension_numbers<[1], [0], [0], [1], [0, 0, 1, 1], [], []>} : vector<10x10xbf16>, vector<10x8xbf16>, vector<10x8xf32> -> vector<10x8xf32>
    %c0_24 = arith.constant 0 : index
    %c0_25 = arith.constant 0 : index
    %45 = vector.load %arg18[%c0_24, %c0_25] : memref<10x32xf32, #tpu.memory_space<vmem>>, vector<10x8xf32>
    tpu.vector_store %arg18[%c0_24, %c0_25], %44 {strides = array<i32>} : memref<10x32xf32, #tpu.memory_space<vmem>>, vector<10x8xf32>,
    %46 = vector.extract_strided_slice %18 {offsets = [0, 8], sizes = [10, 8], strides = [1, 1]} : vector<10x32xf32> to vector<10x8xf32>
    %47 = arith.truncf %46 : vector<10x8xf32> to vector<10x8xbf16>
    %48 = vector.extract_strided_slice %19 {offsets = [0, 8], sizes = [10, 8], strides = [1, 1]} : vector<10x32xf32> to vector<10x8xf32>
    %49 = arith.truncf %48 : vector<10x8xf32> to vector<10x8xbf16>
    %cst_26 = arith.constant dense<0.000000e+00> : vector<10x10xf32>
    %50 = tpu.matmul %47, %49, %cst_26 {dimension_numbers = #tpu.dot_dimension_numbers<[1], [1], [0], [0], [0, 0, 1, 0], [], []>} : vector<10x8xbf16>, vector<10x8xbf16>, vector<10x10xf32> -> vector<10x10xf32>
    %51 = arith.addf %50, %9 : vector<10x10xf32>
    %cst_27 = arith.constant dense<0xFF800000> : vector<10xf32>
    %52 = vector.multi_reduction <maximumf>, %51, %cst_27 [1] : vector<10x10xf32> to vector<10xf32>
    %53 = vector.shape_cast %52 : vector<10xf32> to vector<10x1xf32>
    %54 = vector.broadcast %53 : vector<10x1xf32> to vector<10x10xf32>
    %55 = arith.subf %51, %54 : vector<10x10xf32>
    %56 = math.exp %55 : vector<10x10xf32>
    %cst_28 = arith.constant dense<0.000000e+00> : vector<10xf32>
    %57 = vector.multi_reduction <add>, %56, %cst_28 [1] : vector<10x10xf32> to vector<10xf32>
    %58 = vector.shape_cast %57 : vector<10xf32> to vector<10x1xf32>
    %59 = tpu.reciprocal %58 : vector<10x1xf32> -> vector<10x1xf32>
    %60 = vector.broadcast %59 : vector<10x1xf32> to vector<10x10xf32>
    %61 = arith.mulf %56, %60 : vector<10x10xf32>
    %62 = arith.truncf %61 : vector<10x10xf32> to vector<10x10xbf16>
    %63 = vector.extract_strided_slice %20 {offsets = [0, 8], sizes = [10, 8], strides = [1, 1]} : vector<10x32xf32> to vector<10x8xf32>
    %64 = arith.truncf %63 : vector<10x8xf32> to vector<10x8xbf16>
    %cst_29 = arith.constant dense<0.000000e+00> : vector<10x8xf32>
    %65 = tpu.matmul %62, %64, %cst_29 {dimension_numbers = #tpu.dot_dimension_numbers<[1], [0], [0], [1], [0, 0, 1, 1], [], []>} : vector<10x10xbf16>, vector<10x8xbf16>, vector<10x8xf32> -> vector<10x8xf32>
    %c0_30 = arith.constant 0 : index
    %c8 = arith.constant 8 : index
    %66 = vector.load %arg18[%c0_30, %c8] : memref<10x32xf32, #tpu.memory_space<vmem>>, vector<10x8xf32>
    tpu.vector_store %arg18[%c0_30, %c8], %65 {strides = array<i32>} : memref<10x32xf32, #tpu.memory_space<vmem>>, vector<10x8xf32>,
    %67 = vector.extract_strided_slice %18 {offsets = [0, 16], sizes = [10, 8], strides = [1, 1]} : vector<10x32xf32> to vector<10x8xf32>
    %68 = arith.truncf %67 : vector<10x8xf32> to vector<10x8xbf16>
    %69 = vector.extract_strided_slice %19 {offsets = [0, 16], sizes = [10, 8], strides = [1, 1]} : vector<10x32xf32> to vector<10x8xf32>
    %70 = arith.truncf %69 : vector<10x8xf32> to vector<10x8xbf16>
    %cst_31 = arith.constant dense<0.000000e+00> : vector<10x10xf32>
    %71 = tpu.matmul %68, %70, %cst_31 {dimension_numbers = #tpu.dot_dimension_numbers<[1], [1], [0], [0], [0, 0, 1, 0], [], []>} : vector<10x8xbf16>, vector<10x8xbf16>, vector<10x10xf32> -> vector<10x10xf32>
    %72 = arith.addf %71, %9 : vector<10x10xf32>
    %cst_32 = arith.constant dense<0xFF800000> : vector<10xf32>
    %73 = vector.multi_reduction <maximumf>, %72, %cst_32 [1] : vector<10x10xf32> to vector<10xf32>
    %74 = vector.shape_cast %73 : vector<10xf32> to vector<10x1xf32>
    %75 = vector.broadcast %74 : vector<10x1xf32> to vector<10x10xf32>
    %76 = arith.subf %72, %75 : vector<10x10xf32>
    %77 = math.exp %76 : vector<10x10xf32>
    %cst_33 = arith.constant dense<0.000000e+00> : vector<10xf32>
    %78 = vector.multi_reduction <add>, %77, %cst_33 [1] : vector<10x10xf32> to vector<10xf32>
    %79 = vector.shape_cast %78 : vector<10xf32> to vector<10x1xf32>
    %80 = tpu.reciprocal %79 : vector<10x1xf32> -> vector<10x1xf32>
    %81 = vector.broadcast %80 : vector<10x1xf32> to vector<10x10xf32>
    %82 = arith.mulf %77, %81 : vector<10x10xf32>
    %83 = arith.truncf %82 : vector<10x10xf32> to vector<10x10xbf16>
    %84 = vector.extract_strided_slice %20 {offsets = [0, 16], sizes = [10, 8], strides = [1, 1]} : vector<10x32xf32> to vector<10x8xf32>
    %85 = arith.truncf %84 : vector<10x8xf32> to vector<10x8xbf16>
    %cst_34 = arith.constant dense<0.000000e+00> : vector<10x8xf32>
    %86 = tpu.matmul %83, %85, %cst_34 {dimension_numbers = #tpu.dot_dimension_numbers<[1], [0], [0], [1], [0, 0, 1, 1], [], []>} : vector<10x10xbf16>, vector<10x8xbf16>, vector<10x8xf32> -> vector<10x8xf32>
    %c0_35 = arith.constant 0 : index
    %c16 = arith.constant 16 : index
    %87 = vector.load %arg18[%c0_35, %c16] : memref<10x32xf32, #tpu.memory_space<vmem>>, vector<10x8xf32>
    tpu.vector_store %arg18[%c0_35, %c16], %86 {strides = array<i32>} : memref<10x32xf32, #tpu.memory_space<vmem>>, vector<10x8xf32>,
    %88 = vector.extract_strided_slice %18 {offsets = [0, 24], sizes = [10, 8], strides = [1, 1]} : vector<10x32xf32> to vector<10x8xf32>
    %89 = arith.truncf %88 : vector<10x8xf32> to vector<10x8xbf16>
    %90 = vector.extract_strided_slice %19 {offsets = [0, 24], sizes = [10, 8], strides = [1, 1]} : vector<10x32xf32> to vector<10x8xf32>
    %91 = arith.truncf %90 : vector<10x8xf32> to vector<10x8xbf16>
    %cst_36 = arith.constant dense<0.000000e+00> : vector<10x10xf32>
    %92 = tpu.matmul %89, %91, %cst_36 {dimension_numbers = #tpu.dot_dimension_numbers<[1], [1], [0], [0], [0, 0, 1, 0], [], []>} : vector<10x8xbf16>, vector<10x8xbf16>, vector<10x10xf32> -> vector<10x10xf32>
    %93 = arith.addf %92, %9 : vector<10x10xf32>
    %cst_37 = arith.constant dense<0xFF800000> : vector<10xf32>
    %94 = vector.multi_reduction <maximumf>, %93, %cst_37 [1] : vector<10x10xf32> to vector<10xf32>
    %95 = vector.shape_cast %94 : vector<10xf32> to vector<10x1xf32>
    %96 = vector.broadcast %95 : vector<10x1xf32> to vector<10x10xf32>
    %97 = arith.subf %93, %96 : vector<10x10xf32>
    %98 = math.exp %97 : vector<10x10xf32>
    %cst_38 = arith.constant dense<0.000000e+00> : vector<10xf32>
    %99 = vector.multi_reduction <add>, %98, %cst_38 [1] : vector<10x10xf32> to vector<10xf32>
    %100 = vector.shape_cast %99 : vector<10xf32> to vector<10x1xf32>
    %101 = tpu.reciprocal %100 : vector<10x1xf32> -> vector<10x1xf32>
    %102 = vector.broadcast %101 : vector<10x1xf32> to vector<10x10xf32>
    %103 = arith.mulf %98, %102 : vector<10x10xf32>
    %104 = arith.truncf %103 : vector<10x10xf32> to vector<10x10xbf16>
    %105 = vector.extract_strided_slice %20 {offsets = [0, 24], sizes = [10, 8], strides = [1, 1]} : vector<10x32xf32> to vector<10x8xf32>
    %106 = arith.truncf %105 : vector<10x8xf32> to vector<10x8xbf16>
    %cst_39 = arith.constant dense<0.000000e+00> : vector<10x8xf32>
    %107 = tpu.matmul %104, %106, %cst_39 {dimension_numbers = #tpu.dot_dimension_numbers<[1], [0], [0], [1], [0, 0, 1, 1], [], []>} : vector<10x10xbf16>, vector<10x8xbf16>, vector<10x8xf32> -> vector<10x8xf32>
    %c0_40 = arith.constant 0 : index
    %c24 = arith.constant 24 : index
    %108 = vector.load %arg18[%c0_40, %c24] : memref<10x32xf32, #tpu.memory_space<vmem>>, vector<10x8xf32>
    tpu.vector_store %arg18[%c0_40, %c24], %107 {strides = array<i32>} : memref<10x32xf32, #tpu.memory_space<vmem>>, vector<10x8xf32>,
    %c0_41 = arith.constant 0 : index
    %c0_42 = arith.constant 0 : index
    %109 = vector.load %arg18[%c0_41, %c0_42] : memref<10x32xf32, #tpu.memory_space<vmem>>, vector<10x32xf32>
    %110 = arith.truncf %109 : vector<10x32xf32> to vector<10x32xbf16>
    %cst_43 = arith.constant dense<0.000000e+00> : vector<10x32xf32>
    %111 = tpu.matmul %110, %22, %cst_43 {dimension_numbers = #tpu.dot_dimension_numbers<[1], [0], [0], [1], [0, 0, 1, 1], [], []>} : vector<10x32xbf16>, vector<32x32xbf16>, vector<10x32xf32> -> vector<10x32xf32>
    %112 = vector.broadcast %24 : vector<1x32xf32> to vector<10x32xf32>
    %113 = arith.addf %111, %112 : vector<10x32xf32>
    %114 = arith.addf %4, %113 : vector<10x32xf32>
    %c0_44 = arith.constant 0 : index
    %c0_45 = arith.constant 0 : index
    %c0_46 = arith.constant 0 : index
    %115 = vector.load %arg9[%c0_44, %c0_45, %c0_46] : memref<1x1x32xf32, #tpu.memory_space<vmem>>, vector<1x1x32xf32>
    %116 = vector.shape_cast %115 : vector<1x1x32xf32> to vector<1x32xf32>
    %c0_47 = arith.constant 0 : index
    %c0_48 = arith.constant 0 : index
    %c0_49 = arith.constant 0 : index
    %117 = vector.load %arg10[%c0_47, %c0_48, %c0_49] : memref<1x1x32xf32, #tpu.memory_space<vmem>>, vector<1x1x32xf32>
    %118 = vector.shape_cast %117 : vector<1x1x32xf32> to vector<1x32xf32>
    %cst_50 = arith.constant dense<0.000000e+00> : vector<10xf32>
    %119 = vector.multi_reduction <add>, %114, %cst_50 [1] : vector<10x32xf32> to vector<10xf32>
    %120 = vector.shape_cast %119 : vector<10xf32> to vector<10x1xf32>
    %cst_51 = arith.constant 3.200000e+01 : f32
    %121 = vector.broadcast %cst_51 : f32 to vector<10x1xf32>
    %122 = arith.divf %120, %121 : vector<10x1xf32>
    %123 = vector.broadcast %122 : vector<10x1xf32> to vector<10x32xf32>
    %124 = arith.subf %114, %123 : vector<10x32xf32>
    %125 = arith.mulf %124, %124 : vector<10x32xf32>
    %cst_52 = arith.constant dense<0.000000e+00> : vector<10xf32>
    %126 = vector.multi_reduction <add>, %125, %cst_52 [1] : vector<10x32xf32> to vector<10xf32>
    %127 = vector.shape_cast %126 : vector<10xf32> to vector<10x1xf32>
    %cst_53 = arith.constant 3.200000e+01 : f32
    %128 = vector.broadcast %cst_53 : f32 to vector<10x1xf32>
    %129 = arith.divf %127, %128 : vector<10x1xf32>
    %130 = vector.broadcast %122 : vector<10x1xf32> to vector<10x32xf32>
    %131 = arith.subf %114, %130 : vector<10x32xf32>
    %cst_54 = arith.constant 9.99999974E-6 : f32
    %132 = vector.broadcast %cst_54 : f32 to vector<10x1xf32>
    %133 = arith.addf %129, %132 : vector<10x1xf32>
    %134 = math.rsqrt %133 : vector<10x1xf32>
    %135 = vector.broadcast %134 : vector<10x1xf32> to vector<10x32xf32>
    %136 = arith.mulf %131, %135 : vector<10x32xf32>
    %137 = vector.broadcast %116 : vector<1x32xf32> to vector<10x32xf32>
    %138 = arith.mulf %136, %137 : vector<10x32xf32>
    %139 = vector.broadcast %118 : vector<1x32xf32> to vector<10x32xf32>
    %140 = arith.addf %138, %139 : vector<10x32xf32>
    %141 = arith.truncf %140 : vector<10x32xf32> to vector<10x32xbf16>
    %c0_55 = arith.constant 0 : index
    %c0_56 = arith.constant 0 : index
    %c0_57 = arith.constant 0 : index
    %142 = vector.load %arg11[%c0_55, %c0_56, %c0_57] : memref<1x32x64xbf16, #tpu.memory_space<vmem>>, vector<1x32x64xbf16>
    %143 = vector.shape_cast %142 : vector<1x32x64xbf16> to vector<32x64xbf16>
    %cst_58 = arith.constant dense<0.000000e+00> : vector<10x64xf32>
    %144 = tpu.matmul %141, %143, %cst_58 {dimension_numbers = #tpu.dot_dimension_numbers<[1], [0], [0], [1], [0, 0, 1, 1], [], []>} : vector<10x32xbf16>, vector<32x64xbf16>, vector<10x64xf32> -> vector<10x64xf32>
    %c0_59 = arith.constant 0 : index
    %c0_60 = arith.constant 0 : index
    %c0_61 = arith.constant 0 : index
    %145 = vector.load %arg12[%c0_59, %c0_60, %c0_61] : memref<1x1x64xf32, #tpu.memory_space<vmem>>, vector<1x1x64xf32>
    %146 = vector.shape_cast %145 : vector<1x1x64xf32> to vector<1x64xf32>
    %147 = vector.broadcast %146 : vector<1x64xf32> to vector<10x64xf32>
    %148 = arith.addf %144, %147 : vector<10x64xf32>
    %cst_62 = arith.constant 0.000000e+00 : f32
    %149 = vector.broadcast %cst_62 : f32 to vector<10x64xf32>
    %150 = arith.maximumf %148, %149 : vector<10x64xf32>
    %151 = arith.truncf %150 : vector<10x64xf32> to vector<10x64xbf16>
    %c0_63 = arith.constant 0 : index
    %c0_64 = arith.constant 0 : index
    %c0_65 = arith.constant 0 : index
    %152 = vector.load %arg13[%c0_63, %c0_64, %c0_65] : memref<1x64x32xbf16, #tpu.memory_space<vmem>>, vector<1x64x32xbf16>
    %153 = vector.shape_cast %152 : vector<1x64x32xbf16> to vector<64x32xbf16>
    %cst_66 = arith.constant dense<0.000000e+00> : vector<10x32xf32>
    %154 = tpu.matmul %151, %153, %cst_66 {dimension_numbers = #tpu.dot_dimension_numbers<[1], [0], [0], [1], [0, 0, 1, 1], [], []>} : vector<10x64xbf16>, vector<64x32xbf16>, vector<10x32xf32> -> vector<10x32xf32>
    %c0_67 = arith.constant 0 : index
    %c0_68 = arith.constant 0 : index
    %c0_69 = arith.constant 0 : index
    %155 = vector.load %arg14[%c0_67, %c0_68, %c0_69] : memref<1x1x32xf32, #tpu.memory_space<vmem>>, vector<1x1x32xf32>
    %156 = vector.shape_cast %155 : vector<1x1x32xf32> to vector<1x32xf32>
    %157 = vector.broadcast %156 : vector<1x32xf32> to vector<10x32xf32>
    %158 = arith.addf %154, %157 : vector<10x32xf32>
    %159 = arith.addf %140, %158 : vector<10x32xf32>
    %c0_70 = arith.constant 0 : index
    %c0_71 = arith.constant 0 : index
    %c0_72 = arith.constant 0 : index
    %160 = vector.load %arg15[%c0_70, %c0_71, %c0_72] : memref<1x1x32xf32, #tpu.memory_space<vmem>>, vector<1x1x32xf32>
    %161 = vector.shape_cast %160 : vector<1x1x32xf32> to vector<1x32xf32>
    %c0_73 = arith.constant 0 : index
    %c0_74 = arith.constant 0 : index
    %c0_75 = arith.constant 0 : index
    %162 = vector.load %arg16[%c0_73, %c0_74, %c0_75] : memref<1x1x32xf32, #tpu.memory_space<vmem>>, vector<1x1x32xf32>
    %163 = vector.shape_cast %162 : vector<1x1x32xf32> to vector<1x32xf32>
    %cst_76 = arith.constant dense<0.000000e+00> : vector<10xf32>
    %164 = vector.multi_reduction <add>, %159, %cst_76 [1] : vector<10x32xf32> to vector<10xf32>
    %165 = vector.shape_cast %164 : vector<10xf32> to vector<10x1xf32>
    %cst_77 = arith.constant 3.200000e+01 : f32
    %166 = vector.broadcast %cst_77 : f32 to vector<10x1xf32>
    %167 = arith.divf %165, %166 : vector<10x1xf32>
    %168 = vector.broadcast %167 : vector<10x1xf32> to vector<10x32xf32>
    %169 = arith.subf %159, %168 : vector<10x32xf32>
    %170 = arith.mulf %169, %169 : vector<10x32xf32>
    %cst_78 = arith.constant dense<0.000000e+00> : vector<10xf32>
    %171 = vector.multi_reduction <add>, %170, %cst_78 [1] : vector<10x32xf32> to vector<10xf32>
    %172 = vector.shape_cast %171 : vector<10xf32> to vector<10x1xf32>
    %cst_79 = arith.constant 3.200000e+01 : f32
    %173 = vector.broadcast %cst_79 : f32 to vector<10x1xf32>
    %174 = arith.divf %172, %173 : vector<10x1xf32>
    %175 = vector.broadcast %167 : vector<10x1xf32> to vector<10x32xf32>
    %176 = arith.subf %159, %175 : vector<10x32xf32>
    %cst_80 = arith.constant 9.99999974E-6 : f32
    %177 = vector.broadcast %cst_80 : f32 to vector<10x1xf32>
    %178 = arith.addf %174, %177 : vector<10x1xf32>
    %179 = math.rsqrt %178 : vector<10x1xf32>
    %180 = vector.broadcast %179 : vector<10x1xf32> to vector<10x32xf32>
    %181 = arith.mulf %176, %180 : vector<10x32xf32>
    %182 = vector.broadcast %161 : vector<1x32xf32> to vector<10x32xf32>
    %183 = arith.mulf %181, %182 : vector<10x32xf32>
    %184 = vector.broadcast %163 : vector<1x32xf32> to vector<10x32xf32>
    %185 = arith.addf %183, %184 : vector<10x32xf32>
    %c0_81 = arith.constant 0 : index
    %c0_82 = arith.constant 0 : index
    %c0_83 = arith.constant 0 : index
    %186 = vector.load %arg17[%c0_81, %c0_82, %c0_83] : memref<1x10x32xf32, #tpu.memory_space<vmem>>, vector<1x10x32xf32>
    %187 = vector.shape_cast %186 : vector<1x10x32xf32> to vector<10x32xf32>
    %188 = vector.shape_cast %185 : vector<10x32xf32> to vector<1x10x32xf32>
    tpu.vector_store %arg17[%c0_81, %c0_82, %c0_83], %188 {strides = array<i32>} : memref<1x10x32xf32, #tpu.memory_space<vmem>>, vector<1x10x32xf32>,
    return
  }
  func.func @transform_0(%arg0: i32, %arg1: i32) -> (i32, i32, i32) {
    %c0_i32 = arith.constant 0 : i32
    %c0_i32_0 = arith.constant 0 : i32
    %c0_i32_1 = arith.constant 0 : i32
    return %arg0, %c0_i32, %c0_i32_0 : i32, i32, i32
  }
  func.func @transform_1(%arg0: i32, %arg1: i32) -> (i32, i32) {
    %c0_i32 = arith.constant 0 : i32
    %c0_i32_0 = arith.constant 0 : i32
    %c0_i32_1 = arith.constant 0 : i32
    return %c0_i32, %c0_i32_0 : i32, i32
  }
  func.func @transform_2(%arg0: i32, %arg1: i32) -> (i32, i32, i32) {
    %c0_i32 = arith.constant 0 : i32
    %c0_i32_0 = arith.constant 0 : i32
    %c0_i32_1 = arith.constant 0 : i32
    return %arg0, %c0_i32, %c0_i32_0 : i32, i32, i32
  }
  func.func @transform_3(%arg0: i32, %arg1: i32) -> (i32, i32, i32) {
    %c0_i32 = arith.constant 0 : i32
    %c0_i32_0 = arith.constant 0 : i32
    %c0_i32_1 = arith.constant 0 : i32
    return %arg1, %c0_i32, %c0_i32_0 : i32, i32, i32
  }
  func.func @transform_4(%arg0: i32, %arg1: i32) -> (i32, i32, i32) {
    %c0_i32 = arith.constant 0 : i32
    %c0_i32_0 = arith.constant 0 : i32
    %c0_i32_1 = arith.constant 0 : i32
    return %arg1, %c0_i32, %c0_i32_0 : i32, i32, i32
  }
  func.func @transform_5(%arg0: i32, %arg1: i32) -> (i32, i32, i32) {
    %c0_i32 = arith.constant 0 : i32
    %c0_i32_0 = arith.constant 0 : i32
    %c0_i32_1 = arith.constant 0 : i32
    return %arg1, %c0_i32, %c0_i32_0 : i32, i32, i32
  }
  func.func @transform_6(%arg0: i32, %arg1: i32) -> (i32, i32, i32) {
    %c0_i32 = arith.constant 0 : i32
    %c0_i32_0 = arith.constant 0 : i32
    %c0_i32_1 = arith.constant 0 : i32
    return %arg1, %c0_i32, %c0_i32_0 : i32, i32, i32
  }
  func.func @transform_7(%arg0: i32, %arg1: i32) -> (i32, i32, i32) {
    %c0_i32 = arith.constant 0 : i32
    %c0_i32_0 = arith.constant 0 : i32
    %c0_i32_1 = arith.constant 0 : i32
    return %arg1, %c0_i32, %c0_i32_0 : i32, i32, i32
  }
  func.func @transform_8(%arg0: i32, %arg1: i32) -> (i32, i32, i32) {
    %c0_i32 = arith.constant 0 : i32
    %c0_i32_0 = arith.constant 0 : i32
    %c0_i32_1 = arith.constant 0 : i32
    return %arg1, %c0_i32, %c0_i32_0 : i32, i32, i32
  }
  func.func @transform_9(%arg0: i32, %arg1: i32) -> (i32, i32, i32) {
    %c0_i32 = arith.constant 0 : i32
    %c0_i32_0 = arith.constant 0 : i32
    %c0_i32_1 = arith.constant 0 : i32
    return %arg1, %c0_i32, %c0_i32_0 : i32, i32, i32
  }
  func.func @transform_10(%arg0: i32, %arg1: i32) -> (i32, i32, i32) {
    %c0_i32 = arith.constant 0 : i32
    %c0_i32_0 = arith.constant 0 : i32
    %c0_i32_1 = arith.constant 0 : i32
    return %arg1, %c0_i32, %c0_i32_0 : i32, i32, i32
  }
  func.func @transform_11(%arg0: i32, %arg1: i32) -> (i32, i32, i32) {
    %c0_i32 = arith.constant 0 : i32
    %c0_i32_0 = arith.constant 0 : i32
    %c0_i32_1 = arith.constant 0 : i32
    return %arg1, %c0_i32, %c0_i32_0 : i32, i32, i32
  }
  func.func @transform_12(%arg0: i32, %arg1: i32) -> (i32, i32, i32) {
    %c0_i32 = arith.constant 0 : i32
    %c0_i32_0 = arith.constant 0 : i32
    %c0_i32_1 = arith.constant 0 : i32
    return %arg1, %c0_i32, %c0_i32_0 : i32, i32, i32
  }
  func.func @transform_13(%arg0: i32, %arg1: i32) -> (i32, i32, i32) {
    %c0_i32 = arith.constant 0 : i32
    %c0_i32_0 = arith.constant 0 : i32
    %c0_i32_1 = arith.constant 0 : i32
    return %arg1, %c0_i32, %c0_i32_0 : i32, i32, i32
  }
  func.func @transform_14(%arg0: i32, %arg1: i32) -> (i32, i32, i32) {
    %c0_i32 = arith.constant 0 : i32
    %c0_i32_0 = arith.constant 0 : i32
    %c0_i32_1 = arith.constant 0 : i32
    return %arg1, %c0_i32, %c0_i32_0 : i32, i32, i32
  }
  func.func @transform_15(%arg0: i32, %arg1: i32) -> (i32, i32, i32) {
    %c0_i32 = arith.constant 0 : i32
    %c0_i32_0 = arith.constant 0 : i32
    %c0_i32_1 = arith.constant 0 : i32
    return %arg0, %c0_i32, %c0_i32_0 : i32, i32, i32
  }
}

module attributes {stable_mosaic.version = 11 : i64} {
  func.func @_decoder_stack_kernel(%arg0: i32, %arg1: i32, %arg2: memref<1x8x32xf32, #tpu.memory_space<vmem>>, %arg3: memref<1x10x32xf32, #tpu.memory_space<vmem>>, %arg4: memref<8x8xf32, #tpu.memory_space<vmem>>, %arg5: memref<1x1x8xf32, #tpu.memory_space<vmem>>, %arg6: memref<1x1x10xf32, #tpu.memory_space<vmem>>, %arg7: memref<1x32x96xbf16, #tpu.memory_space<vmem>>, %arg8: memref<1x1x96xf32, #tpu.memory_space<vmem>>, %arg9: memref<1x32x32xbf16, #tpu.memory_space<vmem>>, %arg10: memref<1x1x32xf32, #tpu.memory_space<vmem>>, %arg11: memref<1x32x32xbf16, #tpu.memory_space<vmem>>, %arg12: memref<1x1x32xf32, #tpu.memory_space<vmem>>, %arg13: memref<1x32x64xbf16, #tpu.memory_space<vmem>>, %arg14: memref<1x1x64xf32, #tpu.memory_space<vmem>>, %arg15: memref<1x32x32xbf16, #tpu.memory_space<vmem>>, %arg16: memref<1x1x32xf32, #tpu.memory_space<vmem>>, %arg17: memref<1x1x32xf32, #tpu.memory_space<vmem>>, %arg18: memref<1x1x32xf32, #tpu.memory_space<vmem>>, %arg19: memref<1x1x32xf32, #tpu.memory_space<vmem>>, %arg20: memref<1x1x32xf32, #tpu.memory_space<vmem>>, %arg21: memref<1x1x32xf32, #tpu.memory_space<vmem>>, %arg22: memref<1x1x32xf32, #tpu.memory_space<vmem>>, %arg23: memref<1x32x64xbf16, #tpu.memory_space<vmem>>, %arg24: memref<1x1x64xf32, #tpu.memory_space<vmem>>, %arg25: memref<1x64x32xbf16, #tpu.memory_space<vmem>>, %arg26: memref<1x1x32xf32, #tpu.memory_space<vmem>>, %arg27: memref<1x8x32xf32, #tpu.memory_space<vmem>>, %arg28: memref<8x32xf32, #tpu.memory_space<vmem>>) attributes {dimension_semantics = [#tpu.dimension_semantics<parallel>, #tpu.dimension_semantics<arbitrary>], iteration_bounds = array<i64: 2, 2>, scalar_prefetch = 0 : i64, scratch_operands = 1 : i64, tpu.core_type = #tpu.core_type<tc>, window_params = [{transform_indices = @transform_0, window_bounds = array<i64: 1, 8, 32>}, {transform_indices = @transform_1, window_bounds = array<i64: 1, 10, 32>}, {pipeline_mode = #tpu.pipeline_mode<synchronous>, transform_indices = @transform_2, window_bounds = array<i64: 8, 8>}, {transform_indices = @transform_3, window_bounds = array<i64: 1, 1, 8>}, {transform_indices = @transform_4, window_bounds = array<i64: 1, 1, 10>}, {transform_indices = @transform_5, window_bounds = array<i64: 1, 32, 96>}, {transform_indices = @transform_6, window_bounds = array<i64: 1, 1, 96>}, {transform_indices = @transform_7, window_bounds = array<i64: 1, 32, 32>}, {transform_indices = @transform_8, window_bounds = array<i64: 1, 1, 32>}, {transform_indices = @transform_9, window_bounds = array<i64: 1, 32, 32>}, {transform_indices = @transform_10, window_bounds = array<i64: 1, 1, 32>}, {transform_indices = @transform_11, window_bounds = array<i64: 1, 32, 64>}, {transform_indices = @transform_12, window_bounds = array<i64: 1, 1, 64>}, {transform_indices = @transform_13, window_bounds = array<i64: 1, 32, 32>}, {transform_indices = @transform_14, window_bounds = array<i64: 1, 1, 32>}, {transform_indices = @transform_15, window_bounds = array<i64: 1, 1, 32>}, {transform_indices = @transform_16, window_bounds = array<i64: 1, 1, 32>}, {transform_indices = @transform_17, window_bounds = array<i64: 1, 1, 32>}, {transform_indices = @transform_18, window_bounds = array<i64: 1, 1, 32>}, {transform_indices = @transform_19, window_bounds = array<i64: 1, 1, 32>}, {transform_indices = @transform_20, window_bounds = array<i64: 1, 1, 32>}, {transform_indices = @transform_21, window_bounds = array<i64: 1, 32, 64>}, {transform_indices = @transform_22, window_bounds = array<i64: 1, 1, 64>}, {transform_indices = @transform_23, window_bounds = array<i64: 1, 64, 32>}, {transform_indices = @transform_24, window_bounds = array<i64: 1, 1, 32>}, {transform_indices = @transform_25, window_bounds = array<i64: 1, 8, 32>}]} {
    %c0_i32 = arith.constant 0 : i32
    %0 = arith.cmpi eq, %arg1, %c0_i32 : i32
    %1 = arith.extui %0 : i1 to i32
    %c0_i32_0 = arith.constant 0 : i32
    %2 = arith.cmpi ne, %1, %c0_i32_0 : i32
    scf.if %2 {
      %c0_148 = arith.constant 0 : index
      %c0_149 = arith.constant 0 : index
      %c0_150 = arith.constant 0 : index
      %335 = vector.load %arg2[%c0_148, %c0_149, %c0_150] : memref<1x8x32xf32, #tpu.memory_space<vmem>>, vector<1x8x32xf32>
      %336 = vector.shape_cast %335 : vector<1x8x32xf32> to vector<8x32xf32>
      %c0_151 = arith.constant 0 : index
      %c0_152 = arith.constant 0 : index
      %c0_153 = arith.constant 0 : index
      %337 = vector.load %arg27[%c0_151, %c0_152, %c0_153] : memref<1x8x32xf32, #tpu.memory_space<vmem>>, vector<1x8x32xf32>
      %338 = vector.shape_cast %337 : vector<1x8x32xf32> to vector<8x32xf32>
      %339 = vector.shape_cast %336 : vector<8x32xf32> to vector<1x8x32xf32>
      tpu.vector_store %arg27[%c0_151, %c0_152, %c0_153], %339 {strides = array<i32>} : memref<1x8x32xf32, #tpu.memory_space<vmem>>, vector<1x8x32xf32>,
    } else {
    }
    %c0 = arith.constant 0 : index
    %c0_1 = arith.constant 0 : index
    %c0_2 = arith.constant 0 : index
    %3 = vector.load %arg27[%c0, %c0_1, %c0_2] : memref<1x8x32xf32, #tpu.memory_space<vmem>>, vector<1x8x32xf32>
    %4 = vector.shape_cast %3 : vector<1x8x32xf32> to vector<8x32xf32>
    %c0_3 = arith.constant 0 : index
    %c0_4 = arith.constant 0 : index
    %c0_5 = arith.constant 0 : index
    %5 = vector.load %arg3[%c0_3, %c0_4, %c0_5] : memref<1x10x32xf32, #tpu.memory_space<vmem>>, vector<1x10x32xf32>
    %6 = vector.shape_cast %5 : vector<1x10x32xf32> to vector<10x32xf32>
    %c0_6 = arith.constant 0 : index
    %c0_7 = arith.constant 0 : index
    %7 = vector.load %arg4[%c0_6, %c0_7] : memref<8x8xf32, #tpu.memory_space<vmem>>, vector<8x8xf32>
    %c0_8 = arith.constant 0 : index
    %c0_9 = arith.constant 0 : index
    %c0_10 = arith.constant 0 : index
    %8 = vector.load %arg5[%c0_8, %c0_9, %c0_10] : memref<1x1x8xf32, #tpu.memory_space<vmem>>, vector<1x1x8xf32>
    %9 = vector.shape_cast %8 : vector<1x1x8xf32> to vector<1x8xf32>
    %10 = vector.broadcast %9 : vector<1x8xf32> to vector<8x8xf32>
    %11 = arith.addf %7, %10 : vector<8x8xf32>
    %c0_11 = arith.constant 0 : index
    %c0_12 = arith.constant 0 : index
    %c0_13 = arith.constant 0 : index
    %12 = vector.load %arg6[%c0_11, %c0_12, %c0_13] : memref<1x1x10xf32, #tpu.memory_space<vmem>>, vector<1x1x10xf32>
    %13 = vector.shape_cast %12 : vector<1x1x10xf32> to vector<1x10xf32>
    %14 = arith.truncf %4 : vector<8x32xf32> to vector<8x32xbf16>
    %c0_14 = arith.constant 0 : index
    %c0_15 = arith.constant 0 : index
    %c0_16 = arith.constant 0 : index
    %15 = vector.load %arg7[%c0_14, %c0_15, %c0_16] : memref<1x32x96xbf16, #tpu.memory_space<vmem>>, vector<1x32x96xbf16>
    %16 = vector.shape_cast %15 : vector<1x32x96xbf16> to vector<32x96xbf16>
    %cst = arith.constant dense<0.000000e+00> : vector<8x96xf32>
    %17 = tpu.matmul %14, %16, %cst {dimension_numbers = #tpu.dot_dimension_numbers<[1], [0], [0], [1], [0, 0, 1, 1], [], []>} : vector<8x32xbf16>, vector<32x96xbf16>, vector<8x96xf32> -> vector<8x96xf32>
    %c0_17 = arith.constant 0 : index
    %c0_18 = arith.constant 0 : index
    %c0_19 = arith.constant 0 : index
    %18 = vector.load %arg8[%c0_17, %c0_18, %c0_19] : memref<1x1x96xf32, #tpu.memory_space<vmem>>, vector<1x1x96xf32>
    %19 = vector.shape_cast %18 : vector<1x1x96xf32> to vector<1x96xf32>
    %20 = vector.broadcast %19 : vector<1x96xf32> to vector<8x96xf32>
    %21 = arith.addf %17, %20 : vector<8x96xf32>
    %22 = vector.extract_strided_slice %21 {offsets = [0, 0], sizes = [8, 32], strides = [1, 1]} : vector<8x96xf32> to vector<8x32xf32>
    %23 = vector.extract_strided_slice %21 {offsets = [0, 32], sizes = [8, 32], strides = [1, 1]} : vector<8x96xf32> to vector<8x32xf32>
    %24 = vector.extract_strided_slice %21 {offsets = [0, 64], sizes = [8, 32], strides = [1, 1]} : vector<8x96xf32> to vector<8x32xf32>
    %c0_20 = arith.constant 0 : index
    %c0_21 = arith.constant 0 : index
    %c0_22 = arith.constant 0 : index
    %25 = vector.load %arg9[%c0_20, %c0_21, %c0_22] : memref<1x32x32xbf16, #tpu.memory_space<vmem>>, vector<1x32x32xbf16>
    %26 = vector.shape_cast %25 : vector<1x32x32xbf16> to vector<32x32xbf16>
    %c0_23 = arith.constant 0 : index
    %c0_24 = arith.constant 0 : index
    %c0_25 = arith.constant 0 : index
    %27 = vector.load %arg10[%c0_23, %c0_24, %c0_25] : memref<1x1x32xf32, #tpu.memory_space<vmem>>, vector<1x1x32xf32>
    %28 = vector.shape_cast %27 : vector<1x1x32xf32> to vector<1x32xf32>
    %29 = vector.extract_strided_slice %22 {offsets = [0, 0], sizes = [8, 8], strides = [1, 1]} : vector<8x32xf32> to vector<8x8xf32>
    %30 = arith.truncf %29 : vector<8x8xf32> to vector<8x8xbf16>
    %31 = vector.extract_strided_slice %23 {offsets = [0, 0], sizes = [8, 8], strides = [1, 1]} : vector<8x32xf32> to vector<8x8xf32>
    %32 = arith.truncf %31 : vector<8x8xf32> to vector<8x8xbf16>
    %cst_26 = arith.constant dense<0.000000e+00> : vector<8x8xf32>
    %33 = tpu.matmul %30, %32, %cst_26 {dimension_numbers = #tpu.dot_dimension_numbers<[1], [1], [0], [0], [0, 0, 1, 0], [], []>} : vector<8x8xbf16>, vector<8x8xbf16>, vector<8x8xf32> -> vector<8x8xf32>
    %34 = arith.addf %33, %11 : vector<8x8xf32>
    %cst_27 = arith.constant dense<0xFF800000> : vector<8xf32>
    %35 = vector.multi_reduction <maximumf>, %34, %cst_27 [1] : vector<8x8xf32> to vector<8xf32>
    %36 = vector.shape_cast %35 : vector<8xf32> to vector<8x1xf32>
    %37 = vector.broadcast %36 : vector<8x1xf32> to vector<8x8xf32>
    %38 = arith.subf %34, %37 : vector<8x8xf32>
    %39 = math.exp %38 : vector<8x8xf32>
    %cst_28 = arith.constant dense<0.000000e+00> : vector<8xf32>
    %40 = vector.multi_reduction <add>, %39, %cst_28 [1] : vector<8x8xf32> to vector<8xf32>
    %41 = vector.shape_cast %40 : vector<8xf32> to vector<8x1xf32>
    %42 = tpu.reciprocal %41 : vector<8x1xf32> -> vector<8x1xf32>
    %43 = vector.broadcast %42 : vector<8x1xf32> to vector<8x8xf32>
    %44 = arith.mulf %39, %43 : vector<8x8xf32>
    %45 = arith.truncf %44 : vector<8x8xf32> to vector<8x8xbf16>
    %46 = vector.extract_strided_slice %24 {offsets = [0, 0], sizes = [8, 8], strides = [1, 1]} : vector<8x32xf32> to vector<8x8xf32>
    %47 = arith.truncf %46 : vector<8x8xf32> to vector<8x8xbf16>
    %cst_29 = arith.constant dense<0.000000e+00> : vector<8x8xf32>
    %48 = tpu.matmul %45, %47, %cst_29 {dimension_numbers = #tpu.dot_dimension_numbers<[1], [0], [0], [1], [0, 0, 1, 1], [], []>} : vector<8x8xbf16>, vector<8x8xbf16>, vector<8x8xf32> -> vector<8x8xf32>
    %c0_30 = arith.constant 0 : index
    %c0_31 = arith.constant 0 : index
    %49 = vector.load %arg28[%c0_30, %c0_31] : memref<8x32xf32, #tpu.memory_space<vmem>>, vector<8x8xf32>
    tpu.vector_store %arg28[%c0_30, %c0_31], %48 {strides = array<i32>} : memref<8x32xf32, #tpu.memory_space<vmem>>, vector<8x8xf32>,
    %50 = vector.extract_strided_slice %22 {offsets = [0, 8], sizes = [8, 8], strides = [1, 1]} : vector<8x32xf32> to vector<8x8xf32>
    %51 = arith.truncf %50 : vector<8x8xf32> to vector<8x8xbf16>
    %52 = vector.extract_strided_slice %23 {offsets = [0, 8], sizes = [8, 8], strides = [1, 1]} : vector<8x32xf32> to vector<8x8xf32>
    %53 = arith.truncf %52 : vector<8x8xf32> to vector<8x8xbf16>
    %cst_32 = arith.constant dense<0.000000e+00> : vector<8x8xf32>
    %54 = tpu.matmul %51, %53, %cst_32 {dimension_numbers = #tpu.dot_dimension_numbers<[1], [1], [0], [0], [0, 0, 1, 0], [], []>} : vector<8x8xbf16>, vector<8x8xbf16>, vector<8x8xf32> -> vector<8x8xf32>
    %55 = arith.addf %54, %11 : vector<8x8xf32>
    %cst_33 = arith.constant dense<0xFF800000> : vector<8xf32>
    %56 = vector.multi_reduction <maximumf>, %55, %cst_33 [1] : vector<8x8xf32> to vector<8xf32>
    %57 = vector.shape_cast %56 : vector<8xf32> to vector<8x1xf32>
    %58 = vector.broadcast %57 : vector<8x1xf32> to vector<8x8xf32>
    %59 = arith.subf %55, %58 : vector<8x8xf32>
    %60 = math.exp %59 : vector<8x8xf32>
    %cst_34 = arith.constant dense<0.000000e+00> : vector<8xf32>
    %61 = vector.multi_reduction <add>, %60, %cst_34 [1] : vector<8x8xf32> to vector<8xf32>
    %62 = vector.shape_cast %61 : vector<8xf32> to vector<8x1xf32>
    %63 = tpu.reciprocal %62 : vector<8x1xf32> -> vector<8x1xf32>
    %64 = vector.broadcast %63 : vector<8x1xf32> to vector<8x8xf32>
    %65 = arith.mulf %60, %64 : vector<8x8xf32>
    %66 = arith.truncf %65 : vector<8x8xf32> to vector<8x8xbf16>
    %67 = vector.extract_strided_slice %24 {offsets = [0, 8], sizes = [8, 8], strides = [1, 1]} : vector<8x32xf32> to vector<8x8xf32>
    %68 = arith.truncf %67 : vector<8x8xf32> to vector<8x8xbf16>
    %cst_35 = arith.constant dense<0.000000e+00> : vector<8x8xf32>
    %69 = tpu.matmul %66, %68, %cst_35 {dimension_numbers = #tpu.dot_dimension_numbers<[1], [0], [0], [1], [0, 0, 1, 1], [], []>} : vector<8x8xbf16>, vector<8x8xbf16>, vector<8x8xf32> -> vector<8x8xf32>
    %c0_36 = arith.constant 0 : index
    %c8 = arith.constant 8 : index
    %70 = vector.load %arg28[%c0_36, %c8] : memref<8x32xf32, #tpu.memory_space<vmem>>, vector<8x8xf32>
    tpu.vector_store %arg28[%c0_36, %c8], %69 {strides = array<i32>} : memref<8x32xf32, #tpu.memory_space<vmem>>, vector<8x8xf32>,
    %71 = vector.extract_strided_slice %22 {offsets = [0, 16], sizes = [8, 8], strides = [1, 1]} : vector<8x32xf32> to vector<8x8xf32>
    %72 = arith.truncf %71 : vector<8x8xf32> to vector<8x8xbf16>
    %73 = vector.extract_strided_slice %23 {offsets = [0, 16], sizes = [8, 8], strides = [1, 1]} : vector<8x32xf32> to vector<8x8xf32>
    %74 = arith.truncf %73 : vector<8x8xf32> to vector<8x8xbf16>
    %cst_37 = arith.constant dense<0.000000e+00> : vector<8x8xf32>
    %75 = tpu.matmul %72, %74, %cst_37 {dimension_numbers = #tpu.dot_dimension_numbers<[1], [1], [0], [0], [0, 0, 1, 0], [], []>} : vector<8x8xbf16>, vector<8x8xbf16>, vector<8x8xf32> -> vector<8x8xf32>
    %76 = arith.addf %75, %11 : vector<8x8xf32>
    %cst_38 = arith.constant dense<0xFF800000> : vector<8xf32>
    %77 = vector.multi_reduction <maximumf>, %76, %cst_38 [1] : vector<8x8xf32> to vector<8xf32>
    %78 = vector.shape_cast %77 : vector<8xf32> to vector<8x1xf32>
    %79 = vector.broadcast %78 : vector<8x1xf32> to vector<8x8xf32>
    %80 = arith.subf %76, %79 : vector<8x8xf32>
    %81 = math.exp %80 : vector<8x8xf32>
    %cst_39 = arith.constant dense<0.000000e+00> : vector<8xf32>
    %82 = vector.multi_reduction <add>, %81, %cst_39 [1] : vector<8x8xf32> to vector<8xf32>
    %83 = vector.shape_cast %82 : vector<8xf32> to vector<8x1xf32>
    %84 = tpu.reciprocal %83 : vector<8x1xf32> -> vector<8x1xf32>
    %85 = vector.broadcast %84 : vector<8x1xf32> to vector<8x8xf32>
    %86 = arith.mulf %81, %85 : vector<8x8xf32>
    %87 = arith.truncf %86 : vector<8x8xf32> to vector<8x8xbf16>
    %88 = vector.extract_strided_slice %24 {offsets = [0, 16], sizes = [8, 8], strides = [1, 1]} : vector<8x32xf32> to vector<8x8xf32>
    %89 = arith.truncf %88 : vector<8x8xf32> to vector<8x8xbf16>
    %cst_40 = arith.constant dense<0.000000e+00> : vector<8x8xf32>
    %90 = tpu.matmul %87, %89, %cst_40 {dimension_numbers = #tpu.dot_dimension_numbers<[1], [0], [0], [1], [0, 0, 1, 1], [], []>} : vector<8x8xbf16>, vector<8x8xbf16>, vector<8x8xf32> -> vector<8x8xf32>
    %c0_41 = arith.constant 0 : index
    %c16 = arith.constant 16 : index
    %91 = vector.load %arg28[%c0_41, %c16] : memref<8x32xf32, #tpu.memory_space<vmem>>, vector<8x8xf32>
    tpu.vector_store %arg28[%c0_41, %c16], %90 {strides = array<i32>} : memref<8x32xf32, #tpu.memory_space<vmem>>, vector<8x8xf32>,
    %92 = vector.extract_strided_slice %22 {offsets = [0, 24], sizes = [8, 8], strides = [1, 1]} : vector<8x32xf32> to vector<8x8xf32>
    %93 = arith.truncf %92 : vector<8x8xf32> to vector<8x8xbf16>
    %94 = vector.extract_strided_slice %23 {offsets = [0, 24], sizes = [8, 8], strides = [1, 1]} : vector<8x32xf32> to vector<8x8xf32>
    %95 = arith.truncf %94 : vector<8x8xf32> to vector<8x8xbf16>
    %cst_42 = arith.constant dense<0.000000e+00> : vector<8x8xf32>
    %96 = tpu.matmul %93, %95, %cst_42 {dimension_numbers = #tpu.dot_dimension_numbers<[1], [1], [0], [0], [0, 0, 1, 0], [], []>} : vector<8x8xbf16>, vector<8x8xbf16>, vector<8x8xf32> -> vector<8x8xf32>
    %97 = arith.addf %96, %11 : vector<8x8xf32>
    %cst_43 = arith.constant dense<0xFF800000> : vector<8xf32>
    %98 = vector.multi_reduction <maximumf>, %97, %cst_43 [1] : vector<8x8xf32> to vector<8xf32>
    %99 = vector.shape_cast %98 : vector<8xf32> to vector<8x1xf32>
    %100 = vector.broadcast %99 : vector<8x1xf32> to vector<8x8xf32>
    %101 = arith.subf %97, %100 : vector<8x8xf32>
    %102 = math.exp %101 : vector<8x8xf32>
    %cst_44 = arith.constant dense<0.000000e+00> : vector<8xf32>
    %103 = vector.multi_reduction <add>, %102, %cst_44 [1] : vector<8x8xf32> to vector<8xf32>
    %104 = vector.shape_cast %103 : vector<8xf32> to vector<8x1xf32>
    %105 = tpu.reciprocal %104 : vector<8x1xf32> -> vector<8x1xf32>
    %106 = vector.broadcast %105 : vector<8x1xf32> to vector<8x8xf32>
    %107 = arith.mulf %102, %106 : vector<8x8xf32>
    %108 = arith.truncf %107 : vector<8x8xf32> to vector<8x8xbf16>
    %109 = vector.extract_strided_slice %24 {offsets = [0, 24], sizes = [8, 8], strides = [1, 1]} : vector<8x32xf32> to vector<8x8xf32>
    %110 = arith.truncf %109 : vector<8x8xf32> to vector<8x8xbf16>
    %cst_45 = arith.constant dense<0.000000e+00> : vector<8x8xf32>
    %111 = tpu.matmul %108, %110, %cst_45 {dimension_numbers = #tpu.dot_dimension_numbers<[1], [0], [0], [1], [0, 0, 1, 1], [], []>} : vector<8x8xbf16>, vector<8x8xbf16>, vector<8x8xf32> -> vector<8x8xf32>
    %c0_46 = arith.constant 0 : index
    %c24 = arith.constant 24 : index
    %112 = vector.load %arg28[%c0_46, %c24] : memref<8x32xf32, #tpu.memory_space<vmem>>, vector<8x8xf32>
    tpu.vector_store %arg28[%c0_46, %c24], %111 {strides = array<i32>} : memref<8x32xf32, #tpu.memory_space<vmem>>, vector<8x8xf32>,
    %c0_47 = arith.constant 0 : index
    %c0_48 = arith.constant 0 : index
    %113 = vector.load %arg28[%c0_47, %c0_48] : memref<8x32xf32, #tpu.memory_space<vmem>>, vector<8x32xf32>
    %114 = arith.truncf %113 : vector<8x32xf32> to vector<8x32xbf16>
    %cst_49 = arith.constant dense<0.000000e+00> : vector<8x32xf32>
    %115 = tpu.matmul %114, %26, %cst_49 {dimension_numbers = #tpu.dot_dimension_numbers<[1], [0], [0], [1], [0, 0, 1, 1], [], []>} : vector<8x32xbf16>, vector<32x32xbf16>, vector<8x32xf32> -> vector<8x32xf32>
    %116 = vector.broadcast %28 : vector<1x32xf32> to vector<8x32xf32>
    %117 = arith.addf %115, %116 : vector<8x32xf32>
    %118 = arith.addf %4, %117 : vector<8x32xf32>
    %c0_50 = arith.constant 0 : index
    %c0_51 = arith.constant 0 : index
    %c0_52 = arith.constant 0 : index
    %119 = vector.load %arg17[%c0_50, %c0_51, %c0_52] : memref<1x1x32xf32, #tpu.memory_space<vmem>>, vector<1x1x32xf32>
    %120 = vector.shape_cast %119 : vector<1x1x32xf32> to vector<1x32xf32>
    %c0_53 = arith.constant 0 : index
    %c0_54 = arith.constant 0 : index
    %c0_55 = arith.constant 0 : index
    %121 = vector.load %arg18[%c0_53, %c0_54, %c0_55] : memref<1x1x32xf32, #tpu.memory_space<vmem>>, vector<1x1x32xf32>
    %122 = vector.shape_cast %121 : vector<1x1x32xf32> to vector<1x32xf32>
    %cst_56 = arith.constant dense<0.000000e+00> : vector<8xf32>
    %123 = vector.multi_reduction <add>, %118, %cst_56 [1] : vector<8x32xf32> to vector<8xf32>
    %124 = vector.shape_cast %123 : vector<8xf32> to vector<8x1xf32>
    %cst_57 = arith.constant 3.200000e+01 : f32
    %125 = vector.broadcast %cst_57 : f32 to vector<8x1xf32>
    %126 = arith.divf %124, %125 : vector<8x1xf32>
    %127 = vector.broadcast %126 : vector<8x1xf32> to vector<8x32xf32>
    %128 = arith.subf %118, %127 : vector<8x32xf32>
    %129 = arith.mulf %128, %128 : vector<8x32xf32>
    %cst_58 = arith.constant dense<0.000000e+00> : vector<8xf32>
    %130 = vector.multi_reduction <add>, %129, %cst_58 [1] : vector<8x32xf32> to vector<8xf32>
    %131 = vector.shape_cast %130 : vector<8xf32> to vector<8x1xf32>
    %cst_59 = arith.constant 3.200000e+01 : f32
    %132 = vector.broadcast %cst_59 : f32 to vector<8x1xf32>
    %133 = arith.divf %131, %132 : vector<8x1xf32>
    %134 = vector.broadcast %126 : vector<8x1xf32> to vector<8x32xf32>
    %135 = arith.subf %118, %134 : vector<8x32xf32>
    %cst_60 = arith.constant 9.99999974E-6 : f32
    %136 = vector.broadcast %cst_60 : f32 to vector<8x1xf32>
    %137 = arith.addf %133, %136 : vector<8x1xf32>
    %138 = math.rsqrt %137 : vector<8x1xf32>
    %139 = vector.broadcast %138 : vector<8x1xf32> to vector<8x32xf32>
    %140 = arith.mulf %135, %139 : vector<8x32xf32>
    %141 = vector.broadcast %120 : vector<1x32xf32> to vector<8x32xf32>
    %142 = arith.mulf %140, %141 : vector<8x32xf32>
    %143 = vector.broadcast %122 : vector<1x32xf32> to vector<8x32xf32>
    %144 = arith.addf %142, %143 : vector<8x32xf32>
    %145 = arith.truncf %144 : vector<8x32xf32> to vector<8x32xbf16>
    %c0_61 = arith.constant 0 : index
    %c0_62 = arith.constant 0 : index
    %c0_63 = arith.constant 0 : index
    %146 = vector.load %arg11[%c0_61, %c0_62, %c0_63] : memref<1x32x32xbf16, #tpu.memory_space<vmem>>, vector<1x32x32xbf16>
    %147 = vector.shape_cast %146 : vector<1x32x32xbf16> to vector<32x32xbf16>
    %cst_64 = arith.constant dense<0.000000e+00> : vector<8x32xf32>
    %148 = tpu.matmul %145, %147, %cst_64 {dimension_numbers = #tpu.dot_dimension_numbers<[1], [0], [0], [1], [0, 0, 1, 1], [], []>} : vector<8x32xbf16>, vector<32x32xbf16>, vector<8x32xf32> -> vector<8x32xf32>
    %c0_65 = arith.constant 0 : index
    %c0_66 = arith.constant 0 : index
    %c0_67 = arith.constant 0 : index
    %149 = vector.load %arg12[%c0_65, %c0_66, %c0_67] : memref<1x1x32xf32, #tpu.memory_space<vmem>>, vector<1x1x32xf32>
    %150 = vector.shape_cast %149 : vector<1x1x32xf32> to vector<1x32xf32>
    %151 = vector.broadcast %150 : vector<1x32xf32> to vector<8x32xf32>
    %152 = arith.addf %148, %151 : vector<8x32xf32>
    %153 = arith.truncf %6 : vector<10x32xf32> to vector<10x32xbf16>
    %c0_68 = arith.constant 0 : index
    %c0_69 = arith.constant 0 : index
    %c0_70 = arith.constant 0 : index
    %154 = vector.load %arg13[%c0_68, %c0_69, %c0_70] : memref<1x32x64xbf16, #tpu.memory_space<vmem>>, vector<1x32x64xbf16>
    %155 = vector.shape_cast %154 : vector<1x32x64xbf16> to vector<32x64xbf16>
    %cst_71 = arith.constant dense<0.000000e+00> : vector<10x64xf32>
    %156 = tpu.matmul %153, %155, %cst_71 {dimension_numbers = #tpu.dot_dimension_numbers<[1], [0], [0], [1], [0, 0, 1, 1], [], []>} : vector<10x32xbf16>, vector<32x64xbf16>, vector<10x64xf32> -> vector<10x64xf32>
    %c0_72 = arith.constant 0 : index
    %c0_73 = arith.constant 0 : index
    %c0_74 = arith.constant 0 : index
    %157 = vector.load %arg14[%c0_72, %c0_73, %c0_74] : memref<1x1x64xf32, #tpu.memory_space<vmem>>, vector<1x1x64xf32>
    %158 = vector.shape_cast %157 : vector<1x1x64xf32> to vector<1x64xf32>
    %159 = vector.broadcast %158 : vector<1x64xf32> to vector<10x64xf32>
    %160 = arith.addf %156, %159 : vector<10x64xf32>
    %161 = vector.extract_strided_slice %160 {offsets = [0, 0], sizes = [10, 32], strides = [1, 1]} : vector<10x64xf32> to vector<10x32xf32>
    %162 = vector.extract_strided_slice %160 {offsets = [0, 32], sizes = [10, 32], strides = [1, 1]} : vector<10x64xf32> to vector<10x32xf32>
    %c0_75 = arith.constant 0 : index
    %c0_76 = arith.constant 0 : index
    %c0_77 = arith.constant 0 : index
    %163 = vector.load %arg15[%c0_75, %c0_76, %c0_77] : memref<1x32x32xbf16, #tpu.memory_space<vmem>>, vector<1x32x32xbf16>
    %164 = vector.shape_cast %163 : vector<1x32x32xbf16> to vector<32x32xbf16>
    %c0_78 = arith.constant 0 : index
    %c0_79 = arith.constant 0 : index
    %c0_80 = arith.constant 0 : index
    %165 = vector.load %arg16[%c0_78, %c0_79, %c0_80] : memref<1x1x32xf32, #tpu.memory_space<vmem>>, vector<1x1x32xf32>
    %166 = vector.shape_cast %165 : vector<1x1x32xf32> to vector<1x32xf32>
    %167 = vector.extract_strided_slice %152 {offsets = [0, 0], sizes = [8, 8], strides = [1, 1]} : vector<8x32xf32> to vector<8x8xf32>
    %168 = arith.truncf %167 : vector<8x8xf32> to vector<8x8xbf16>
    %169 = vector.extract_strided_slice %161 {offsets = [0, 0], sizes = [10, 8], strides = [1, 1]} : vector<10x32xf32> to vector<10x8xf32>
    %170 = arith.truncf %169 : vector<10x8xf32> to vector<10x8xbf16>
    %cst_81 = arith.constant dense<0.000000e+00> : vector<8x10xf32>
    %171 = tpu.matmul %168, %170, %cst_81 {dimension_numbers = #tpu.dot_dimension_numbers<[1], [1], [0], [0], [0, 0, 1, 0], [], []>} : vector<8x8xbf16>, vector<10x8xbf16>, vector<8x10xf32> -> vector<8x10xf32>
    %172 = vector.broadcast %13 : vector<1x10xf32> to vector<8x10xf32>
    %173 = arith.addf %171, %172 : vector<8x10xf32>
    %cst_82 = arith.constant dense<0xFF800000> : vector<8xf32>
    %174 = vector.multi_reduction <maximumf>, %173, %cst_82 [1] : vector<8x10xf32> to vector<8xf32>
    %175 = vector.shape_cast %174 : vector<8xf32> to vector<8x1xf32>
    %176 = vector.broadcast %175 : vector<8x1xf32> to vector<8x10xf32>
    %177 = arith.subf %173, %176 : vector<8x10xf32>
    %178 = math.exp %177 : vector<8x10xf32>
    %cst_83 = arith.constant dense<0.000000e+00> : vector<8xf32>
    %179 = vector.multi_reduction <add>, %178, %cst_83 [1] : vector<8x10xf32> to vector<8xf32>
    %180 = vector.shape_cast %179 : vector<8xf32> to vector<8x1xf32>
    %181 = tpu.reciprocal %180 : vector<8x1xf32> -> vector<8x1xf32>
    %182 = vector.broadcast %181 : vector<8x1xf32> to vector<8x10xf32>
    %183 = arith.mulf %178, %182 : vector<8x10xf32>
    %184 = arith.truncf %183 : vector<8x10xf32> to vector<8x10xbf16>
    %185 = vector.extract_strided_slice %162 {offsets = [0, 0], sizes = [10, 8], strides = [1, 1]} : vector<10x32xf32> to vector<10x8xf32>
    %186 = arith.truncf %185 : vector<10x8xf32> to vector<10x8xbf16>
    %cst_84 = arith.constant dense<0.000000e+00> : vector<8x8xf32>
    %187 = tpu.matmul %184, %186, %cst_84 {dimension_numbers = #tpu.dot_dimension_numbers<[1], [0], [0], [1], [0, 0, 1, 1], [], []>} : vector<8x10xbf16>, vector<10x8xbf16>, vector<8x8xf32> -> vector<8x8xf32>
    %c0_85 = arith.constant 0 : index
    %c0_86 = arith.constant 0 : index
    %188 = vector.load %arg28[%c0_85, %c0_86] : memref<8x32xf32, #tpu.memory_space<vmem>>, vector<8x8xf32>
    tpu.vector_store %arg28[%c0_85, %c0_86], %187 {strides = array<i32>} : memref<8x32xf32, #tpu.memory_space<vmem>>, vector<8x8xf32>,
    %189 = vector.extract_strided_slice %152 {offsets = [0, 8], sizes = [8, 8], strides = [1, 1]} : vector<8x32xf32> to vector<8x8xf32>
    %190 = arith.truncf %189 : vector<8x8xf32> to vector<8x8xbf16>
    %191 = vector.extract_strided_slice %161 {offsets = [0, 8], sizes = [10, 8], strides = [1, 1]} : vector<10x32xf32> to vector<10x8xf32>
    %192 = arith.truncf %191 : vector<10x8xf32> to vector<10x8xbf16>
    %cst_87 = arith.constant dense<0.000000e+00> : vector<8x10xf32>
    %193 = tpu.matmul %190, %192, %cst_87 {dimension_numbers = #tpu.dot_dimension_numbers<[1], [1], [0], [0], [0, 0, 1, 0], [], []>} : vector<8x8xbf16>, vector<10x8xbf16>, vector<8x10xf32> -> vector<8x10xf32>
    %194 = vector.broadcast %13 : vector<1x10xf32> to vector<8x10xf32>
    %195 = arith.addf %193, %194 : vector<8x10xf32>
    %cst_88 = arith.constant dense<0xFF800000> : vector<8xf32>
    %196 = vector.multi_reduction <maximumf>, %195, %cst_88 [1] : vector<8x10xf32> to vector<8xf32>
    %197 = vector.shape_cast %196 : vector<8xf32> to vector<8x1xf32>
    %198 = vector.broadcast %197 : vector<8x1xf32> to vector<8x10xf32>
    %199 = arith.subf %195, %198 : vector<8x10xf32>
    %200 = math.exp %199 : vector<8x10xf32>
    %cst_89 = arith.constant dense<0.000000e+00> : vector<8xf32>
    %201 = vector.multi_reduction <add>, %200, %cst_89 [1] : vector<8x10xf32> to vector<8xf32>
    %202 = vector.shape_cast %201 : vector<8xf32> to vector<8x1xf32>
    %203 = tpu.reciprocal %202 : vector<8x1xf32> -> vector<8x1xf32>
    %204 = vector.broadcast %203 : vector<8x1xf32> to vector<8x10xf32>
    %205 = arith.mulf %200, %204 : vector<8x10xf32>
    %206 = arith.truncf %205 : vector<8x10xf32> to vector<8x10xbf16>
    %207 = vector.extract_strided_slice %162 {offsets = [0, 8], sizes = [10, 8], strides = [1, 1]} : vector<10x32xf32> to vector<10x8xf32>
    %208 = arith.truncf %207 : vector<10x8xf32> to vector<10x8xbf16>
    %cst_90 = arith.constant dense<0.000000e+00> : vector<8x8xf32>
    %209 = tpu.matmul %206, %208, %cst_90 {dimension_numbers = #tpu.dot_dimension_numbers<[1], [0], [0], [1], [0, 0, 1, 1], [], []>} : vector<8x10xbf16>, vector<10x8xbf16>, vector<8x8xf32> -> vector<8x8xf32>
    %c0_91 = arith.constant 0 : index
    %c8_92 = arith.constant 8 : index
    %210 = vector.load %arg28[%c0_91, %c8_92] : memref<8x32xf32, #tpu.memory_space<vmem>>, vector<8x8xf32>
    tpu.vector_store %arg28[%c0_91, %c8_92], %209 {strides = array<i32>} : memref<8x32xf32, #tpu.memory_space<vmem>>, vector<8x8xf32>,
    %211 = vector.extract_strided_slice %152 {offsets = [0, 16], sizes = [8, 8], strides = [1, 1]} : vector<8x32xf32> to vector<8x8xf32>
    %212 = arith.truncf %211 : vector<8x8xf32> to vector<8x8xbf16>
    %213 = vector.extract_strided_slice %161 {offsets = [0, 16], sizes = [10, 8], strides = [1, 1]} : vector<10x32xf32> to vector<10x8xf32>
    %214 = arith.truncf %213 : vector<10x8xf32> to vector<10x8xbf16>
    %cst_93 = arith.constant dense<0.000000e+00> : vector<8x10xf32>
    %215 = tpu.matmul %212, %214, %cst_93 {dimension_numbers = #tpu.dot_dimension_numbers<[1], [1], [0], [0], [0, 0, 1, 0], [], []>} : vector<8x8xbf16>, vector<10x8xbf16>, vector<8x10xf32> -> vector<8x10xf32>
    %216 = vector.broadcast %13 : vector<1x10xf32> to vector<8x10xf32>
    %217 = arith.addf %215, %216 : vector<8x10xf32>
    %cst_94 = arith.constant dense<0xFF800000> : vector<8xf32>
    %218 = vector.multi_reduction <maximumf>, %217, %cst_94 [1] : vector<8x10xf32> to vector<8xf32>
    %219 = vector.shape_cast %218 : vector<8xf32> to vector<8x1xf32>
    %220 = vector.broadcast %219 : vector<8x1xf32> to vector<8x10xf32>
    %221 = arith.subf %217, %220 : vector<8x10xf32>
    %222 = math.exp %221 : vector<8x10xf32>
    %cst_95 = arith.constant dense<0.000000e+00> : vector<8xf32>
    %223 = vector.multi_reduction <add>, %222, %cst_95 [1] : vector<8x10xf32> to vector<8xf32>
    %224 = vector.shape_cast %223 : vector<8xf32> to vector<8x1xf32>
    %225 = tpu.reciprocal %224 : vector<8x1xf32> -> vector<8x1xf32>
    %226 = vector.broadcast %225 : vector<8x1xf32> to vector<8x10xf32>
    %227 = arith.mulf %222, %226 : vector<8x10xf32>
    %228 = arith.truncf %227 : vector<8x10xf32> to vector<8x10xbf16>
    %229 = vector.extract_strided_slice %162 {offsets = [0, 16], sizes = [10, 8], strides = [1, 1]} : vector<10x32xf32> to vector<10x8xf32>
    %230 = arith.truncf %229 : vector<10x8xf32> to vector<10x8xbf16>
    %cst_96 = arith.constant dense<0.000000e+00> : vector<8x8xf32>
    %231 = tpu.matmul %228, %230, %cst_96 {dimension_numbers = #tpu.dot_dimension_numbers<[1], [0], [0], [1], [0, 0, 1, 1], [], []>} : vector<8x10xbf16>, vector<10x8xbf16>, vector<8x8xf32> -> vector<8x8xf32>
    %c0_97 = arith.constant 0 : index
    %c16_98 = arith.constant 16 : index
    %232 = vector.load %arg28[%c0_97, %c16_98] : memref<8x32xf32, #tpu.memory_space<vmem>>, vector<8x8xf32>
    tpu.vector_store %arg28[%c0_97, %c16_98], %231 {strides = array<i32>} : memref<8x32xf32, #tpu.memory_space<vmem>>, vector<8x8xf32>,
    %233 = vector.extract_strided_slice %152 {offsets = [0, 24], sizes = [8, 8], strides = [1, 1]} : vector<8x32xf32> to vector<8x8xf32>
    %234 = arith.truncf %233 : vector<8x8xf32> to vector<8x8xbf16>
    %235 = vector.extract_strided_slice %161 {offsets = [0, 24], sizes = [10, 8], strides = [1, 1]} : vector<10x32xf32> to vector<10x8xf32>
    %236 = arith.truncf %235 : vector<10x8xf32> to vector<10x8xbf16>
    %cst_99 = arith.constant dense<0.000000e+00> : vector<8x10xf32>
    %237 = tpu.matmul %234, %236, %cst_99 {dimension_numbers = #tpu.dot_dimension_numbers<[1], [1], [0], [0], [0, 0, 1, 0], [], []>} : vector<8x8xbf16>, vector<10x8xbf16>, vector<8x10xf32> -> vector<8x10xf32>
    %238 = vector.broadcast %13 : vector<1x10xf32> to vector<8x10xf32>
    %239 = arith.addf %237, %238 : vector<8x10xf32>
    %cst_100 = arith.constant dense<0xFF800000> : vector<8xf32>
    %240 = vector.multi_reduction <maximumf>, %239, %cst_100 [1] : vector<8x10xf32> to vector<8xf32>
    %241 = vector.shape_cast %240 : vector<8xf32> to vector<8x1xf32>
    %242 = vector.broadcast %241 : vector<8x1xf32> to vector<8x10xf32>
    %243 = arith.subf %239, %242 : vector<8x10xf32>
    %244 = math.exp %243 : vector<8x10xf32>
    %cst_101 = arith.constant dense<0.000000e+00> : vector<8xf32>
    %245 = vector.multi_reduction <add>, %244, %cst_101 [1] : vector<8x10xf32> to vector<8xf32>
    %246 = vector.shape_cast %245 : vector<8xf32> to vector<8x1xf32>
    %247 = tpu.reciprocal %246 : vector<8x1xf32> -> vector<8x1xf32>
    %248 = vector.broadcast %247 : vector<8x1xf32> to vector<8x10xf32>
    %249 = arith.mulf %244, %248 : vector<8x10xf32>
    %250 = arith.truncf %249 : vector<8x10xf32> to vector<8x10xbf16>
    %251 = vector.extract_strided_slice %162 {offsets = [0, 24], sizes = [10, 8], strides = [1, 1]} : vector<10x32xf32> to vector<10x8xf32>
    %252 = arith.truncf %251 : vector<10x8xf32> to vector<10x8xbf16>
    %cst_102 = arith.constant dense<0.000000e+00> : vector<8x8xf32>
    %253 = tpu.matmul %250, %252, %cst_102 {dimension_numbers = #tpu.dot_dimension_numbers<[1], [0], [0], [1], [0, 0, 1, 1], [], []>} : vector<8x10xbf16>, vector<10x8xbf16>, vector<8x8xf32> -> vector<8x8xf32>
    %c0_103 = arith.constant 0 : index
    %c24_104 = arith.constant 24 : index
    %254 = vector.load %arg28[%c0_103, %c24_104] : memref<8x32xf32, #tpu.memory_space<vmem>>, vector<8x8xf32>
    tpu.vector_store %arg28[%c0_103, %c24_104], %253 {strides = array<i32>} : memref<8x32xf32, #tpu.memory_space<vmem>>, vector<8x8xf32>,
    %c0_105 = arith.constant 0 : index
    %c0_106 = arith.constant 0 : index
    %255 = vector.load %arg28[%c0_105, %c0_106] : memref<8x32xf32, #tpu.memory_space<vmem>>, vector<8x32xf32>
    %256 = arith.truncf %255 : vector<8x32xf32> to vector<8x32xbf16>
    %cst_107 = arith.constant dense<0.000000e+00> : vector<8x32xf32>
    %257 = tpu.matmul %256, %164, %cst_107 {dimension_numbers = #tpu.dot_dimension_numbers<[1], [0], [0], [1], [0, 0, 1, 1], [], []>} : vector<8x32xbf16>, vector<32x32xbf16>, vector<8x32xf32> -> vector<8x32xf32>
    %258 = vector.broadcast %166 : vector<1x32xf32> to vector<8x32xf32>
    %259 = arith.addf %257, %258 : vector<8x32xf32>
    %260 = arith.addf %144, %259 : vector<8x32xf32>
    %c0_108 = arith.constant 0 : index
    %c0_109 = arith.constant 0 : index
    %c0_110 = arith.constant 0 : index
    %261 = vector.load %arg19[%c0_108, %c0_109, %c0_110] : memref<1x1x32xf32, #tpu.memory_space<vmem>>, vector<1x1x32xf32>
    %262 = vector.shape_cast %261 : vector<1x1x32xf32> to vector<1x32xf32>
    %c0_111 = arith.constant 0 : index
    %c0_112 = arith.constant 0 : index
    %c0_113 = arith.constant 0 : index
    %263 = vector.load %arg20[%c0_111, %c0_112, %c0_113] : memref<1x1x32xf32, #tpu.memory_space<vmem>>, vector<1x1x32xf32>
    %264 = vector.shape_cast %263 : vector<1x1x32xf32> to vector<1x32xf32>
    %cst_114 = arith.constant dense<0.000000e+00> : vector<8xf32>
    %265 = vector.multi_reduction <add>, %260, %cst_114 [1] : vector<8x32xf32> to vector<8xf32>
    %266 = vector.shape_cast %265 : vector<8xf32> to vector<8x1xf32>
    %cst_115 = arith.constant 3.200000e+01 : f32
    %267 = vector.broadcast %cst_115 : f32 to vector<8x1xf32>
    %268 = arith.divf %266, %267 : vector<8x1xf32>
    %269 = vector.broadcast %268 : vector<8x1xf32> to vector<8x32xf32>
    %270 = arith.subf %260, %269 : vector<8x32xf32>
    %271 = arith.mulf %270, %270 : vector<8x32xf32>
    %cst_116 = arith.constant dense<0.000000e+00> : vector<8xf32>
    %272 = vector.multi_reduction <add>, %271, %cst_116 [1] : vector<8x32xf32> to vector<8xf32>
    %273 = vector.shape_cast %272 : vector<8xf32> to vector<8x1xf32>
    %cst_117 = arith.constant 3.200000e+01 : f32
    %274 = vector.broadcast %cst_117 : f32 to vector<8x1xf32>
    %275 = arith.divf %273, %274 : vector<8x1xf32>
    %276 = vector.broadcast %268 : vector<8x1xf32> to vector<8x32xf32>
    %277 = arith.subf %260, %276 : vector<8x32xf32>
    %cst_118 = arith.constant 9.99999974E-6 : f32
    %278 = vector.broadcast %cst_118 : f32 to vector<8x1xf32>
    %279 = arith.addf %275, %278 : vector<8x1xf32>
    %280 = math.rsqrt %279 : vector<8x1xf32>
    %281 = vector.broadcast %280 : vector<8x1xf32> to vector<8x32xf32>
    %282 = arith.mulf %277, %281 : vector<8x32xf32>
    %283 = vector.broadcast %262 : vector<1x32xf32> to vector<8x32xf32>
    %284 = arith.mulf %282, %283 : vector<8x32xf32>
    %285 = vector.broadcast %264 : vector<1x32xf32> to vector<8x32xf32>
    %286 = arith.addf %284, %285 : vector<8x32xf32>
    %287 = arith.truncf %286 : vector<8x32xf32> to vector<8x32xbf16>
    %c0_119 = arith.constant 0 : index
    %c0_120 = arith.constant 0 : index
    %c0_121 = arith.constant 0 : index
    %288 = vector.load %arg23[%c0_119, %c0_120, %c0_121] : memref<1x32x64xbf16, #tpu.memory_space<vmem>>, vector<1x32x64xbf16>
    %289 = vector.shape_cast %288 : vector<1x32x64xbf16> to vector<32x64xbf16>
    %cst_122 = arith.constant dense<0.000000e+00> : vector<8x64xf32>
    %290 = tpu.matmul %287, %289, %cst_122 {dimension_numbers = #tpu.dot_dimension_numbers<[1], [0], [0], [1], [0, 0, 1, 1], [], []>} : vector<8x32xbf16>, vector<32x64xbf16>, vector<8x64xf32> -> vector<8x64xf32>
    %c0_123 = arith.constant 0 : index
    %c0_124 = arith.constant 0 : index
    %c0_125 = arith.constant 0 : index
    %291 = vector.load %arg24[%c0_123, %c0_124, %c0_125] : memref<1x1x64xf32, #tpu.memory_space<vmem>>, vector<1x1x64xf32>
    %292 = vector.shape_cast %291 : vector<1x1x64xf32> to vector<1x64xf32>
    %293 = vector.broadcast %292 : vector<1x64xf32> to vector<8x64xf32>
    %294 = arith.addf %290, %293 : vector<8x64xf32>
    %cst_126 = arith.constant 0.000000e+00 : f32
    %295 = vector.broadcast %cst_126 : f32 to vector<8x64xf32>
    %296 = arith.maximumf %294, %295 : vector<8x64xf32>
    %297 = arith.truncf %296 : vector<8x64xf32> to vector<8x64xbf16>
    %c0_127 = arith.constant 0 : index
    %c0_128 = arith.constant 0 : index
    %c0_129 = arith.constant 0 : index
    %298 = vector.load %arg25[%c0_127, %c0_128, %c0_129] : memref<1x64x32xbf16, #tpu.memory_space<vmem>>, vector<1x64x32xbf16>
    %299 = vector.shape_cast %298 : vector<1x64x32xbf16> to vector<64x32xbf16>
    %cst_130 = arith.constant dense<0.000000e+00> : vector<8x32xf32>
    %300 = tpu.matmul %297, %299, %cst_130 {dimension_numbers = #tpu.dot_dimension_numbers<[1], [0], [0], [1], [0, 0, 1, 1], [], []>} : vector<8x64xbf16>, vector<64x32xbf16>, vector<8x32xf32> -> vector<8x32xf32>
    %c0_131 = arith.constant 0 : index
    %c0_132 = arith.constant 0 : index
    %c0_133 = arith.constant 0 : index
    %301 = vector.load %arg26[%c0_131, %c0_132, %c0_133] : memref<1x1x32xf32, #tpu.memory_space<vmem>>, vector<1x1x32xf32>
    %302 = vector.shape_cast %301 : vector<1x1x32xf32> to vector<1x32xf32>
    %303 = vector.broadcast %302 : vector<1x32xf32> to vector<8x32xf32>
    %304 = arith.addf %300, %303 : vector<8x32xf32>
    %305 = arith.addf %286, %304 : vector<8x32xf32>
    %c0_134 = arith.constant 0 : index
    %c0_135 = arith.constant 0 : index
    %c0_136 = arith.constant 0 : index
    %306 = vector.load %arg21[%c0_134, %c0_135, %c0_136] : memref<1x1x32xf32, #tpu.memory_space<vmem>>, vector<1x1x32xf32>
    %307 = vector.shape_cast %306 : vector<1x1x32xf32> to vector<1x32xf32>
    %c0_137 = arith.constant 0 : index
    %c0_138 = arith.constant 0 : index
    %c0_139 = arith.constant 0 : index
    %308 = vector.load %arg22[%c0_137, %c0_138, %c0_139] : memref<1x1x32xf32, #tpu.memory_space<vmem>>, vector<1x1x32xf32>
    %309 = vector.shape_cast %308 : vector<1x1x32xf32> to vector<1x32xf32>
    %cst_140 = arith.constant dense<0.000000e+00> : vector<8xf32>
    %310 = vector.multi_reduction <add>, %305, %cst_140 [1] : vector<8x32xf32> to vector<8xf32>
    %311 = vector.shape_cast %310 : vector<8xf32> to vector<8x1xf32>
    %cst_141 = arith.constant 3.200000e+01 : f32
    %312 = vector.broadcast %cst_141 : f32 to vector<8x1xf32>
    %313 = arith.divf %311, %312 : vector<8x1xf32>
    %314 = vector.broadcast %313 : vector<8x1xf32> to vector<8x32xf32>
    %315 = arith.subf %305, %314 : vector<8x32xf32>
    %316 = arith.mulf %315, %315 : vector<8x32xf32>
    %cst_142 = arith.constant dense<0.000000e+00> : vector<8xf32>
    %317 = vector.multi_reduction <add>, %316, %cst_142 [1] : vector<8x32xf32> to vector<8xf32>
    %318 = vector.shape_cast %317 : vector<8xf32> to vector<8x1xf32>
    %cst_143 = arith.constant 3.200000e+01 : f32
    %319 = vector.broadcast %cst_143 : f32 to vector<8x1xf32>
    %320 = arith.divf %318, %319 : vector<8x1xf32>
    %321 = vector.broadcast %313 : vector<8x1xf32> to vector<8x32xf32>
    %322 = arith.subf %305, %321 : vector<8x32xf32>
    %cst_144 = arith.constant 9.99999974E-6 : f32
    %323 = vector.broadcast %cst_144 : f32 to vector<8x1xf32>
    %324 = arith.addf %320, %323 : vector<8x1xf32>
    %325 = math.rsqrt %324 : vector<8x1xf32>
    %326 = vector.broadcast %325 : vector<8x1xf32> to vector<8x32xf32>
    %327 = arith.mulf %322, %326 : vector<8x32xf32>
    %328 = vector.broadcast %307 : vector<1x32xf32> to vector<8x32xf32>
    %329 = arith.mulf %327, %328 : vector<8x32xf32>
    %330 = vector.broadcast %309 : vector<1x32xf32> to vector<8x32xf32>
    %331 = arith.addf %329, %330 : vector<8x32xf32>
    %c0_145 = arith.constant 0 : index
    %c0_146 = arith.constant 0 : index
    %c0_147 = arith.constant 0 : index
    %332 = vector.load %arg27[%c0_145, %c0_146, %c0_147] : memref<1x8x32xf32, #tpu.memory_space<vmem>>, vector<1x8x32xf32>
    %333 = vector.shape_cast %332 : vector<1x8x32xf32> to vector<8x32xf32>
    %334 = vector.shape_cast %331 : vector<8x32xf32> to vector<1x8x32xf32>
    tpu.vector_store %arg27[%c0_145, %c0_146, %c0_147], %334 {strides = array<i32>} : memref<1x8x32xf32, #tpu.memory_space<vmem>>, vector<1x8x32xf32>,
    return
  }
  func.func @transform_0(%arg0: i32, %arg1: i32) -> (i32, i32, i32) {
    %c0_i32 = arith.constant 0 : i32
    %c0_i32_0 = arith.constant 0 : i32
    %c0_i32_1 = arith.constant 0 : i32
    return %arg0, %c0_i32, %c0_i32_0 : i32, i32, i32
  }
  func.func @transform_1(%arg0: i32, %arg1: i32) -> (i32, i32, i32) {
    %c0_i32 = arith.constant 0 : i32
    %c0_i32_0 = arith.constant 0 : i32
    %c0_i32_1 = arith.constant 0 : i32
    return %arg0, %c0_i32, %c0_i32_0 : i32, i32, i32
  }
  func.func @transform_2(%arg0: i32, %arg1: i32) -> (i32, i32) {
    %c0_i32 = arith.constant 0 : i32
    %c0_i32_0 = arith.constant 0 : i32
    %c0_i32_1 = arith.constant 0 : i32
    return %c0_i32, %c0_i32_0 : i32, i32
  }
  func.func @transform_3(%arg0: i32, %arg1: i32) -> (i32, i32, i32) {
    %c0_i32 = arith.constant 0 : i32
    %c0_i32_0 = arith.constant 0 : i32
    %c0_i32_1 = arith.constant 0 : i32
    return %arg0, %c0_i32, %c0_i32_0 : i32, i32, i32
  }
  func.func @transform_4(%arg0: i32, %arg1: i32) -> (i32, i32, i32) {
    %c0_i32 = arith.constant 0 : i32
    %c0_i32_0 = arith.constant 0 : i32
    %c0_i32_1 = arith.constant 0 : i32
    return %arg0, %c0_i32, %c0_i32_0 : i32, i32, i32
  }
  func.func @transform_5(%arg0: i32, %arg1: i32) -> (i32, i32, i32) {
    %c0_i32 = arith.constant 0 : i32
    %c0_i32_0 = arith.constant 0 : i32
    %c0_i32_1 = arith.constant 0 : i32
    return %arg1, %c0_i32, %c0_i32_0 : i32, i32, i32
  }
  func.func @transform_6(%arg0: i32, %arg1: i32) -> (i32, i32, i32) {
    %c0_i32 = arith.constant 0 : i32
    %c0_i32_0 = arith.constant 0 : i32
    %c0_i32_1 = arith.constant 0 : i32
    return %arg1, %c0_i32, %c0_i32_0 : i32, i32, i32
  }
  func.func @transform_7(%arg0: i32, %arg1: i32) -> (i32, i32, i32) {
    %c0_i32 = arith.constant 0 : i32
    %c0_i32_0 = arith.constant 0 : i32
    %c0_i32_1 = arith.constant 0 : i32
    return %arg1, %c0_i32, %c0_i32_0 : i32, i32, i32
  }
  func.func @transform_8(%arg0: i32, %arg1: i32) -> (i32, i32, i32) {
    %c0_i32 = arith.constant 0 : i32
    %c0_i32_0 = arith.constant 0 : i32
    %c0_i32_1 = arith.constant 0 : i32
    return %arg1, %c0_i32, %c0_i32_0 : i32, i32, i32
  }
  func.func @transform_9(%arg0: i32, %arg1: i32) -> (i32, i32, i32) {
    %c0_i32 = arith.constant 0 : i32
    %c0_i32_0 = arith.constant 0 : i32
    %c0_i32_1 = arith.constant 0 : i32
    return %arg1, %c0_i32, %c0_i32_0 : i32, i32, i32
  }
  func.func @transform_10(%arg0: i32, %arg1: i32) -> (i32, i32, i32) {
    %c0_i32 = arith.constant 0 : i32
    %c0_i32_0 = arith.constant 0 : i32
    %c0_i32_1 = arith.constant 0 : i32
    return %arg1, %c0_i32, %c0_i32_0 : i32, i32, i32
  }
  func.func @transform_11(%arg0: i32, %arg1: i32) -> (i32, i32, i32) {
    %c0_i32 = arith.constant 0 : i32
    %c0_i32_0 = arith.constant 0 : i32
    %c0_i32_1 = arith.constant 0 : i32
    return %arg1, %c0_i32, %c0_i32_0 : i32, i32, i32
  }
  func.func @transform_12(%arg0: i32, %arg1: i32) -> (i32, i32, i32) {
    %c0_i32 = arith.constant 0 : i32
    %c0_i32_0 = arith.constant 0 : i32
    %c0_i32_1 = arith.constant 0 : i32
    return %arg1, %c0_i32, %c0_i32_0 : i32, i32, i32
  }
  func.func @transform_13(%arg0: i32, %arg1: i32) -> (i32, i32, i32) {
    %c0_i32 = arith.constant 0 : i32
    %c0_i32_0 = arith.constant 0 : i32
    %c0_i32_1 = arith.constant 0 : i32
    return %arg1, %c0_i32, %c0_i32_0 : i32, i32, i32
  }
  func.func @transform_14(%arg0: i32, %arg1: i32) -> (i32, i32, i32) {
    %c0_i32 = arith.constant 0 : i32
    %c0_i32_0 = arith.constant 0 : i32
    %c0_i32_1 = arith.constant 0 : i32
    return %arg1, %c0_i32, %c0_i32_0 : i32, i32, i32
  }
  func.func @transform_15(%arg0: i32, %arg1: i32) -> (i32, i32, i32) {
    %c0_i32 = arith.constant 0 : i32
    %c0_i32_0 = arith.constant 0 : i32
    %c0_i32_1 = arith.constant 0 : i32
    return %arg1, %c0_i32, %c0_i32_0 : i32, i32, i32
  }
  func.func @transform_16(%arg0: i32, %arg1: i32) -> (i32, i32, i32) {
    %c0_i32 = arith.constant 0 : i32
    %c0_i32_0 = arith.constant 0 : i32
    %c0_i32_1 = arith.constant 0 : i32
    return %arg1, %c0_i32, %c0_i32_0 : i32, i32, i32
  }
  func.func @transform_17(%arg0: i32, %arg1: i32) -> (i32, i32, i32) {
    %c0_i32 = arith.constant 0 : i32
    %c0_i32_0 = arith.constant 0 : i32
    %c0_i32_1 = arith.constant 0 : i32
    return %arg1, %c0_i32, %c0_i32_0 : i32, i32, i32
  }
  func.func @transform_18(%arg0: i32, %arg1: i32) -> (i32, i32, i32) {
    %c0_i32 = arith.constant 0 : i32
    %c0_i32_0 = arith.constant 0 : i32
    %c0_i32_1 = arith.constant 0 : i32
    return %arg1, %c0_i32, %c0_i32_0 : i32, i32, i32
  }
  func.func @transform_19(%arg0: i32, %arg1: i32) -> (i32, i32, i32) {
    %c0_i32 = arith.constant 0 : i32
    %c0_i32_0 = arith.constant 0 : i32
    %c0_i32_1 = arith.constant 0 : i32
    return %arg1, %c0_i32, %c0_i32_0 : i32, i32, i32
  }
  func.func @transform_20(%arg0: i32, %arg1: i32) -> (i32, i32, i32) {
    %c0_i32 = arith.constant 0 : i32
    %c0_i32_0 = arith.constant 0 : i32
    %c0_i32_1 = arith.constant 0 : i32
    return %arg1, %c0_i32, %c0_i32_0 : i32, i32, i32
  }
  func.func @transform_21(%arg0: i32, %arg1: i32) -> (i32, i32, i32) {
    %c0_i32 = arith.constant 0 : i32
    %c0_i32_0 = arith.constant 0 : i32
    %c0_i32_1 = arith.constant 0 : i32
    return %arg1, %c0_i32, %c0_i32_0 : i32, i32, i32
  }
  func.func @transform_22(%arg0: i32, %arg1: i32) -> (i32, i32, i32) {
    %c0_i32 = arith.constant 0 : i32
    %c0_i32_0 = arith.constant 0 : i32
    %c0_i32_1 = arith.constant 0 : i32
    return %arg1, %c0_i32, %c0_i32_0 : i32, i32, i32
  }
  func.func @transform_23(%arg0: i32, %arg1: i32) -> (i32, i32, i32) {
    %c0_i32 = arith.constant 0 : i32
    %c0_i32_0 = arith.constant 0 : i32
    %c0_i32_1 = arith.constant 0 : i32
    return %arg1, %c0_i32, %c0_i32_0 : i32, i32, i32
  }
  func.func @transform_24(%arg0: i32, %arg1: i32) -> (i32, i32, i32) {
    %c0_i32 = arith.constant 0 : i32
    %c0_i32_0 = arith.constant 0 : i32
    %c0_i32_1 = arith.constant 0 : i32
    return %arg1, %c0_i32, %c0_i32_0 : i32, i32, i32
  }
  func.func @transform_25(%arg0: i32, %arg1: i32) -> (i32, i32, i32) {
    %c0_i32 = arith.constant 0 : i32
    %c0_i32_0 = arith.constant 0 : i32
    %c0_i32_1 = arith.constant 0 : i32
    return %arg0, %c0_i32, %c0_i32_0 : i32, i32, i32
  }
}

</mosaic_0001>

<bundles_post_ra>
// kernel: sep_seq2seq_transformer_forward.5
= control target key start
LH: loop header
LB: loop body
LE: loop exit
PB: predicated region body
PF: predicated region fallthrough
CT: control target
= control target key end

     0   :  { %v112_v0 = vmov 0.0   ;;  %vm113_vm0 = vmmov 0   ;;  %vm41_vm1 = vcmask 261120   ;;  %vm86_vm2 = vcmask 490496   ;;  %s155_s1 = inlined_call_operand.vmem [shape: bf16[32,60], index: 1, kind: input, shape index: {}]   ;;  %s156_s0 = inlined_call_operand.vmem [shape: f32[16,32], index: 0, kind: input, shape index: {}]   ;;  %s157_s2 = inlined_call_operand.vmem [shape: f32[1,60], index: 2, kind: input, shape index: {}]   ;;  %s158_s3 = inlined_call_operand.vmem [shape: f32[16,60], index: 3, kind: output, shape index: {}]  }
   0x1   :  { %100 = vmatprep.subr.bf16.mxu0 %v112_v0  ;;  %v110_v1 = vld [vmem:[%s155_s1] sm:$0xff]   ;;  %104 = vmatprep.mubr.msk.bf16.mxu0 %vm113_vm0, %v112_v0  ;;  %v111_v2 = vld [vmem:[%s155_s1 + $0x8] sm:$0xff]  }
   0x2   :  { %101 = vmatpush3.bf16.msra.mxu0 %v110_v1  ;;  %v15_v3 = vld [vmem:[%s156_s0] sm:$0xff]  ;;  %v16_v4 = vld [vmem:[%s156_s0 + $0x8] sm:$0xff] }
   0x3   :  { %102 = vmatprep.subr.bf16.mxu0 %v112_v0  ;;  %v17_v5 = vpack.c.bf16 %v16_v4, %v15_v3  ;;  %v93_v6 = vld [vmem:[%s157_s2] ss:$0 sm:$0xff] }
   0x6   :  { %103 = vmatpush3.bf16.msra.mxu0 %v111_v2 }
   0x9   :  { %105 = vmatmul.mubr.msk.bf16.vlgmr.msra.gmra.mrb[0].mxu0 %vm41_vm1, %v17_v5 }
  0xdc   :  { %v79_v7 = vpop.f32.mrb[0].mxu0 }
  0xdd   :  { %v80_v8 = vadd.f32 %v93_v6, %v79_v7  ;;  %v106_v9 = vpop.f32.mrb[1].mxu0 }
  0xde   :  { %v82_v10 = vpop.f32.mrb[2].mxu0 }
  0xdf   :  { %87 = vst.msk [vmem:[%s158_s3] sm:$0xff] %vm86_vm2, %v80_v8  ;;  %v83_v11 = vadd.f32 %v93_v6, %v82_v10  ;;  %v107_v12 = vpop.f32.mrb[3].mxu0 }
  0xe1   :  { %88 = vst.msk [vmem:[%s158_s3 + $0x8] sm:$0xff] %vm86_vm2, %v83_v11 }

// kernel: sep_seq2seq_transformer_forward.3
= control target key start
LH: loop header
LB: loop body
LE: loop exit
PB: predicated region body
PF: predicated region fallthrough
CT: control target
= control target key end

     0   :  { %s2270_s18 = smov 0   ;;  %s2272_s19 = smov 0   ;;  %s2580_s0 = inlined_call_operand.vmem [shape: f32[2,10,32], index: 0, kind: input, shape index: {}]   ;;  %s2581_s1 = inlined_call_operand.vmem [shape: f32[10,10], index: 1, kind: input, shape index: {}]   ;;  %s2582_s2 = inlined_call_operand.vmem [shape: f32[2,1,10], index: 2, kind: input, shape index: {}]   ;;  %s2583_s3 = inlined_call_operand.vmem [shape: bf16[2,32,96], index: 3, kind: input, shape index: {}]   ;;  %s2584_s4 = inlined_call_operand.vmem [shape: f32[2,1,96], index: 4, kind: input, shape index: {}]   ;;  %s2585_s5 = inlined_call_operand.vmem [shape: bf16[2,32,32], index: 5, kind: input, shape index: {}]   ;;  %s2586_s6 = inlined_call_operand.vmem [shape: f32[2,1,32], index: 6, kind: input, shape index: {}]   ;;  %s2587_s7 = inlined_call_operand.vmem [shape: f32[2,1,32], index: 7, kind: input, shape index: {}, may-alias: {7,13}]   ;;  %s2588_s8 = inlined_call_operand.vmem [shape: f32[2,1,32], index: 8, kind: input, shape index: {}, may-alias: {8,14}]   ;;  %s2589_s9 = inlined_call_operand.vmem [shape: bf16[2,32,64], index: 9, kind: input, shape index: {}]   ;;  %s2590_s10 = inlined_call_operand.vmem [shape: f32[2,1,64], index: 10, kind: input, shape index: {}]   ;;  %s2591_s11 = inlined_call_operand.vmem [shape: bf16[2,64,32], index: 11, kind: input, shape index: {}]   ;;  %s2592_s12 = inlined_call_operand.vmem [shape: f32[2,1,32], index: 12, kind: input, shape index: {}]   ;;  %s2593_s13 = inlined_call_operand.vmem [shape: f32[2,1,32], index: 13, kind: input, shape index: {}, may-alias: {7,13}]   ;;  %s2594_s14 = inlined_call_operand.vmem [shape: f32[2,1,32], index: 14, kind: input, shape index: {}, may-alias: {8,14}]   ;;  %s2595_s15 = inlined_call_operand.vmem [shape: f32[2,10,32], index: 15, kind: output, shape index: {}]  }
   0x1   :  { %2601 = sst [smem:[#allocation9_spill]] %s2580_s0  ;;  %s2274_s20 = smov 0  }
   0x2   :  { %2602 = sst [smem:[#allocation10_spill]] %s2581_s1  ;;  %s2276_s21 = smov 0  }
   0x3   :  { %2603 = sst [smem:[#allocation11_spill]] %s2582_s2  ;;  %s2278_s22 = smov 0  }
   0x4   :  { %2604 = sst [smem:[#allocation12_spill]] %s2583_s3 }
   0x5   :  { %2605 = sst [smem:[#allocation13_spill]] %s2585_s5 }
   0x6   :  { %2606 = sst [smem:[#allocation14_spill]] %s2588_s8 }
   0x7   :  { %2607 = sst [smem:[#allocation15_spill]] %s2589_s9 }
   0x8   :  { %2608 = sst [smem:[#allocation16_spill]] %s2590_s10 }
   0x9   :  { %2609 = sst [smem:[#allocation17_spill]] %s2593_s13 }
   0xa   :  { %2610 = sst [smem:[#allocation18_spill]] %s2594_s14 }
   0xb   :  { %2611 = sst [smem:[#allocation19_spill]] %s2595_s15 }
   0xc LB: > { %2612 = sst [smem:[#allocation3_spill]] %s2156_s18  ;;  %s34_s23 = sadd.s32 1, %s2164_s20  ;;  %s2172_s22 = sphi %s2278_s22, %s25_s22   ;;  %s2168_s21 = sphi %s2276_s21, %s2645_s21   ;;  %s2164_s20 = sphi %s2274_s20, %s2644_s20   ;;  %s2160_s19 = sphi %s2272_s19, %s2643_s19   ;;  %s2156_s18 = sphi %s2270_s18, %s2642_s18  }
   0xd   : > { %2613 = sst [smem:[#allocation4_spill]] %s2164_s20  ;;  %s37_s24 = sadd.s32 1, %s2168_s21 }
   0xe   : > { %2614 = sst [smem:[#allocation5_spill]] %s2168_s21  ;;  %p35_p0 = scmp.ge.s32.totalorder %s34_s23, 2 }
   0xf   : > { %2615 = sst [smem:[#allocation6_spill]] %s2172_s22  ;;  %p1861_p1 = scmp.ge.s32.totalorder %s2172_s22, 1 }
  0x10   : > { %p561_p2 = scmp.lt.s32.totalorder %s2172_s22, 5  ;;  %s2647_s23 = smov (%p35_p0, %s34_s23), 0 }
  0x11   : > { %2616 = sst [smem:[#allocation7_spill]] %s2647_s23  ;;  %s2649_s24 = smov (!%p35_p0, %s37_s24), %s2168_s21 }
  0x12   : > { %p562_p3 = pnand %p1861_p1, %p561_p2  ;;  %p39_p4 = scmp.ge.s32.totalorder %s2649_s24, 2 }
  0x13   : > { %p656_p5 = scmp.lt.s32.totalorder (!%p562_p3), %s2160_s19, 1  ;;  %p664_p6 = scmp.lt.s32.totalorder (!%p562_p3), %s2156_s18, 1 }
  0x14   : > { %s2651_s24 = smov (%p39_p4, %s2649_s24), 0  ;;  %565 = sbr.rel (%p562_p3) target bundleno = 2619 (0xa3b), region = 80 }
  0x15   : > { %2617 = sst [smem:[#allocation8_spill]] %s2651_s24  ;;  %s2619_s0 = sld [smem:[#allocation9_spill]] (!%p562_p3) }
  0x16   : > { %s2620_s3 = sld [smem:[#allocation12_spill]] (!%p562_p3)  ;;  %s2621_s5 = sld [smem:[#allocation13_spill]] (!%p562_p3) }
  0x17   : > { %s2623_s9 = sld [smem:[#allocation15_spill]] (!%p562_p3)  ;;  %s2625_s23 = sld [smem:[#allocation17_spill]] (!%p562_p3) }
  0x18   : > { %s2628_s27 = sld [smem:[#allocation3_spill]] (!%p562_p3) }
  0x1b   : > { %s2653_s19 = smov (!%p656_p5, %s2160_s19), 1 }
  0x1c   : > { %s2306_s25 = scalar_select %p664_p6, %s2156_s18, 1 }
  0x1d   : > { %s1908_s26 = sshll.u32 %s2653_s19, 4  ;;  %s2627_s18 = sld [smem:[#allocation19_spill]] }
  0x1e   : > { %s660_s17 = scalar_lea.vmem %s2619_s0, %s1908_s26  ;;  %s1909_s24 = sshll.u32 %s2306_s25, 4 }
  0x1f   : > { %s668_s20 = scalar_lea.vmem %s2620_s3, %s1909_s24  ;;  %s2327_s13 = scalar_lea.vmem %s2621_s5, %s1909_s24 }
  0x20   : > { %s2344_s22 = scalar_lea.vmem %s2623_s9, %s1909_s24  ;;  %s1912_s5 = sshll.u32 %s2306_s25, 5 }
  0x21   : > { %s701_s29 = scalar_lea.vmem %s2592_s12, %s2306_s25  ;;  %s2358_s0 = scalar_lea.vmem %s2591_s11, %s1912_s5 }
  0x22   : > { %s704_s3 = scalar_lea.vmem %s2625_s23, %s2306_s25  ;;  %s2626_s9 = sld [smem:[#allocation18_spill]] }
  0x23   : > { %s2371_s10 = scalar_lea.vmem %s2627_s18, %s1908_s26  ;;  %p1874_p7 = scmp.ne.s32.totalorder %s2628_s27, 0 }
  0x24   : > { %v718_v0 = vld [vmem:[%s660_s17] sm:$0xff] (!%p1874_p7)  ;;  %vm720_vm0 = vcmask (!%p1874_p7), 261120   ;;  %v719_v1 = vld [vmem:[%s660_s17 + $0x8] sm:$0x3] (!%p1874_p7)  ;;  %vm722_vm1 = vcmask (!%p1874_p7), 254976  }
  0x25   : > { %717 = sbr.rel (%p1874_p7) target bundleno = 44 (0x2c), region = 84  ;;  %721 = vst.msk [vmem:[%s2371_s10] sm:$0xff] (!%p1874_p7), %vm720_vm0, %v718_v0 }
  0x26   : > { %723 = vst.msk [vmem:[%s2371_s10 + $0x8] sm:$0x3] (!%p1874_p7), %vm722_vm1, %v719_v1 }
  0x28   : > { %s707_s8 = scalar_lea.vmem %s2626_s9, %s2306_s25 }
  0x2c PF: > { %v2084_v2 = vld [vmem:[%s668_s20] sm:$0xff]   ;;  %v2174_v3 = vmov 0.0   ;;  %v2085_v4 = vld [vmem:[%s668_s20 + $0x8] sm:$0xff]   ;;  %vm2175_vm2 = vmmov 0   ;;  %vm761_vm3 = vcmask 261120   ;;  %s2629_s18 = scalar_lea.vmem %s2584_s4, %s2306_s25  ;;  %s2176_s20 = smov 120  }
  0x2d   : > { %1944 = vmatprep.subr.bf16.mxu0 %v2174_v3  ;;  %1952 = vmatprep.subr.bf16.mxu1 %v2174_v3  ;;  %v2381_v5 = vld [vmem:[%s2371_s10] sm:$0xff]  ;;  %v2384_v6 = vld [vmem:[%s2371_s10 + $0x8] sm:$0x3]  ;;  %s2177_s26 = smov 96   ;;  %s2178_s17 = smov 80   ;;  %vm815_vm4 = vcmask 64512  }
  0x2e   : > { %1945 = vmatpush3.bf16.msra.mxu0 %v2084_v2  ;;  %1948 = vmatprep.mubr.msk.bf16.mxu0 %vm2175_vm2, %v2174_v3  ;;  %v737_v7 = vpack.c.bf16 %v2384_v6, %v2381_v5  ;;  %v1876_v8 = vld [vmem:[%s2629_s18] ss:$0 sm:$0xff]  ;;  %s2179_s23 = smov 88   ;;  %s2180_s28 = smov 72   ;;  %vm863_vm5 = vcmask 80896   ;;  %vm867_vm6 = vcmask 74752  }
  0x2f   : > { %1946 = vmatprep.subr.bf16.mxu0 %v2174_v3  ;;  %1954 = vmatprep.mubr.msk.bf16.mxu1 %vm2175_vm2, %v2174_v3  ;;  %s2181_s30 = smov 112   ;;  %s2182_s16 = smov 104   ;;  %vm893_vm7 = vcmask 1044480   ;;  %vm939_vm8 = vcmask 58368   ;;  %vm1072_vm9 = vcmask 130112   ;;  %vm1074_vm10 = vcmask 123968  }
  0x30   : > { %s2630_s24 = sld [smem:[#allocation10_spill]]  ;;  %s2631_s15 = sld [smem:[#allocation11_spill]]  ;;  %vm1207_vm11 = vcmask 195712   ;;  %vm1209_vm12 = vcmask 189568   ;;  %vm1342_vm13 = vcmask 261312   ;;  %vm1344_vm14 = vcmask 255168  }
  0x31   : > { %s2184_s18 = smov 64   ;;  %vm1418_vm15 = vcmask 254976   ;;  %s2634_s21 = scalar_lea.vmem %s2587_s7, %s2306_s25  ;;  %vm1569_vm0 = vcmask 523264  }
  0x32   : > { %1947 = vmatpush3.bf16.msra.mxu0 %v2085_v4 }
  0x33   : > { %1958 = vmatprep.subr.bf16.mxu0 %v2174_v3 }
  0x35   : > { %1949 = vmatmul.mubr.msk.bf16.vlgmr.msra.gmra.mrb[0].mxu0 %vm761_vm3, %v737_v7 }
  0x36   : > { %1960 = vmatprep.mubr.msk.bf16.mxu0 %vm2175_vm2, %v2174_v3  ;;  %v726_v27 = vld [vmem:[%s2630_s24] sm:$0xff]  ;;  %s2632_s27 = scalar_lea.vmem %s2631_s15, %s2653_s19  ;;  %v727_v29 = vld [vmem:[%s2630_s24 + $0x8] sm:$0x3]  ;;  %s2183_s19 = smov 56  }
  0x37   : > { %v1875_v28 = vld [vmem:[%s2632_s27] ss:$0 sm:$0xff]  ;;  %s2635_s15 = sld [smem:[#allocation14_spill]] }
  0x38   : > { %v735_v30 = vadd.f32 %v1875_v28, %v726_v27  ;;  %v736_v31 = vadd.f32 %v1875_v28, %v727_v29 }
  0x3d   : > { %s2636_s27 = scalar_lea.vmem %s2635_s15, %s2306_s25 }
 0x108   : > { %v799_v9 = vpop.f32.mrb[0].mxu0 }
 0x109   : > { %v1950_v10 = vpop.f32.mrb[1].mxu0  ;;  %v800_v12 = vadd.f32 %v1876_v8, %v799_v9 }
 0x10a   : > { %v802_v11 = vpop.f32.mrb[2].mxu0 }
 0x10b   : > { %v803_v13 = vadd.f32 %v1876_v8, %v802_v11  ;;  %v1951_v14 = vpop.f32.mrb[3].mxu0 }
 0x10d   : > { %v2400_v15 = vpack.c.bf16 %v803_v13, %v800_v12 }
 0x10f   : > { %941 = vrot.lane.b32.xlu1 %v2400_v15, %s2176_s20  ;;  %813 = vrot.lane.b32.xlu0 %v2400_v15, %s2177_s26  ;;  %s2185_s20 = smov 48   ;;  %s2186_s26 = smov 40  }
 0x113   : > { %1078 = vrot.lane.b32.xlu1 %v2400_v15, %s2178_s17  ;;  %943 = vrot.lane.b32.xlu0 %v2400_v15, %s2179_s23  ;;  %s2187_s17 = smov 8   ;;  %s2188_s23 = smov 16  }
 0x117   : > { %1213 = vrot.lane.b32.xlu1 %v2400_v15, %s2180_s28  ;;  %1076 = vrot.lane.b32.xlu0 %v2400_v15, %s2181_s30  ;;  %s2189_s28 = smov 24  }
 0x11b   : > { %1211 = vrot.lane.b32.xlu0 %v2400_v15, %s2182_s16  ;;  %s2633_s16 = scalar_lea.vmem %s2586_s6, %s2306_s25 }
 0x181   : > { %v814_v16 = vpop.permute.xlu0 %813  ;;  %v942_v19 = vpop.permute.xlu1 %941 }
 0x182   : > { %v820_v17 = vsel %vm815_vm4, %v814_v16, 0 }
 0x183   : > { %1953 = vmatpush3.bf16.xpose.msra.mxu1 %v820_v17 }
 0x184   : > { %1964 = vmatprep.subr.bf16.mxu1 %v2174_v3 }
 0x185   : > { %v944_v18 = vpop.permute.xlu0 %943  ;;  %v1079_v21 = vpop.permute.xlu1 %1078 }
 0x186   : > { %v949_v20 = vsel %vm815_vm4, %v944_v18, 0  ;;  %v1084_v22 = vsel %vm815_vm4, %v1079_v21, 0 }
 0x189   : > { %v1214_v23 = vpop.permute.xlu1 %1213  ;;  %v1077_v24 = vpop.permute.xlu0 %1076 }
 0x18a   : > { %1955 = vmatmul.mubr.msk.bf16.vlgmr.msra.gmra.mrb[0].mxu1 %vm815_vm4, %v2400_v15  ;;  %v1219_v25 = vsel %vm815_vm4, %v1214_v23, 0 }
 0x18b   : > { %1965 = vmatpush3.bf16.xpose.msra.mxu1 %v949_v20  ;;  %1966 = vmatprep.mubr.msk.bf16.mxu1 %vm2175_vm2, %v2174_v3 }
 0x18c   : > { %1976 = vmatprep.subr.bf16.mxu1 %v2174_v3 }
 0x18d   : > { %v1212_v26 = vpop.permute.xlu0 %1211 }
 0x192   : > { %1967 = vmatmul.mubr.msk.bf16.vlgmr.msra.gmra.mrb[4].mxu1 %vm815_vm4, %v942_v19 }
 0x193   : > { %1977 = vmatpush3.bf16.xpose.msra.mxu1 %v1084_v22  ;;  %1978 = vmatprep.mubr.msk.bf16.mxu1 %vm2175_vm2, %v2174_v3 }
 0x194   : > { %1988 = vmatprep.subr.bf16.mxu1 %v2174_v3 }
 0x19a   : > { %1979 = vmatmul.mubr.msk.bf16.vlgmr.msra.gmra.mrb[8].mxu1 %vm815_vm4, %v1077_v24 }
 0x19b   : > { %1989 = vmatpush3.bf16.xpose.msra.mxu1 %v1219_v25  ;;  %1990 = vmatprep.mubr.msk.bf16.mxu1 %vm2175_vm2, %v2174_v3 }
 0x19c   : > { %2000 = vmatprep.subr.bf16.mxu1 %v2174_v3 }
 0x1a2   : > { %1991 = vmatmul.mubr.msk.bf16.vlgmr.msra.gmra.mrb[12].mxu1 %vm815_vm4, %v1212_v26 }
 0x1a3   : > { %2004 = vmatprep.mubr.msk.bf16.mxu1 %vm2175_vm2, %v2174_v3 }
 0x25d   : > { %v856_v32 = vpop.f32.mrb[0].mxu1 }
 0x25e   : > { %v857_v33 = vadd.f32 %v856_v32, %v735_v30  ;;  %v1956_v34 = vpop.f32.mrb[1].mxu1 }
 0x25f   : > { %v859_v35 = vpop.f32.mrb[2].mxu1 }
 0x260   : > { %v860_v36 = vadd.f32 %v859_v35, %v736_v31  ;;  %v1957_v37 = vpop.f32.mrb[3].mxu1  ;;  %v864_v38 = vsel %vm863_vm5, %v857_v33, -inf }
 0x261   : > { %865 = vmax.xlane.f32.xlu1 %v864_v38 }
 0x262   : > { %v868_v39 = vsel %vm867_vm6, %v860_v36, -inf }
 0x263   : > { %869 = vmax.xlane.f32.xlu0 %v868_v39 }
 0x265   : > { %v985_v40 = vpop.f32.mrb[4].mxu1 }
 0x266   : > { %v986_v41 = vadd.f32 %v985_v40, %v735_v30  ;;  %v1968_v42 = vpop.f32.mrb[5].mxu1 }
 0x267   : > { %v988_v43 = vpop.f32.mrb[6].mxu1 }
 0x268   : > { %v989_v44 = vadd.f32 %v988_v43, %v736_v31  ;;  %v1969_v45 = vpop.f32.mrb[7].mxu1  ;;  %v992_v46 = vsel %vm863_vm5, %v986_v41, -inf }
 0x269   : > { %993 = vmax.xlane.f32.xlu0 %v992_v46 }
 0x26a   : > { %v995_v47 = vsel %vm867_vm6, %v989_v44, -inf }
 0x26b   : > { %996 = vmax.xlane.f32.xlu1 %v995_v47 }
 0x26d   : > { %v1120_v48 = vpop.f32.mrb[8].mxu1 }
 0x26e   : > { %v1121_v49 = vadd.f32 %v1120_v48, %v735_v30  ;;  %v1980_v50 = vpop.f32.mrb[9].mxu1 }
 0x26f   : > { %v1123_v51 = vpop.f32.mrb[10].mxu1 }
 0x270   : > { %v1124_v52 = vadd.f32 %v1123_v51, %v736_v31  ;;  %v1981_v53 = vpop.f32.mrb[11].mxu1  ;;  %v1127_v54 = vsel %vm863_vm5, %v1121_v49, -inf }
 0x271   : > { %1128 = vmax.xlane.f32.xlu0 %v1127_v54 }
 0x272   : > { %v1130_v55 = vsel %vm867_vm6, %v1124_v52, -inf }
 0x273   : > { %1131 = vmax.xlane.f32.xlu1 %v1130_v55 }
 0x275   : > { %v1255_v56 = vpop.f32.mrb[12].mxu1 }
 0x276   : > { %v1256_v57 = vadd.f32 %v1255_v56, %v735_v30  ;;  %v1992_v58 = vpop.f32.mrb[13].mxu1 }
 0x277   : > { %v1258_v59 = vpop.f32.mrb[14].mxu1 }
 0x278   : > { %v1259_v60 = vadd.f32 %v1258_v59, %v736_v31  ;;  %v1993_v61 = vpop.f32.mrb[15].mxu1  ;;  %v1262_v62 = vsel %vm863_vm5, %v1256_v57, -inf }
 0x279   : > { %1263 = vmax.xlane.f32.xlu0 %v1262_v62 }
 0x27a   : > { %v1265_v63 = vsel %vm867_vm6, %v1259_v60, -inf }
 0x27b   : > { %1266 = vmax.xlane.f32.xlu1 %v1265_v63 }
 0x2ee   : > { %v866_v0 = vpop.xlane.xlu1 %865 }
 0x2ef   : > { %v871_v1 = vsub.f32 %v857_v33, %v866_v0 }
 0x2f0   : > { %v870_v2 = vpop.xlane.xlu0 %869 }
 0x2f1   : > { %v873_v4 = vmul.f32 1.442695, %v871_v1  ;;  %v872_v7 = vsub.f32 %v860_v36, %v870_v2 }
 0x2f3   : > { %2094 = vpow2.f32 %v873_v4  ;;  %v875_v8 = vmul.f32 1.442695, %v872_v7 }
 0x2f5   : > { %2096 = vpow2.f32 %v875_v8 }
 0x2f6   : > { %v994_v9 = vpop.xlane.xlu0 %993 }
 0x2f7   : > { %v998_v10 = vsub.f32 %v986_v41, %v994_v9 }
 0x2f8   : > { %v997_v19 = vpop.xlane.xlu1 %996 }
 0x2f9   : > { %v1000_v11 = vmul.f32 1.442695, %v998_v10  ;;  %v999_v20 = vsub.f32 %v989_v44, %v997_v19 }
 0x2fb   : > { %2098 = vpow2.f32 %v1000_v11  ;;  %v1002_v23 = vmul.f32 1.442695, %v999_v20 }
 0x2fd   : > { %v2095_v12 = vpop.eup %2094  ;;  %2100 = vpow2.f32 %v1002_v23 }
 0x2fe   : > { %v877_v13 = vsel %vm863_vm5, %v2095_v12, 0.0  ;;  %v1129_v22 = vpop.xlane.xlu0 %1128 }
 0x2ff   : > { %v2097_v14 = vpop.eup %2096  ;;  %878 = vadd.xlane.f32.xlu0 %v877_v13  ;;  %v1133_v26 = vsub.f32 %v1121_v49, %v1129_v22 }
 0x300   : > { %v880_v16 = vsel %vm867_vm6, %v2097_v14, 0.0  ;;  %v1132_v21 = vpop.xlane.xlu1 %1131 }
 0x301   : > { %881 = vadd.xlane.f32.xlu1 %v880_v16  ;;  %v1134_v24 = vsub.f32 %v1124_v52, %v1132_v21  ;;  %v1135_v30 = vmul.f32 1.442695, %v1133_v26 }
 0x303   : > { %v1137_v28 = vmul.f32 1.442695, %v1134_v24 }
 0x305   : > { %v2451_v17 = vpop.eup %2098  ;;  %2102 = vpow2.f32 %v1137_v28 }
 0x306   : > { %v1004_v18 = vsel %vm863_vm5, %v2451_v17, 0.0  ;;  %v1264_v27 = vpop.xlane.xlu0 %1263  ;;  %2104 = vpow2.f32 %v1135_v30 }
 0x307   : > { %1005 = vadd.xlane.f32.xlu0 %v1004_v18  ;;  %v1268_v31 = vsub.f32 %v1256_v57, %v1264_v27  ;;  %v2101_v34 = vpop.eup %2100  ;;  %v2086_v27 = vld [vmem:[%s2327_s13] sm:$0xff]  }
 0x308   : > { %v1267_v25 = vpop.xlane.xlu1 %1266  ;;  %v1007_v35 = vsel %vm867_vm6, %v2101_v34, 0.0  ;;  %2001 = vmatpush3.bf16.msra.mxu1 %v2086_v27 }
 0x309   : > { %v1269_v29 = vsub.f32 %v1259_v60, %v1267_v25  ;;  %v1270_v33 = vmul.f32 1.442695, %v1268_v31  ;;  %2002 = vmatprep.subr.bf16.mxu1 %v2174_v3 }
 0x30b   : > { %v1272_v32 = vmul.f32 1.442695, %v1269_v29  ;;  %v2087_v29 = vld [vmem:[%s2327_s13 + $0x8] sm:$0xff]  }
 0x30c   : > { %2003 = vmatpush3.bf16.msra.mxu1 %v2087_v29 }
 0x30d   : > { %2106 = vpow2.f32 %v1272_v32  ;;  %2016 = vmatprep.subr.bf16.mxu1 %v2174_v3 }
 0x30e   : > { %2108 = vpow2.f32 %v1270_v33 }
 0x30f   : > { %v2458_v36 = vpop.eup %2102 }
 0x310   : > { %v2105_v37 = vpop.eup %2104  ;;  %v1142_v38 = vsel %vm867_vm6, %v2458_v36, 0.0 }
 0x311   : > { %v1139_v40 = vsel %vm863_vm5, %v2105_v37, 0.0 }
 0x312   : > { %1015 = vrot.lane.b32.xlu1 %v2400_v15, %s2183_s19  ;;  %s2637_s19 = sld [smem:[#allocation16_spill]] }
 0x317   : > { %v2462_v39 = vpop.eup %2106 }
 0x318   : > { %v2465_v41 = vpop.eup %2108  ;;  %v1277_v42 = vsel %vm867_vm6, %v2462_v39, 0.0 }
 0x319   : > { %v1274_v43 = vsel %vm863_vm5, %v2465_v41, 0.0 }
 0x31d   : > { %888 = vrot.lane.b32.xlu0 %v2400_v15, %s2184_s18  ;;  %s2638_s18 = scalar_lea.vmem %s2637_s19, %s2306_s25 }
 0x31e   : > { %v1894_v27 = vld [vmem:[%s2638_s18] ss:$0 sm:$0xff] }
 0x336   : > { %1008 = vadd.xlane.f32.xlu1 %v1007_v35 }
 0x33a   : > { %1143 = vadd.xlane.f32.xlu1 %v1142_v38 }
 0x33c   : > { %1140 = vadd.xlane.f32.xlu0 %v1139_v40 }
 0x33e   : > { %1278 = vadd.xlane.f32.xlu1 %v1277_v42 }
 0x340   : > { %1275 = vadd.xlane.f32.xlu0 %v1274_v43 }
 0x34f   : > { %1150 = vrot.lane.b32.xlu1 %v2400_v15, %s2185_s20 }
 0x356   : > { %1285 = vrot.lane.b32.xlu0 %v2400_v15, %s2186_s26 }
 0x38c   : > { %v879_v44 = vpop.xlane.xlu0 %878 }
 0x38d   : > { %2110 = vrcp.f32 %v879_v44 }
 0x38e   : > { %v882_v45 = vpop.xlane.xlu1 %881 }
 0x38f   : > { %2112 = vrcp.f32 %v882_v45 }
 0x392   : > { %v1016_v53 = vpop.permute.xlu1 %1015 }
 0x393   : > { %v1021_v15 = vsel %vm893_vm7, %v1016_v53, 0 }
 0x394   : > { %v1006_v46 = vpop.xlane.xlu0 %1005 }
 0x395   : > { %2114 = vrcp.f32 %v1006_v46  ;;  %v1888_v46 = vld [vmem:[%s2633_s16] ss:$0 sm:$0xff] }
 0x397   : > { %v2111_v47 = vpop.eup %2110 }
 0x398   : > { %v889_v48 = vpop.permute.xlu0 %888  ;;  %v885_v51 = vmul.f32 %v2111_v47, %v2095_v12 }
 0x399   : > { %v2113_v49 = vpop.eup %2112  ;;  %v895_v50 = vsel %vm893_vm7, %v889_v48, 0 }
 0x39a   : > { %v886_v52 = vmul.f32 %v2113_v49, %v2097_v14  ;;  %1959 = vmatpush3.bf16.msra.mxu0 %v895_v50 }
 0x39b   : > { %1970 = vmatprep.subr.bf16.mxu0 %v2174_v3 }
 0x39c   : > { %v887_v54 = vpack.c.bf16 %v886_v52, %v885_v51 }
 0x39e   : > { %1961 = vmatmul.mubr.msk.bf16.vlgmr.msra.gmra.mrb[4].mxu0 %vm863_vm5, %v887_v54 }
 0x39f   : > { %1971 = vmatpush3.bf16.msra.mxu0 %v1021_v15  ;;  %1972 = vmatprep.mubr.msk.bf16.mxu0 %vm2175_vm2, %v2174_v3  ;;  %v2115_v59 = vpop.eup %2114 }
 0x3a0   : > { %1982 = vmatprep.subr.bf16.mxu0 %v2174_v3  ;;  %v1012_v62 = vmul.f32 %v2115_v59, %v2451_v17 }
 0x3c3   : > { %v1009_v55 = vpop.xlane.xlu1 %1008 }
 0x3c4   : > { %2116 = vrcp.f32 %v1009_v55 }
 0x3c7   : > { %v1144_v56 = vpop.xlane.xlu1 %1143 }
 0x3c8   : > { %2118 = vrcp.f32 %v1144_v56 }
 0x3c9   : > { %v1141_v57 = vpop.xlane.xlu0 %1140 }
 0x3ca   : > { %2120 = vrcp.f32 %v1141_v57 }
 0x3cb   : > { %v1279_v58 = vpop.xlane.xlu1 %1278 }
 0x3cd   : > { %v1276_v60 = vpop.xlane.xlu0 %1275 }
 0x3ce   : > { %v2117_v61 = vpop.eup %2116  ;;  %2122 = vrcp.f32 %v1276_v60 }
 0x3cf   : > { %v1013_v63 = vmul.f32 %v2117_v61, %v2101_v34  ;;  %v1151_v0 = vpop.permute.xlu1 %1150  ;;  %2124 = vrcp.f32 %v1279_v58 }
 0x3d0   : > { %v1156_v4 = vsel %vm893_vm7, %v1151_v0, 0  ;;  %v2088_v0 = vld [vmem:[%s2344_s22] sm:$0xff]  }
 0x3d1   : > { %v1014_v1 = vpack.c.bf16 %v1013_v63, %v1012_v62  ;;  %v1286_v10 = vpop.permute.xlu0 %1285 }
 0x3d2   : > { %v2119_v2 = vpop.eup %2118  ;;  %v1291_v13 = vsel %vm893_vm7, %v1286_v10, 0 }
 0x3d3   : > { %1973 = vmatmul.mubr.msk.bf16.vlgmr.msra.gmra.mrb[8].mxu0 %vm863_vm5, %v1014_v1  ;;  %v1148_v9 = vmul.f32 %v2119_v2, %v2458_v36  ;;  %v2089_v1 = vld [vmem:[%s2344_s22 + $0x8] sm:$0xff]   ;;  %v2090_v2 = vld [vmem:[%s2358_s0] sm:$0xff]  }
 0x3d4   : > { %v2121_v7 = vpop.eup %2120  ;;  %1983 = vmatpush3.bf16.msra.mxu0 %v1156_v4  ;;  %1984 = vmatprep.mubr.msk.bf16.mxu0 %vm2175_vm2, %v2174_v3  ;;  %v2091_v4 = vld [vmem:[%s2358_s0 + $0x8] sm:$0xff]  }
 0x3d5   : > { %v1147_v8 = vmul.f32 %v2121_v7, %v2105_v37  ;;  %1994 = vmatprep.subr.bf16.mxu0 %v2174_v3 }
 0x3d7   : > { %v1149_v11 = vpack.c.bf16 %v1148_v9, %v1147_v8 }
 0x3d8   : > { %v2123_v12 = vpop.eup %2122 }
 0x3d9   : > { %v2125_v14 = vpop.eup %2124  ;;  %v1282_v16 = vmul.f32 %v2123_v12, %v2465_v41 }
 0x3da   : > { %v1283_v17 = vmul.f32 %v2125_v14, %v2462_v39  ;;  %v1892_v14 = vld [vmem:[%s2634_s21] ss:$0 sm:$0xff] }
 0x3db   : > { %1985 = vmatmul.mubr.msk.bf16.vlgmr.msra.gmra.mrb[12].mxu0 %vm863_vm5, %v1149_v11 }
 0x3dc   : > { %1995 = vmatpush3.bf16.msra.mxu0 %v1291_v13  ;;  %1996 = vmatprep.mubr.msk.bf16.mxu0 %vm2175_vm2, %v2174_v3  ;;  %v1284_v18 = vpack.c.bf16 %v1283_v17, %v1282_v16 }
 0x3dd   : > { %2008 = vmatprep.subr.bf16.mxu0 %v2174_v3 }
 0x3e3   : > { %1997 = vmatmul.mubr.msk.bf16.vlgmr.msra.gmra.mrb[16].mxu0 %vm863_vm5, %v1284_v18 }
 0x3e4   : > { %2012 = vmatprep.mubr.msk.bf16.mxu0 %vm2175_vm2, %v2174_v3  ;;  %2009 = vmatpush3.bf16.msra.mxu0 %v2088_v0  ;;  %v1905_v0 = vld [vmem:[%s707_s8] ss:$0 sm:$0xff] }
 0x3e5   : > { %2010 = vmatprep.subr.bf16.mxu0 %v2174_v3 }
 0x3e8   : > { %2011 = vmatpush3.bf16.msra.mxu0 %v2089_v1 }
 0x471   : > { %v931_v19 = vpop.f32.mrb[4].mxu0 }
 0x472   : > { %938 = vst.msk [vmem:[#allocation2] sm:$0xff] %vm815_vm4, %v931_v19  ;;  %v1962_v20 = vpop.f32.mrb[5].mxu0 }
 0x473   : > { %v934_v21 = vpop.f32.mrb[6].mxu0  ;;  %v1893_v20 = vld [vmem:[%s2636_s27] ss:$0 sm:$0xff] }
 0x474   : > { %940 = vst.msk [vmem:[#allocation2 + $0x8] sm:$0x3] %vm939_vm8, %v934_v21  ;;  %v1963_v22 = vpop.f32.mrb[7].mxu0 }
 0x4a6   : > { %v1057_v23 = vpop.f32.mrb[8].mxu0 }
 0x4a7   : > { %1066 = vrot.lane.b32.xlu1 %v1057_v23, %s2187_s17  ;;  %v1974_v24 = vpop.f32.mrb[9].mxu0 }
 0x4a8   : > { %v1060_v25 = vpop.f32.mrb[10].mxu0 }
 0x4a9   : > { %1068 = vrot.lane.b32.xlu0 %v1060_v25, %s2187_s17  ;;  %v1975_v26 = vpop.f32.mrb[11].mxu0  ;;  %v2092_v25 = vld [vmem:[%s2358_s0 + $0x10] sm:$0xff]  }
 0x4aa   : > { %v2093_v26 = vld [vmem:[%s2358_s0 + $0x18] sm:$0xff]  }
 0x4ae   : > { %v1192_v28 = vpop.f32.mrb[12].mxu0 }
 0x4af   : > { %1201 = vrot.lane.b32.xlu1 %v1192_v28, %s2188_s23  ;;  %v1986_v30 = vpop.f32.mrb[13].mxu0 }
 0x4b0   : > { %v1195_v31 = vpop.f32.mrb[14].mxu0 }
 0x4b1   : > { %1203 = vrot.lane.b32.xlu0 %v1195_v31, %s2188_s23  ;;  %v1987_v32 = vpop.f32.mrb[15].mxu0 }
 0x4b6   : > { %v1327_v33 = vpop.f32.mrb[16].mxu0 }
 0x4b7   : > { %1336 = vrot.lane.b32.xlu1 %v1327_v33, %s2189_s28  ;;  %v1998_v34 = vpop.f32.mrb[17].mxu0 }
 0x4b8   : > { %v1330_v35 = vpop.f32.mrb[18].mxu0 }
 0x4b9   : > { %1338 = vrot.lane.b32.xlu0 %v1330_v35, %s2189_s28  ;;  %v1999_v36 = vpop.f32.mrb[19].mxu0 }
 0x519   : > { %v1067_v37 = vpop.permute.xlu1 %1066 }
 0x51a   : > { %1073 = vst.msk [vmem:[#allocation2] sm:$0xff] %vm1072_vm9, %v1067_v37 }
 0x51b   : > { %v1069_v38 = vpop.permute.xlu0 %1068 }
 0x51c   : > { %1075 = vst.msk [vmem:[#allocation2 + $0x8] sm:$0x3] %vm1074_vm10, %v1069_v38 }
 0x521   : > { %v1202_v39 = vpop.permute.xlu1 %1201 }
 0x522   : > { %1208 = vst.msk [vmem:[#allocation2] sm:$0xff] %vm1207_vm11, %v1202_v39 }
 0x523   : > { %v1204_v40 = vpop.permute.xlu0 %1203 }
 0x524   : > { %1210 = vst.msk [vmem:[#allocation2 + $0x8] sm:$0x3] %vm1209_vm12, %v1204_v40 }
 0x529   : > { %v1337_v41 = vpop.permute.xlu1 %1336 }
 0x52a   : > { %1343 = vst.msk [vmem:[#allocation2] sm:$0xff] %vm1342_vm13, %v1337_v41 }
 0x52b   : > { %v1339_v42 = vpop.permute.xlu0 %1338 }
 0x52c   : > { %1345 = vst.msk [vmem:[#allocation2 + $0x8] sm:$0x3] %vm1344_vm14, %v1339_v42 }
 0x531   : > { %v1346_v43 = vld [vmem:[#allocation2] sm:$0xff] }
 0x533   : > { %v1347_v44 = vld [vmem:[#allocation2 + $0x8] sm:$0x3] }
 0x534   : > { %v1348_v45 = vpack.c.bf16 %v1347_v44, %v1346_v43 }
 0x536   : > { %2005 = vmatmul.mubr.msk.bf16.vlgmr.msra.gmra.mrb[16].mxu1 %vm761_vm3, %v1348_v45 }
 0x537   : > { %2024 = vmatprep.mubr.msk.bf16.mxu1 %vm2175_vm2, %v2174_v3  ;;  %2017 = vmatpush3.bf16.msra.mxu1 %v2090_v2 }
 0x538   : > { %2018 = vmatprep.subr.bf16.mxu1 %v2174_v3 }
 0x53b   : > { %2019 = vmatpush3.bf16.msra.mxu1 %v2091_v4 }
 0x53c   : > { %2020 = vmatprep.subr.bf16.mxu1 %v2174_v3 }
 0x53f   : > { %2021 = vmatpush3.bf16.msra.mxu1 %v2092_v25 }
 0x540   : > { %2022 = vmatprep.subr.bf16.mxu1 %v2174_v3  ;;  %v1898_v3 = vld [vmem:[%s701_s29] ss:$0 sm:$0xff] }
 0x543   : > { %2023 = vmatpush3.bf16.msra.mxu1 %v2093_v26 }
 0x609   : > { %v1404_v47 = vpop.f32.mrb[16].mxu1 }
 0x60a   : > { %v1405_v48 = vadd.f32 %v1888_v46, %v1404_v47  ;;  %v2006_v49 = vpop.f32.mrb[17].mxu1 }
 0x60b   : > { %v1407_v50 = vpop.f32.mrb[18].mxu1 }
 0x60c   : > { %v1408_v51 = vadd.f32 %v1888_v46, %v1407_v50  ;;  %v2007_v52 = vpop.f32.mrb[19].mxu1  ;;  %v1411_v53 = vadd.f32 %v1405_v48, %v2381_v5 }
 0x60e   : > { %v1415_v54 = vsel %vm761_vm3, %v1411_v53, 0.0  ;;  %v1412_v15 = vadd.f32 %v1408_v51, %v2384_v6 }
 0x60f   : > { %1416 = vadd.xlane.f32.xlu1 %v1415_v54 }
 0x610   : > { %v1419_v55 = vsel %vm1418_vm15, %v1412_v15, 0.0 }
 0x611   : > { %1420 = vadd.xlane.f32.xlu0 %v1419_v55 }
 0x69c   : > { %v1417_v56 = vpop.xlane.xlu1 %1416 }
 0x69d   : > { %v1423_v57 = vmul.f32 0.03125, %v1417_v56 }
 0x69e   : > { %v1421_v58 = vpop.xlane.xlu0 %1420 }
 0x69f   : > { %v1425_v59 = vsub.f32 %v1411_v53, %v1423_v57  ;;  %v1424_v60 = vmul.f32 0.03125, %v1421_v58 }
 0x6a1   : > { %v1426_v61 = vsub.f32 %v1412_v15, %v1424_v60  ;;  %v1427_v5 = vmul.f32 %v1425_v59, %v1425_v59 }
 0x6a3   : > { %v1429_v62 = vsel %vm761_vm3, %v1427_v5, 0.0  ;;  %v1428_v63 = vmul.f32 %v1426_v61, %v1426_v61 }
 0x6a4   : > { %1430 = vadd.xlane.f32.xlu0 %v1429_v62  ;;  %v1904_v62 = vld [vmem:[%s704_s3] ss:$0 sm:$0xff] }
 0x6a5   : > { %v1432_v6 = vsel %vm1418_vm15, %v1428_v63, 0.0 }
 0x6a6   : > { %1433 = vadd.xlane.f32.xlu1 %v1432_v6 }
 0x731   : > { %v1431_v7 = vpop.xlane.xlu0 %1430 }
 0x732   : > { %v1435_v8 = vmul.f32 0.03125, %v1431_v7 }
 0x733   : > { %v1434_v9 = vpop.xlane.xlu1 %1433 }
 0x734   : > { %v1437_v10 = vadd.f32 1e-05, %v1435_v8  ;;  %v1436_v11 = vmul.f32 0.03125, %v1434_v9 }
 0x736   : > { %2126 = vrsqrt.f32 %v1437_v10  ;;  %v1438_v12 = vadd.f32 1e-05, %v1436_v11 }
 0x738   : > { %2128 = vrsqrt.f32 %v1438_v12 }
 0x740   : > { %v2127_v13 = vpop.eup %2126 }
 0x741   : > { %v1441_v16 = vmul.f32 %v2127_v13, %v1425_v59 }
 0x742   : > { %v2129_v17 = vpop.eup %2128 }
 0x743   : > { %v1449_v18 = vmul.f32 %v1892_v14, %v1441_v16  ;;  %v1442_v19 = vmul.f32 %v2129_v17, %v1426_v61 }
 0x745   : > { %v1450_v21 = vmul.f32 %v1892_v14, %v1442_v19  ;;  %v1457_v22 = vadd.f32 %v1893_v20, %v1449_v18 }
 0x747   : > { %v1458_v23 = vadd.f32 %v1893_v20, %v1450_v21 }
 0x749   : > { %v1459_v24 = vpack.c.bf16 %v1458_v23, %v1457_v22 }
 0x74b   : > { %2013 = vmatmul.mubr.msk.bf16.vlgmr.msra.gmra.mrb[20].mxu0 %vm761_vm3, %v1459_v24 }
 0x81e   : > { %v1520_v28 = vpop.f32.mrb[20].mxu0 }
 0x81f   : > { %v1521_v29 = vadd.f32 %v1894_v27, %v1520_v28  ;;  %v2014_v30 = vpop.f32.mrb[21].mxu0 }
 0x820   : > { %v1523_v31 = vpop.f32.mrb[22].mxu0 }
 0x821   : > { %v1524_v32 = vadd.f32 %v1894_v27, %v1523_v31  ;;  %v2015_v33 = vpop.f32.mrb[23].mxu0  ;;  %v1527_v34 = vmax.f32 %v1521_v29, 0.0 }
 0x823   : > { %v1528_v35 = vmax.f32 %v1524_v32, 0.0 }
 0x825   : > { %v1529_v36 = vpack.c.bf16 %v1528_v35, %v1527_v34 }
 0x827   : > { %2025 = vmatmul.mubr.msk.bf16.vlgmr.msra.gmra.mrb[20].mxu1 %vm1569_vm0, %v1529_v36 }
 0x8fa   : > { %v1607_v37 = vpop.f32.mrb[20].mxu1 }
 0x8fb   : > { %v1608_v38 = vadd.f32 %v1898_v3, %v1607_v37  ;;  %v2026_v39 = vpop.f32.mrb[21].mxu1 }
 0x8fc   : > { %v1610_v40 = vpop.f32.mrb[22].mxu1 }
 0x8fd   : > { %v1611_v41 = vadd.f32 %v1898_v3, %v1610_v40  ;;  %v2027_v42 = vpop.f32.mrb[23].mxu1  ;;  %v1614_v43 = vadd.f32 %v1608_v38, %v1457_v22 }
 0x8ff   : > { %v1618_v44 = vsel %vm761_vm3, %v1614_v43, 0.0  ;;  %v1615_v45 = vadd.f32 %v1611_v41, %v1458_v23 }
 0x900   : > { %1619 = vadd.xlane.f32.xlu0 %v1618_v44 }
 0x901   : > { %v1621_v46 = vsel %vm1418_vm15, %v1615_v45, 0.0 }
 0x902   : > { %1622 = vadd.xlane.f32.xlu1 %v1621_v46 }
 0x98d   : > { %v1620_v47 = vpop.xlane.xlu0 %1619 }
 0x98e   : > { %v1624_v48 = vmul.f32 0.03125, %v1620_v47 }
 0x98f   : > { %v1623_v49 = vpop.xlane.xlu1 %1622 }
 0x990   : > { %v1626_v50 = vsub.f32 %v1614_v43, %v1624_v48  ;;  %v1625_v51 = vmul.f32 0.03125, %v1623_v49 }
 0x992   : > { %v1627_v52 = vsub.f32 %v1615_v45, %v1625_v51  ;;  %v1628_v53 = vmul.f32 %v1626_v50, %v1626_v50 }
 0x994   : > { %v1630_v54 = vsel %vm761_vm3, %v1628_v53, 0.0  ;;  %v1629_v15 = vmul.f32 %v1627_v52, %v1627_v52 }
 0x995   : > { %1631 = vadd.xlane.f32.xlu0 %v1630_v54 }
 0x996   : > { %v1633_v55 = vsel %vm1418_vm15, %v1629_v15, 0.0 }
 0x997   : > { %1634 = vadd.xlane.f32.xlu1 %v1633_v55 }
 0xa22   : > { %v1632_v56 = vpop.xlane.xlu0 %1631 }
 0xa23   : > { %v1636_v57 = vmul.f32 0.03125, %v1632_v56 }
 0xa24   : > { %v1635_v58 = vpop.xlane.xlu1 %1634 }
 0xa25   : > { %v1638_v59 = vadd.f32 1e-05, %v1636_v57  ;;  %v1637_v60 = vmul.f32 0.03125, %v1635_v58 }
 0xa27   : > { %2130 = vrsqrt.f32 %v1638_v59  ;;  %v1639_v61 = vadd.f32 1e-05, %v1637_v60 }
 0xa29   : > { %2132 = vrsqrt.f32 %v1639_v61 }
 0xa31   : > { %v2131_v5 = vpop.eup %2130 }
 0xa32   : > { %v1642_v63 = vmul.f32 %v2131_v5, %v1626_v50 }
 0xa33   : > { %v2133_v6 = vpop.eup %2132 }
 0xa34   : > { %v1650_v1 = vmul.f32 %v1904_v62, %v1642_v63  ;;  %v1643_v2 = vmul.f32 %v2133_v6, %v1627_v52 }
 0xa36   : > { %v1658_v4 = vadd.f32 %v1905_v0, %v1650_v1  ;;  %v1651_v7 = vmul.f32 %v1904_v62, %v1643_v2 }
 0xa38   : > { %1660 = vst.msk [vmem:[%s2371_s10] sm:$0xff] %vm761_vm3, %v1658_v4  ;;  %v1659_v8 = vadd.f32 %v1905_v0, %v1651_v7 }
 0xa3a   : > { %1661 = vst.msk [vmem:[%s2371_s10 + $0x8] sm:$0x3] %vm1418_vm15, %v1659_v8 }
 0xa3b PF: > { %s2641_s30 = sld [smem:[#allocation6_spill]]  ;;  %s2642_s18 = sld [smem:[#allocation4_spill]] }
 0xa3c   : > { %s2643_s19 = sld [smem:[#allocation5_spill]]  ;;  %s2644_s20 = sld [smem:[#allocation7_spill]] }
 0xa3d   : > { %s2645_s21 = sld [smem:[#allocation8_spill]] }
 0xa41   : > { %s25_s22 = sadd.s32 1, %s2641_s30  }
 0xa42   : > { %p22_p8 = scmp.ge.s32.totalorder %s25_s22, 6  }
 0xa44   :  { %24 = sbr.rel (!%p22_p8) target bundleno = 12 (0xc), region = 153 }

// kernel: sep_seq2seq_transformer_forward.4
= control target key start
LH: loop header
LB: loop body
LE: loop exit
PB: predicated region body
PF: predicated region fallthrough
CT: control target
= control target key end

     0   :  { %s3561_s29 = smov 0   ;;  %s3567_s30 = smov 0   ;;  %s4030_s0 = inlined_call_operand.vmem [shape: f32[2,8,32], index: 0, kind: input, shape index: {}]   ;;  %s4031_s1 = inlined_call_operand.vmem [shape: f32[2,10,32], index: 1, kind: input, shape index: {}]   ;;  %s4032_s2 = inlined_call_operand.vmem [shape: f32[8,8], index: 2, kind: input, shape index: {}]   ;;  %s4033_s3 = inlined_call_operand.vmem [shape: f32[2,1,8], index: 3, kind: input, shape index: {}]   ;;  %s4034_s4 = inlined_call_operand.vmem [shape: f32[2,1,10], index: 4, kind: input, shape index: {}]   ;;  %s4035_s5 = inlined_call_operand.vmem [shape: bf16[2,32,96], index: 5, kind: input, shape index: {}]   ;;  %s4036_s6 = inlined_call_operand.vmem [shape: f32[2,1,96], index: 6, kind: input, shape index: {}]   ;;  %s4037_s7 = inlined_call_operand.vmem [shape: bf16[2,32,32], index: 7, kind: input, shape index: {}]   ;;  %s4038_s8 = inlined_call_operand.vmem [shape: f32[2,1,32], index: 8, kind: input, shape index: {}]   ;;  %s4039_s9 = inlined_call_operand.vmem [shape: bf16[2,32,32], index: 9, kind: input, shape index: {}]   ;;  %s4040_s10 = inlined_call_operand.vmem [shape: f32[2,1,32], index: 10, kind: input, shape index: {}]   ;;  %s4041_s11 = inlined_call_operand.vmem [shape: bf16[2,32,64], index: 11, kind: input, shape index: {}]   ;;  %s4042_s12 = inlined_call_operand.vmem [shape: f32[2,1,64], index: 12, kind: input, shape index: {}]   ;;  %s4043_s13 = inlined_call_operand.vmem [shape: bf16[2,32,32], index: 13, kind: input, shape index: {}]   ;;  %s4044_s14 = inlined_call_operand.vmem [shape: f32[2,1,32], index: 14, kind: input, shape index: {}]   ;;  %s4045_s15 = inlined_call_operand.vmem [shape: f32[2,1,32], index: 15, kind: input, shape index: {}, may-alias: {15,17,19}]   ;;  %s4046_s16 = inlined_call_operand.vmem [shape: f32[2,1,32], index: 16, kind: input, shape index: {}, may-alias: {16,18,20}]   ;;  %s4047_s17 = inlined_call_operand.vmem [shape: f32[2,1,32], index: 17, kind: input, shape index: {}, may-alias: {15,17,19}]   ;;  %s4048_s18 = inlined_call_operand.vmem [shape: f32[2,1,32], index: 18, kind: input, shape index: {}, may-alias: {16,18,20}]   ;;  %s4049_s19 = inlined_call_operand.vmem [shape: f32[2,1,32], index: 19, kind: input, shape index: {}, may-alias: {15,17,19}]   ;;  %s4050_s20 = inlined_call_operand.vmem [shape: f32[2,1,32], index: 20, kind: input, shape index: {}, may-alias: {16,18,20}]   ;;  %s4051_s21 = inlined_call_operand.vmem [shape: bf16[2,32,64], index: 21, kind: input, shape index: {}]   ;;  %s4052_s22 = inlined_call_operand.vmem [shape: f32[2,1,64], index: 22, kind: input, shape index: {}]   ;;  %s4053_s23 = inlined_call_operand.vmem [shape: bf16[2,64,32], index: 23, kind: input, shape index: {}]   ;;  %s4054_s24 = inlined_call_operand.vmem [shape: f32[2,1,32], index: 24, kind: input, shape index: {}]   ;;  %s4055_s25 = inlined_call_operand.vmem [shape: f32[2,8,32], index: 25, kind: output, shape index: {}]  }
   0x1   :  { %4065 = sst [smem:[#allocation13_spill]] %s4030_s0 }
   0x2   :  { %4066 = sst [smem:[#allocation14_spill]] %s4031_s1 }
   0x3   :  { %4067 = sst [smem:[#allocation15_spill]] %s4032_s2  ;;  %s3563_s2 = smov 0  }
   0x4   :  { %4068 = sst [smem:[#allocation16_spill]] %s4033_s3 }
   0x5   :  { %4069 = sst [smem:[#allocation17_spill]] %s4034_s4 }
   0x6   :  { %4070 = sst [smem:[#allocation18_spill]] %s4035_s5 }
   0x7   :  { %4071 = sst [smem:[#allocation19_spill]] %s4036_s6  ;;  %s3565_s6 = smov 0  }
   0x8   :  { %4072 = sst [smem:[#allocation20_spill]] %s4037_s7  ;;  %s3569_s7 = smov 0  }
   0x9   :  { %4073 = sst [smem:[#allocation21_spill]] %s4038_s8 }
   0xa   :  { %4074 = sst [smem:[#allocation22_spill]] %s4039_s9 }
   0xb   :  { %4075 = sst [smem:[#allocation23_spill]] %s4040_s10 }
   0xc   :  { %4076 = sst [smem:[#allocation24_spill]] %s4041_s11 }
   0xd   :  { %4077 = sst [smem:[#allocation25_spill]] %s4043_s13 }
   0xe   :  { %4078 = sst [smem:[#allocation26_spill]] %s4044_s14 }
   0xf   :  { %4079 = sst [smem:[#allocation27_spill]] %s4047_s17 }
  0x10   :  { %4080 = sst [smem:[#allocation28_spill]] %s4048_s18 }
  0x11   :  { %4081 = sst [smem:[#allocation29_spill]] %s4050_s20 }
  0x12   :  { %4082 = sst [smem:[#allocation30_spill]] %s4051_s21 }
  0x13   :  { %4083 = sst [smem:[#allocation31_spill]] %s4052_s22 }
  0x14   :  { %4084 = sst [smem:[#allocation32_spill]] %s4053_s23 }
  0x15   :  { %4085 = sst [smem:[#allocation33_spill]] %s4054_s24 }
  0x16   :  { %4086 = sst [smem:[#allocation34_spill]] %s4055_s25 }
  0x17 LB: > { %4087 = sst [smem:[#allocation3_spill]] %s3397_s29  ;;  %s44_s3 = sadd.s32 1, %s3405_s6  ;;  %s3413_s7 = sphi %s3569_s7, %s35_s7   ;;  %s3409_s30 = sphi %s3567_s30, %s4152_s30   ;;  %s3405_s6 = sphi %s3565_s6, %s4151_s6   ;;  %s3401_s2 = sphi %s3563_s2, %s4150_s2   ;;  %s3397_s29 = sphi %s3561_s29, %s4149_s29  }
  0x18   : > { %4088 = sst [smem:[#allocation4_spill]] %s3405_s6  ;;  %s47_s26 = sadd.s32 1, %s3409_s30 }
  0x19   : > { %4089 = sst [smem:[#allocation5_spill]] %s3409_s30  ;;  %p45_p0 = scmp.ge.s32.totalorder %s44_s3, 2 }
  0x1a   : > { %4090 = sst [smem:[#allocation6_spill]] %s3413_s7  ;;  %p2970_p1 = scmp.ge.s32.totalorder %s3413_s7, 1 }
  0x1b   : > { %p898_p2 = scmp.lt.s32.totalorder %s3413_s7, 5  ;;  %s4154_s3 = smov (%p45_p0, %s44_s3), 0 }
  0x1c   : > { %4091 = sst [smem:[#allocation7_spill]] %s4154_s3  ;;  %s4156_s26 = smov (!%p45_p0, %s47_s26), %s3409_s30 }
  0x1d   : > { %p899_p3 = pnand %p2970_p1, %p898_p2  ;;  %p49_p4 = scmp.ge.s32.totalorder %s4156_s26, 2 }
  0x1f   : > { %s4158_s26 = smov (%p49_p4, %s4156_s26), 0  ;;  %902 = sbr.rel (%p899_p3) target bundleno = 4379 (0x111b), region = 120 }
  0x20   : > { %4092 = sst [smem:[#allocation8_spill]] %s4158_s26 }
  0x26   : > { %p1049_p5 = scmp.lt.s32.totalorder %s3401_s2, 1  ;;  %p1064_p6 = scmp.lt.s32.totalorder %s3397_s29, 1 }
  0x27   : > { %s4094_s9 = sld [smem:[#allocation13_spill]]  ;;  %s4095_s3 = sld [smem:[#allocation14_spill]] }
  0x28   : > { %s4160_s2 = smov (!%p1049_p5, %s3401_s2), 1  ;;  %s4106_s11 = sld [smem:[#allocation24_spill]] }
  0x29   : > { %4093 = sst [smem:[#allocation9_spill]] %s4160_s2  ;;  %s2971_s8 = sshll.u32 %s4160_s2, 3 }
  0x2a   : > { %s3597_s1 = scalar_select %p1064_p6, %s3397_s29, 1 }
  0x2b   : > { %s3046_s27 = sshll.u32 %s4160_s2, 4  ;;  %s4101_s29 = sld [smem:[#allocation20_spill]] }
  0x2c   : > { %s3047_s4 = sshll.u32 %s3597_s1, 4  ;;  %s4107_s13 = sld [smem:[#allocation25_spill]] }
  0x2d   : > { %s1052_s5 = scalar_lea.vmem %s4094_s9, %s2971_s8  ;;  %s3607_s30 = scalar_lea.vmem %s4095_s3, %s3046_s27 }
  0x2e   : > { %4096 = sst [smem:[#allocation10_spill]] %s3607_s30  ;;  %s4100_s27 = sld [smem:[#allocation18_spill]] }
  0x2f   : > { %s4104_s9 = sld [smem:[#allocation22_spill]]  ;;  %s3648_s7 = scalar_lea.vmem %s4106_s11, %s3047_s4 }
  0x30   : > { %s3053_s17 = sshll.u32 %s3597_s1, 5  ;;  %s4115_s24 = sld [smem:[#allocation32_spill]] }
  0x31   : > { %s3630_s25 = scalar_lea.vmem %s4101_s29, %s3047_s4  ;;  %s4116_s28 = sld [smem:[#allocation33_spill]] }
  0x32   : > { %4102 = sst [smem:[#allocation11_spill]] %s3630_s25  ;;  %s3657_s2 = scalar_lea.vmem %s4107_s13, %s3047_s4 }
  0x33   : > { %4108 = sst [smem:[#allocation12_spill]] %s3657_s2  ;;  %s4117_s0 = sld [smem:[#allocation34_spill]] }
  0x34   : > { %s3625_s30 = scalar_lea.vmem %s4100_s27, %s3047_s4  ;;  %s4113_s27 = sld [smem:[#allocation30_spill]] }
  0x35   : > { %s3639_s20 = scalar_lea.vmem %s4104_s9, %s3047_s4  ;;  %s4114_s25 = sld [smem:[#allocation31_spill]] }
  0x36   : > { %s3700_s18 = scalar_lea.vmem %s4115_s24, %s3053_s17  ;;  %s4118_s21 = sld [smem:[#allocation3_spill]] }
  0x37   : > { %s1137_s26 = scalar_lea.vmem %s4116_s28, %s3597_s1 }
  0x39   : > { %s3709_s14 = scalar_lea.vmem %s4117_s0, %s2971_s8 }
  0x3a   : > { %s3690_s6 = scalar_lea.vmem %s4113_s27, %s3047_s4 }
  0x3b   : > { %s1129_s29 = scalar_lea.vmem %s4114_s25, %s3597_s1 }
  0x3c   : > { %p2989_p7 = scmp.ne.s32.totalorder %s4118_s21, 0 }
  0x3d   : > { %v1147_v0 = vld [vmem:[%s1052_s5] sm:$0xff] (!%p2989_p7)  ;;  %vm1148_vm0 = vcmask (!%p2989_p7), 261120  }
  0x3e   : > { %1146 = sbr.rel (%p2989_p7) target bundleno = 69 (0x45), region = 124  ;;  %1149 = vst.msk [vmem:[%s3709_s14] sm:$0xff] (!%p2989_p7), %vm1148_vm0, %v1147_v0 }
  0x45 PF: > { %v3321_v1 = vld [vmem:[%s3625_s30] sm:$0xff]   ;;  %v3415_v2 = vmov 0.0   ;;  %v3322_v3 = vld [vmem:[%s3625_s30 + $0x8] sm:$0xff]   ;;  %vm3416_vm1 = vmmov 0   ;;  %vm1187_vm2 = vcmask 261120   ;;  %s4119_s30 = sld [smem:[#allocation19_spill]] }
  0x46   : > { %3109 = vmatprep.subr.bf16.mxu1 %v3415_v2  ;;  %3123 = vmatprep.subr.bf16.mxu0 %v3415_v2  ;;  %v3720_v4 = vld [vmem:[%s3709_s14] sm:$0xff]  ;;  %s3417_s5 = smov 120   ;;  %s3418_s4 = smov 96   ;;  %vm1240_vm3 = vcmask 64512   ;;  %vm1304_vm4 = vcmask 1043456   ;;  %vm1463_vm5 = vcmask 130112  }
  0x47   : > { %3110 = vmatpush3.bf16.msra.mxu1 %v3321_v1  ;;  %3113 = vmatprep.mubr.msk.bf16.mxu1 %vm3416_vm1, %v3415_v2  ;;  %v1163_v5 = vpack.c.bf16 %v3720_v4, %v3720_v4  ;;  %s3419_s24 = smov 80   ;;  %s3420_s28 = smov 88   ;;  %vm1579_vm6 = vcmask 195712   ;;  %vm1695_vm7 = vcmask 261312   ;;  %vm1985_vm8 = vcmask 80896  }
  0x48   : > { %3111 = vmatprep.subr.bf16.mxu1 %v3415_v2  ;;  %3125 = vmatprep.mubr.msk.bf16.mxu0 %vm3416_vm1, %v3415_v2  ;;  %s3421_s0 = smov 72   ;;  %s3422_s27 = smov 112   ;;  %vm2004_vm9 = vcmask 1044480   ;;  %vm2596_vm10 = vcmask 523264  }
  0x49   : > { %s3423_s10 = smov 104   ;;  %s4121_s25 = sld [smem:[#allocation9_spill]] }
  0x4a   : > { %s4122_s13 = sld [smem:[#allocation15_spill]]  ;;  %s4123_s3 = sld [smem:[#allocation16_spill]] }
  0x4b   : > { %3112 = vmatpush3.bf16.msra.mxu1 %v3322_v3  ;;  %s4120_s8 = scalar_lea.vmem %s4119_s30, %s3597_s1  ;;  %s3424_s11 = smov 56  }
  0x4c   : > { %3117 = vmatprep.subr.bf16.mxu1 %v3415_v2  ;;  %v2991_v6 = vld [vmem:[%s4120_s8] ss:$0 sm:$0xff]  ;;  %s3425_s17 = smov 64   ;;  %s3426_s30 = smov 40  }
  0x4d   : > { %s3427_s8 = smov 48   ;;  %s4125_s23 = sld [smem:[#allocation11_spill]] }
  0x4e   : > { %3114 = vmatmul.mubr.msk.bf16.vlgmr.msra.gmra.mrb[0].mxu1 %vm1187_vm2, %v1163_v5  ;;  %s3428_s22 = smov 8   ;;  %s3430_s2 = smov 24  }
  0x4f   : > { %3119 = vmatprep.mubr.msk.bf16.mxu1 %vm3416_vm1, %v3415_v2 }
  0x50   : > { %v1153_v24 = vld [vmem:[%s4122_s13] sm:$0xff]  ;;  %s4124_s21 = scalar_lea.vmem %s4123_s3, %s4121_s25  ;;  %s3429_s13 = smov 16  }
  0x51   : > { %v2990_v25 = vld [vmem:[%s4124_s21] ss:$0 sm:$0xff]  ;;  %s4126_s21 = sld [smem:[#allocation21_spill]]  ;;  %s4130_s3 = scalar_lea.vmem %s4046_s16, %s3597_s1 }
  0x52   : > { %v1161_v26 = vadd.f32 %v2990_v25, %v1153_v24 }
 0x121   : > { %v1225_v7 = vpop.f32.mrb[0].mxu1 }
 0x122   : > { %v1226_v8 = vadd.f32 %v2991_v6, %v1225_v7  ;;  %v3115_v9 = vpop.f32.mrb[1].mxu1 }
 0x123   : > { %v1228_v10 = vpop.f32.mrb[2].mxu1 }
 0x124   : > { %v3736_v11 = vpack.c.bf16 %v1226_v8, %v1226_v8  ;;  %v3116_v12 = vpop.f32.mrb[3].mxu1 }
 0x126   : > { %1349 = vrot.lane.b32.xlu1 %v3736_v11, %s3417_s5  ;;  %1238 = vrot.lane.b32.xlu0 %v3736_v11, %s3418_s4 }
 0x12a   : > { %1467 = vrot.lane.b32.xlu1 %v3736_v11, %s3419_s24  ;;  %1351 = vrot.lane.b32.xlu0 %v3736_v11, %s3420_s28 }
 0x12e   : > { %1583 = vrot.lane.b32.xlu1 %v3736_v11, %s3421_s0  ;;  %1465 = vrot.lane.b32.xlu0 %v3736_v11, %s3422_s27 }
 0x132   : > { %1581 = vrot.lane.b32.xlu0 %v3736_v11, %s3423_s10 }
 0x198   : > { %v1239_v13 = vpop.permute.xlu0 %1238  ;;  %v1350_v16 = vpop.permute.xlu1 %1349 }
 0x199   : > { %v1245_v14 = vsel %vm1240_vm3, %v1239_v13, 0 }
 0x19a   : > { %3118 = vmatpush3.bf16.xpose.msra.mxu1 %v1245_v14 }
 0x19b   : > { %3129 = vmatprep.subr.bf16.mxu1 %v3415_v2 }
 0x19c   : > { %v1352_v15 = vpop.permute.xlu0 %1351  ;;  %v1468_v18 = vpop.permute.xlu1 %1467 }
 0x19d   : > { %v1357_v17 = vsel %vm1240_vm3, %v1352_v15, 0  ;;  %v1473_v19 = vsel %vm1240_vm3, %v1468_v18, 0 }
 0x1a0   : > { %v1584_v20 = vpop.permute.xlu1 %1583  ;;  %v1466_v21 = vpop.permute.xlu0 %1465 }
 0x1a1   : > { %3120 = vmatmul.mubr.msk.bf16.vlgmr.msra.gmra.mrb[4].mxu1 %vm1240_vm3, %v3736_v11  ;;  %v1589_v22 = vsel %vm1240_vm3, %v1584_v20, 0 }
 0x1a2   : > { %3130 = vmatpush3.bf16.xpose.msra.mxu1 %v1357_v17  ;;  %3131 = vmatprep.mubr.msk.bf16.mxu1 %vm3416_vm1, %v3415_v2 }
 0x1a3   : > { %3141 = vmatprep.subr.bf16.mxu1 %v3415_v2 }
 0x1a4   : > { %v1582_v23 = vpop.permute.xlu0 %1581 }
 0x1a9   : > { %3132 = vmatmul.mubr.msk.bf16.vlgmr.msra.gmra.mrb[8].mxu1 %vm1240_vm3, %v1350_v16 }
 0x1aa   : > { %3142 = vmatpush3.bf16.xpose.msra.mxu1 %v1473_v19  ;;  %3143 = vmatprep.mubr.msk.bf16.mxu1 %vm3416_vm1, %v3415_v2 }
 0x1ab   : > { %3153 = vmatprep.subr.bf16.mxu1 %v3415_v2 }
 0x1b1   : > { %3144 = vmatmul.mubr.msk.bf16.vlgmr.msra.gmra.mrb[12].mxu1 %vm1240_vm3, %v1466_v21 }
 0x1b2   : > { %3154 = vmatpush3.bf16.xpose.msra.mxu1 %v1589_v22  ;;  %3155 = vmatprep.mubr.msk.bf16.mxu1 %vm3416_vm1, %v3415_v2 }
 0x1b3   : > { %3165 = vmatprep.subr.bf16.mxu1 %v3415_v2 }
 0x1b9   : > { %3156 = vmatmul.mubr.msk.bf16.vlgmr.msra.gmra.mrb[16].mxu1 %vm1240_vm3, %v1582_v23 }
 0x1ba   : > { %3169 = vmatprep.mubr.msk.bf16.mxu1 %vm3416_vm1, %v3415_v2 }
 0x274   : > { %v1281_v27 = vpop.f32.mrb[4].mxu1 }
 0x275   : > { %v1282_v28 = vadd.f32 %v1281_v27, %v1161_v26  ;;  %v3121_v29 = vpop.f32.mrb[5].mxu1 }
 0x276   : > { %v1284_v30 = vpop.f32.mrb[6].mxu1 }
 0x277   : > { %v3122_v31 = vpop.f32.mrb[7].mxu1  ;;  %v1287_v32 = vsel %vm1240_vm3, %v1282_v28, -inf }
 0x278   : > { %1288 = vmax.xlane.f32.xlu1 %v1287_v32 }
 0x27c   : > { %v1393_v33 = vpop.f32.mrb[8].mxu1 }
 0x27d   : > { %v1394_v34 = vadd.f32 %v1393_v33, %v1161_v26  ;;  %v3133_v35 = vpop.f32.mrb[9].mxu1 }
 0x27e   : > { %v1396_v36 = vpop.f32.mrb[10].mxu1 }
 0x27f   : > { %v3134_v37 = vpop.f32.mrb[11].mxu1  ;;  %v1399_v38 = vsel %vm1240_vm3, %v1394_v34, -inf }
 0x280   : > { %1400 = vmax.xlane.f32.xlu0 %v1399_v38 }
 0x284   : > { %v1509_v39 = vpop.f32.mrb[12].mxu1 }
 0x285   : > { %v1510_v40 = vadd.f32 %v1509_v39, %v1161_v26  ;;  %v3145_v41 = vpop.f32.mrb[13].mxu1 }
 0x286   : > { %v1512_v42 = vpop.f32.mrb[14].mxu1  ;;  %v3323_v41 = vld [vmem:[%s4125_s23] sm:$0xff]  }
 0x287   : > { %v3146_v43 = vpop.f32.mrb[15].mxu1  ;;  %v1515_v44 = vsel %vm1240_vm3, %v1510_v40, -inf  ;;  %3166 = vmatpush3.bf16.msra.mxu1 %v3323_v41  ;;  %v3324_v42 = vld [vmem:[%s4125_s23 + $0x8] sm:$0xff]  }
 0x288   : > { %1516 = vmax.xlane.f32.xlu0 %v1515_v44  ;;  %3167 = vmatprep.subr.bf16.mxu1 %v3415_v2 }
 0x28b   : > { %3168 = vmatpush3.bf16.msra.mxu1 %v3324_v42 }
 0x28c   : > { %v1625_v45 = vpop.f32.mrb[16].mxu1  ;;  %3181 = vmatprep.subr.bf16.mxu1 %v3415_v2 }
 0x28d   : > { %v1626_v46 = vadd.f32 %v1625_v45, %v1161_v26  ;;  %v3157_v47 = vpop.f32.mrb[17].mxu1 }
 0x28e   : > { %v1628_v48 = vpop.f32.mrb[18].mxu1 }
 0x28f   : > { %v3158_v49 = vpop.f32.mrb[19].mxu1  ;;  %v1631_v50 = vsel %vm1240_vm3, %v1626_v46, -inf }
 0x290   : > { %1632 = vmax.xlane.f32.xlu1 %v1631_v50 }
 0x305   : > { %v1289_v51 = vpop.xlane.xlu1 %1288 }
 0x306   : > { %v1290_v52 = vsub.f32 %v1282_v28, %v1289_v51 }
 0x308   : > { %v1291_v53 = vmul.f32 1.442695, %v1290_v52 }
 0x30a   : > { %3337 = vpow2.f32 %v1291_v53 }
 0x30d   : > { %v1401_v54 = vpop.xlane.xlu0 %1400 }
 0x30e   : > { %v1402_v55 = vsub.f32 %v1394_v34, %v1401_v54 }
 0x310   : > { %v1403_v56 = vmul.f32 1.442695, %v1402_v55 }
 0x312   : > { %3339 = vpow2.f32 %v1403_v56 }
 0x314   : > { %v3338_v57 = vpop.eup %3337 }
 0x315   : > { %v1517_v58 = vpop.xlane.xlu0 %1516  ;;  %v1293_v59 = vsel %vm1240_vm3, %v3338_v57, 0.0 }
 0x316   : > { %v1518_v60 = vsub.f32 %v1510_v40, %v1517_v58  ;;  %1294 = vadd.xlane.f32.xlu0 %v1293_v59 }
 0x318   : > { %v1519_v61 = vmul.f32 1.442695, %v1518_v60 }
 0x31a   : > { %3341 = vpow2.f32 %v1519_v61 }
 0x31c   : > { %v3340_v62 = vpop.eup %3339 }
 0x31d   : > { %v1405_v63 = vsel %vm1240_vm3, %v3340_v62, 0.0  ;;  %v1633_v3 = vpop.xlane.xlu1 %1632 }
 0x31e   : > { %1406 = vadd.xlane.f32.xlu1 %v1405_v63  ;;  %v1634_v5 = vsub.f32 %v1626_v46, %v1633_v3 }
 0x320   : > { %v1635_v6 = vmul.f32 1.442695, %v1634_v5 }
 0x322   : > { %3343 = vpow2.f32 %v1635_v6 }
 0x324   : > { %v3342_v0 = vpop.eup %3341 }
 0x325   : > { %v1521_v1 = vsel %vm1240_vm3, %v3342_v0, 0.0 }
 0x326   : > { %1522 = vadd.xlane.f32.xlu0 %v1521_v1 }
 0x32c   : > { %v3344_v7 = vpop.eup %3343 }
 0x32d   : > { %v1637_v8 = vsel %vm1240_vm3, %v3344_v7, 0.0 }
 0x32f   : > { %1411 = vrot.lane.b32.xlu1 %v3736_v11, %s3424_s11  ;;  %s4127_s11 = scalar_lea.vmem %s4126_s21, %s3597_s1 }
 0x330   : > { %v3003_v56 = vld [vmem:[%s4127_s11] ss:$0 sm:$0xff]  ;;  %s4131_s11 = scalar_lea.vmem %s4042_s12, %s3597_s1 }
 0x33c   : > { %1299 = vrot.lane.b32.xlu0 %v3736_v11, %s3425_s17  ;;  %s4128_s17 = sld [smem:[#allocation10_spill]] }
 0x340   : > { %1643 = vrot.lane.b32.xlu0 %v3736_v11, %s3426_s30  ;;  %s4132_s30 = sld [smem:[#allocation23_spill]] }
 0x353   : > { %1638 = vadd.xlane.f32.xlu1 %v1637_v8  ;;  %v3326_v8 = vld [vmem:[%s3648_s7 + $0x8] sm:$0xff]  }
 0x364   : > { %1527 = vrot.lane.b32.xlu1 %v3736_v11, %s3427_s8  ;;  %s4129_s8 = scalar_lea.vmem %s4045_s15, %s3597_s1 }
 0x3a3   : > { %v1295_v9 = vpop.xlane.xlu0 %1294 }
 0x3a4   : > { %3345 = vrcp.f32 %v1295_v9  ;;  %v1151_v9 = vld [vmem:[%s4128_s17] sm:$0xff] }
 0x3ab   : > { %v1407_v10 = vpop.xlane.xlu1 %1406 }
 0x3ac   : > { %3347 = vrcp.f32 %v1407_v10 }
 0x3ae   : > { %v3346_v12 = vpop.eup %3345 }
 0x3af   : > { %v1297_v14 = vmul.f32 %v3346_v12, %v3338_v57  ;;  %v1412_v17 = vpop.permute.xlu1 %1411  ;;  %v3327_v12 = vld [vmem:[%s3639_s20] sm:$0xff]  }
 0x3b0   : > { %v1417_v20 = vsel %vm1304_vm4, %v1412_v17, 0 }
 0x3b1   : > { %v1298_v18 = vpack.c.bf16 %v1297_v14, %v1297_v14 }
 0x3b3   : > { %v1523_v13 = vpop.xlane.xlu0 %1522 }
 0x3b4   : > { %3349 = vrcp.f32 %v1523_v13  ;;  %v3328_v13 = vld [vmem:[%s3639_s20 + $0x8] sm:$0xff]   ;;  %s4141_s20 = sld [smem:[#allocation28_spill]] }
 0x3b6   : > { %v3348_v19 = vpop.eup %3347 }
 0x3b7   : > { %v1300_v15 = vpop.permute.xlu0 %1299  ;;  %v1409_v11 = vmul.f32 %v3348_v19, %v3340_v62 }
 0x3b8   : > { %v1306_v16 = vsel %vm1304_vm4, %v1300_v15, 0 }
 0x3b9   : > { %3124 = vmatpush3.bf16.msra.mxu0 %v1306_v16  ;;  %v1410_v21 = vpack.c.bf16 %v1409_v11, %v1409_v11 }
 0x3ba   : > { %3135 = vmatprep.subr.bf16.mxu0 %v3415_v2  ;;  %s4142_s21 = scalar_lea.vmem %s4141_s20, %s3597_s1 }
 0x3bb   : > { %v1644_v27 = vpop.permute.xlu0 %1643 }
 0x3bc   : > { %3126 = vmatmul.mubr.msk.bf16.vlgmr.msra.gmra.mrb[0].mxu0 %vm1240_vm3, %v1298_v18  ;;  %v1649_v29 = vsel %vm1304_vm4, %v1644_v27, 0  ;;  %v3007_v18 = vld [vmem:[%s4129_s8] ss:$0 sm:$0xff]  ;;  %s4133_s8 = scalar_lea.vmem %s4132_s30, %s3597_s1 }
 0x3bd   : > { %3136 = vmatpush3.bf16.msra.mxu0 %v1417_v20  ;;  %3137 = vmatprep.mubr.msk.bf16.mxu0 %vm3416_vm1, %v3415_v2  ;;  %v3008_v20 = vld [vmem:[%s4130_s3] ss:$0 sm:$0xff] }
 0x3be   : > { %3147 = vmatprep.subr.bf16.mxu0 %v3415_v2  ;;  %v3350_v22 = vpop.eup %3349 }
 0x3bf   : > { %v1525_v24 = vmul.f32 %v3350_v22, %v3342_v0  ;;  %v3325_v0 = vld [vmem:[%s3648_s7] sm:$0xff]  }
 0x3c1   : > { %v1526_v28 = vpack.c.bf16 %v1525_v24, %v1525_v24 }
 0x3c4   : > { %3138 = vmatmul.mubr.msk.bf16.vlgmr.msra.gmra.mrb[4].mxu0 %vm1240_vm3, %v1410_v21 }
 0x3c5   : > { %3149 = vmatprep.mubr.msk.bf16.mxu0 %vm3416_vm1, %v3415_v2 }
 0x3e0   : > { %v1639_v23 = vpop.xlane.xlu1 %1638 }
 0x3e1   : > { %3351 = vrcp.f32 %v1639_v23  ;;  %v3013_v23 = vld [vmem:[%s4131_s11] ss:$0 sm:$0xff] }
 0x3e4   : > { %v1528_v25 = vpop.permute.xlu1 %1527 }
 0x3e5   : > { %v1533_v26 = vsel %vm1304_vm4, %v1528_v25, 0 }
 0x3e6   : > { %3148 = vmatpush3.bf16.msra.mxu0 %v1533_v26 }
 0x3e7   : > { %3159 = vmatprep.subr.bf16.mxu0 %v3415_v2 }
 0x3e9   : > { %3150 = vmatmul.mubr.msk.bf16.vlgmr.msra.gmra.mrb[8].mxu0 %vm1240_vm3, %v1526_v28 }
 0x3ea   : > { %3160 = vmatpush3.bf16.msra.mxu0 %v1649_v29  ;;  %3161 = vmatprep.mubr.msk.bf16.mxu0 %vm3416_vm1, %v3415_v2 }
 0x3eb   : > { %v3352_v30 = vpop.eup %3351  ;;  %3173 = vmatprep.subr.bf16.mxu0 %v3415_v2 }
 0x3ec   : > { %v1641_v31 = vmul.f32 %v3352_v30, %v3344_v7 }
 0x3ee   : > { %v1642_v32 = vpack.c.bf16 %v1641_v31, %v1641_v31 }
 0x3f1   : > { %3162 = vmatmul.mubr.msk.bf16.vlgmr.msra.gmra.mrb[12].mxu0 %vm1240_vm3, %v1642_v32  ;;  %v3009_v32 = vld [vmem:[%s4133_s8] ss:$0 sm:$0xff] }
 0x3f2   : > { %3177 = vmatprep.mubr.msk.bf16.mxu0 %vm3416_vm1, %v3415_v2  ;;  %3174 = vmatpush3.bf16.msra.mxu0 %v3327_v12 }
 0x3f3   : > { %3175 = vmatprep.subr.bf16.mxu0 %v3415_v2 }
 0x3f6   : > { %3176 = vmatpush3.bf16.msra.mxu0 %v3328_v13 }
 0x3f7   : > { %3189 = vmatprep.subr.bf16.mxu0 %v3415_v2 }
 0x48f   : > { %v1342_v33 = vpop.f32.mrb[0].mxu0 }
 0x490   : > { %1348 = vst.msk [vmem:[#allocation2] sm:$0xff] %vm1240_vm3, %v1342_v33  ;;  %v3127_v34 = vpop.f32.mrb[1].mxu0 }
 0x491   : > { %v1345_v35 = vpop.f32.mrb[2].mxu0 }
 0x492   : > { %v3128_v36 = vpop.f32.mrb[3].mxu0 }
 0x497   : > { %v1453_v37 = vpop.f32.mrb[4].mxu0 }
 0x498   : > { %1460 = vrot.lane.b32.xlu1 %v1453_v37, %s3428_s22  ;;  %v3139_v38 = vpop.f32.mrb[5].mxu0 }
 0x499   : > { %v1456_v39 = vpop.f32.mrb[6].mxu0 }
 0x49a   : > { %v3140_v40 = vpop.f32.mrb[7].mxu0 }
 0x4bc   : > { %v1569_v43 = vpop.f32.mrb[8].mxu0 }
 0x4bd   : > { %1576 = vrot.lane.b32.xlu0 %v1569_v43, %s3429_s13  ;;  %v3151_v44 = vpop.f32.mrb[9].mxu0 }
 0x4be   : > { %v1572_v45 = vpop.f32.mrb[10].mxu0 }
 0x4bf   : > { %v3152_v46 = vpop.f32.mrb[11].mxu0 }
 0x4c4   : > { %v1685_v47 = vpop.f32.mrb[12].mxu0 }
 0x4c5   : > { %1692 = vrot.lane.b32.xlu1 %v1685_v47, %s3430_s2  ;;  %v3163_v48 = vpop.f32.mrb[13].mxu0 }
 0x4c6   : > { %v1688_v49 = vpop.f32.mrb[14].mxu0 }
 0x4c7   : > { %v3164_v50 = vpop.f32.mrb[15].mxu0 }
 0x50a   : > { %v1461_v51 = vpop.permute.xlu1 %1460 }
 0x50b   : > { %1464 = vst.msk [vmem:[#allocation2] sm:$0xff] %vm1463_vm5, %v1461_v51 }
 0x52f   : > { %v1577_v52 = vpop.permute.xlu0 %1576 }
 0x530   : > { %1580 = vst.msk [vmem:[#allocation2] sm:$0xff] %vm1579_vm6, %v1577_v52 }
 0x537   : > { %v1693_v53 = vpop.permute.xlu1 %1692 }
 0x538   : > { %1696 = vst.msk [vmem:[#allocation2] sm:$0xff] %vm1695_vm7, %v1693_v53 }
 0x53f   : > { %v1697_v54 = vld [vmem:[#allocation2] sm:$0xff] }
 0x540   : > { %v1698_v55 = vpack.c.bf16 %v1697_v54, %v1697_v54 }
 0x542   : > { %3170 = vmatmul.mubr.msk.bf16.vlgmr.msra.gmra.mrb[20].mxu1 %vm1187_vm2, %v1698_v55 }
 0x543   : > { %3185 = vmatprep.mubr.msk.bf16.mxu1 %vm3416_vm1, %v3415_v2  ;;  %3182 = vmatpush3.bf16.msra.mxu1 %v3325_v0 }
 0x544   : > { %3183 = vmatprep.subr.bf16.mxu1 %v3415_v2 }
 0x547   : > { %3184 = vmatpush3.bf16.msra.mxu1 %v3326_v8 }
 0x548   : > { %3195 = vmatprep.subr.bf16.mxu1 %v3415_v2 }
 0x615   : > { %v1754_v57 = vpop.f32.mrb[20].mxu1 }
 0x616   : > { %v1755_v58 = vadd.f32 %v3003_v56, %v1754_v57  ;;  %v3171_v59 = vpop.f32.mrb[21].mxu1 }
 0x617   : > { %v1757_v60 = vpop.f32.mrb[22].mxu1 }
 0x618   : > { %v3172_v61 = vpop.f32.mrb[23].mxu1  ;;  %v1760_v62 = vadd.f32 %v1755_v58, %v3720_v4  ;;  %v1152_v4 = vld [vmem:[%s4128_s17 + $0x8] sm:$0x3] }
 0x619   : > { %v1858_v10 = vpack.c.bf16 %v1152_v4, %v1151_v9 }
 0x61a   : > { %v1763_v63 = vsel %vm1187_vm2, %v1760_v62, 0.0 }
 0x61b   : > { %1764 = vadd.xlane.f32.xlu0 %v1763_v63  ;;  %3186 = vmatmul.mubr.msk.bf16.vlgmr.msra.gmra.mrb[24].mxu1 %vm1187_vm2, %v1858_v10 }
 0x61c   : > { %3197 = vmatprep.mubr.msk.bf16.mxu1 %vm3416_vm1, %v3415_v2 }
 0x6a8   : > { %v1765_v1 = vpop.xlane.xlu0 %1764 }
 0x6a9   : > { %v1767_v3 = vmul.f32 0.03125, %v1765_v1 }
 0x6ab   : > { %v1768_v5 = vsub.f32 %v1760_v62, %v1767_v3 }
 0x6ad   : > { %v1769_v6 = vmul.f32 %v1768_v5, %v1768_v5 }
 0x6af   : > { %v1770_v7 = vsel %vm1187_vm2, %v1769_v6, 0.0 }
 0x6b0   : > { %1771 = vadd.xlane.f32.xlu1 %v1770_v7 }
 0x6ee   : > { %v1919_v24 = vpop.f32.mrb[24].mxu1 }
 0x6ef   : > { %v1920_v25 = vadd.f32 %v3013_v23, %v1919_v24  ;;  %v3187_v26 = vpop.f32.mrb[25].mxu1 }
 0x6f0   : > { %v1922_v27 = vpop.f32.mrb[26].mxu1 }
 0x6f1   : > { %v1923_v28 = vadd.f32 %v3013_v23, %v1922_v27  ;;  %v3188_v29 = vpop.f32.mrb[27].mxu1 }
 0x6f3   : > { %v3870_v30 = vpack.c.bf16 %v1923_v28, %v1920_v25 }
 0x6f5   : > { %2052 = vrot.lane.b32.xlu0 %v3870_v30, %s3417_s5  ;;  %v1943_v31 = vsel %vm1240_vm3, %v3870_v30, 0 }
 0x6f9   : > { %2167 = vrot.lane.b32.xlu0 %v3870_v30, %s3422_s27 }
 0x6fd   : > { %2282 = vrot.lane.b32.xlu0 %v3870_v30, %s3423_s10 }
 0x73d   : > { %v1772_v14 = vpop.xlane.xlu1 %1771 }
 0x73e   : > { %v1773_v15 = vmul.f32 0.03125, %v1772_v14 }
 0x740   : > { %v1774_v16 = vadd.f32 1e-05, %v1773_v15 }
 0x742   : > { %3353 = vrsqrt.f32 %v1774_v16 }
 0x74c   : > { %v3354_v17 = vpop.eup %3353 }
 0x74d   : > { %v1776_v19 = vmul.f32 %v3354_v17, %v1768_v5 }
 0x74f   : > { %v1783_v11 = vmul.f32 %v3007_v18, %v1776_v19 }
 0x751   : > { %v3858_v21 = vadd.f32 %v3008_v20, %v1783_v11 }
 0x753   : > { %v1791_v22 = vpack.c.bf16 %v3858_v21, %v3858_v21 }
 0x755   : > { %3178 = vmatmul.mubr.msk.bf16.vlgmr.msra.gmra.mrb[16].mxu0 %vm1187_vm2, %v1791_v22 }
 0x756   : > { %3191 = vmatprep.mubr.msk.bf16.mxu0 %vm3416_vm1, %v3415_v2  ;;  %3190 = vmatpush3.bf16.xpose.msra.mxu0 %v1943_v31 }
 0x757   : > { %3201 = vmatprep.subr.bf16.mxu0 %v3415_v2 }
 0x767   : > { %v2053_v37 = vpop.permute.xlu0 %2052 }
 0x768   : > { %v2058_v40 = vsel %vm1240_vm3, %v2053_v37, 0 }
 0x76b   : > { %v2168_v41 = vpop.permute.xlu0 %2167 }
 0x76c   : > { %v2173_v43 = vsel %vm1240_vm3, %v2168_v41, 0 }
 0x76f   : > { %v2283_v44 = vpop.permute.xlu0 %2282 }
 0x770   : > { %v2288_v46 = vsel %vm1240_vm3, %v2283_v44, 0 }
 0x828   : > { %v1852_v33 = vpop.f32.mrb[16].mxu0 }
 0x829   : > { %v1853_v34 = vadd.f32 %v3009_v32, %v1852_v33  ;;  %v3179_v35 = vpop.f32.mrb[17].mxu0 }
 0x82a   : > { %v1855_v36 = vpop.f32.mrb[18].mxu0 }
 0x82b   : > { %v1931_v38 = vpack.c.bf16 %v1853_v34, %v1853_v34  ;;  %v3180_v39 = vpop.f32.mrb[19].mxu0 }
 0x82d   : > { %2050 = vrot.lane.b32.xlu1 %v1931_v38, %s3417_s5  ;;  %3192 = vmatmul.mubr.msk.bf16.vlgmr.msra.gmra.mrb[20].mxu0 %vm1240_vm3, %v1931_v38 }
 0x82e   : > { %3202 = vmatpush3.bf16.xpose.msra.mxu0 %v2058_v40  ;;  %3203 = vmatprep.mubr.msk.bf16.mxu0 %vm3416_vm1, %v3415_v2 }
 0x82f   : > { %3213 = vmatprep.subr.bf16.mxu0 %v3415_v2 }
 0x831   : > { %2165 = vrot.lane.b32.xlu1 %v1931_v38, %s3422_s27 }
 0x835   : > { %2280 = vrot.lane.b32.xlu1 %v1931_v38, %s3423_s10  ;;  %s4134_s10 = sld [smem:[#allocation17_spill]] }
 0x83b   : > { %s4135_s23 = scalar_lea.vmem %s4134_s10, %s4121_s25 }
 0x83c   : > { %v3017_v48 = vld [vmem:[%s4135_s23] ss:$0 sm:$0xff]  ;;  %s4146_s23 = sld [smem:[#allocation29_spill]] }
 0x89f   : > { %v2051_v42 = vpop.permute.xlu1 %2050 }
 0x8a0   : > { %3204 = vmatmul.mubr.msk.bf16.vlgmr.msra.gmra.mrb[24].mxu0 %vm1240_vm3, %v2051_v42 }
 0x8a1   : > { %3214 = vmatpush3.bf16.xpose.msra.mxu0 %v2173_v43  ;;  %3215 = vmatprep.mubr.msk.bf16.mxu0 %vm3416_vm1, %v3415_v2 }
 0x8a2   : > { %3225 = vmatprep.subr.bf16.mxu0 %v3415_v2 }
 0x8a3   : > { %v2166_v45 = vpop.permute.xlu1 %2165 }
 0x8a7   : > { %v2281_v47 = vpop.permute.xlu1 %2280 }
 0x8a8   : > { %3216 = vmatmul.mubr.msk.bf16.vlgmr.msra.gmra.mrb[28].mxu0 %vm1240_vm3, %v2166_v45 }
 0x8a9   : > { %3226 = vmatpush3.bf16.xpose.msra.mxu0 %v2288_v46  ;;  %3227 = vmatprep.mubr.msk.bf16.mxu0 %vm3416_vm1, %v3415_v2 }
 0x8aa   : > { %3237 = vmatprep.subr.bf16.mxu0 %v3415_v2 }
 0x8b0   : > { %3228 = vmatmul.mubr.msk.bf16.vlgmr.msra.gmra.mrb[32].mxu0 %vm1240_vm3, %v2281_v47 }
 0x8b1   : > { %3241 = vmatprep.mubr.msk.bf16.mxu0 %vm3416_vm1, %v3415_v2 }
 0x900   : > { %v1979_v49 = vpop.f32.mrb[20].mxu0 }
 0x901   : > { %v1980_v50 = vadd.f32 %v3017_v48, %v1979_v49  ;;  %v3193_v51 = vpop.f32.mrb[21].mxu0 }
 0x902   : > { %v1982_v52 = vpop.f32.mrb[22].mxu0 }
 0x903   : > { %v3194_v53 = vpop.f32.mrb[23].mxu0  ;;  %v1986_v54 = vsel %vm1985_vm8, %v1980_v50, -inf }
 0x904   : > { %1987 = vmax.xlane.f32.xlu0 %v1986_v54 }
 0x973   : > { %v2094_v55 = vpop.f32.mrb[24].mxu0 }
 0x974   : > { %v2095_v56 = vadd.f32 %v3017_v48, %v2094_v55  ;;  %v3205_v57 = vpop.f32.mrb[25].mxu0 }
 0x975   : > { %v2097_v58 = vpop.f32.mrb[26].mxu0 }
 0x976   : > { %v3206_v59 = vpop.f32.mrb[27].mxu0  ;;  %v2100_v60 = vsel %vm1985_vm8, %v2095_v56, -inf }
 0x977   : > { %2101 = vmax.xlane.f32.xlu1 %v2100_v60 }
 0x97b   : > { %v2209_v61 = vpop.f32.mrb[28].mxu0 }
 0x97c   : > { %v2210_v62 = vadd.f32 %v3017_v48, %v2209_v61  ;;  %v3217_v63 = vpop.f32.mrb[29].mxu0 }
 0x97d   : > { %v2212_v0 = vpop.f32.mrb[30].mxu0 }
 0x97e   : > { %v3218_v1 = vpop.f32.mrb[31].mxu0  ;;  %v2215_v3 = vsel %vm1985_vm8, %v2210_v62, -inf }
 0x97f   : > { %2216 = vmax.xlane.f32.xlu0 %v2215_v3 }
 0x983   : > { %v2324_v5 = vpop.f32.mrb[32].mxu0 }
 0x984   : > { %v2325_v6 = vadd.f32 %v3017_v48, %v2324_v5  ;;  %v3229_v7 = vpop.f32.mrb[33].mxu0 }
 0x985   : > { %v2327_v8 = vpop.f32.mrb[34].mxu0 }
 0x986   : > { %v3230_v9 = vpop.f32.mrb[35].mxu0  ;;  %v2330_v4 = vsel %vm1985_vm8, %v2325_v6, -inf }
 0x987   : > { %2331 = vmax.xlane.f32.xlu0 %v2330_v4 }
 0x991   : > { %v1988_v10 = vpop.xlane.xlu0 %1987 }
 0x992   : > { %v1989_v12 = vsub.f32 %v1980_v50, %v1988_v10 }
 0x994   : > { %v1990_v13 = vmul.f32 1.442695, %v1989_v12 }
 0x996   : > { %3355 = vpow2.f32 %v1990_v13 }
 0x9a0   : > { %v3356_v14 = vpop.eup %3355 }
 0x9a1   : > { %v1992_v15 = vsel %vm1985_vm8, %v3356_v14, 0.0 }
 0x9a2   : > { %1993 = vadd.xlane.f32.xlu1 %v1992_v15 }
 0x9b3   : > { %1999 = vrot.lane.b32.xlu1 %v3870_v30, %s3418_s4  ;;  %s4136_s4 = sld [smem:[#allocation12_spill]] }
 0x9b9   : > { %v3329_v63 = vld [vmem:[%s4136_s4] sm:$0xff]   ;;  %v3330_v0 = vld [vmem:[%s4136_s4 + $0x8] sm:$0xff]   ;;  %s4147_s4 = scalar_lea.vmem %s4146_s23, %s3597_s1 }
 0x9ba   : > { %3238 = vmatpush3.bf16.msra.mxu0 %v3329_v63 }
 0x9bb   : > { %3239 = vmatprep.subr.bf16.mxu0 %v3415_v2 }
 0x9be   : > { %3240 = vmatpush3.bf16.msra.mxu0 %v3330_v0 }
 0x9bf   : > { %3253 = vmatprep.subr.bf16.mxu0 %v3415_v2 }
 0xa04   : > { %v2102_v16 = vpop.xlane.xlu1 %2101 }
 0xa05   : > { %v2103_v17 = vsub.f32 %v2095_v56, %v2102_v16 }
 0xa07   : > { %v2104_v18 = vmul.f32 1.442695, %v2103_v17 }
 0xa09   : > { %3357 = vpow2.f32 %v2104_v18 }
 0xa0c   : > { %v2217_v19 = vpop.xlane.xlu0 %2216 }
 0xa0d   : > { %v2218_v20 = vsub.f32 %v2210_v62, %v2217_v19 }
 0xa0f   : > { %v2219_v11 = vmul.f32 1.442695, %v2218_v20 }
 0xa11   : > { %3359 = vpow2.f32 %v2219_v11 }
 0xa13   : > { %v3358_v22 = vpop.eup %3357 }
 0xa14   : > { %v2332_v23 = vpop.xlane.xlu0 %2331  ;;  %v2106_v24 = vsel %vm1985_vm8, %v3358_v22, 0.0 }
 0xa15   : > { %v2333_v25 = vsub.f32 %v2325_v6, %v2332_v23  ;;  %2107 = vadd.xlane.f32.xlu0 %v2106_v24 }
 0xa17   : > { %v2334_v26 = vmul.f32 1.442695, %v2333_v25 }
 0xa19   : > { %3361 = vpow2.f32 %v2334_v26 }
 0xa1b   : > { %v3360_v27 = vpop.eup %3359 }
 0xa1c   : > { %v2221_v28 = vsel %vm1985_vm8, %v3360_v27, 0.0 }
 0xa1d   : > { %2222 = vadd.xlane.f32.xlu1 %v2221_v28 }
 0xa23   : > { %v3362_v29 = vpop.eup %3361 }
 0xa24   : > { %v2336_v31 = vsel %vm1985_vm8, %v3362_v29, 0.0 }
 0xa25   : > { %2337 = vadd.xlane.f32.xlu0 %v2336_v31  ;;  %v3332_v31 = vld [vmem:[%s3690_s6 + $0x8] sm:$0xff]  }
 0xa2e   : > { %2227 = vrot.lane.b32.xlu1 %v3870_v30, %s3419_s24 }
 0xa2f   : > { %v1994_v32 = vpop.xlane.xlu1 %1993 }
 0xa30   : > { %3363 = vrcp.f32 %v1994_v32  ;;  %v3334_v32 = vld [vmem:[%s3700_s18 + $0x8] sm:$0xff]  }
 0xa32   : > { %2342 = vrot.lane.b32.xlu1 %v3870_v30, %s3421_s0  ;;  %s4137_s0 = sld [smem:[#allocation26_spill]] }
 0xa33   : > { %v2000_v33 = vpop.permute.xlu1 %1999 }
 0xa34   : > { %v2006_v34 = vsel %vm2004_vm9, %v2000_v33, 0 }
 0xa35   : > { %3196 = vmatpush3.bf16.msra.mxu1 %v2006_v34 }
 0xa36   : > { %3207 = vmatprep.subr.bf16.mxu1 %v3415_v2 }
 0xa38   : > { %s4138_s25 = scalar_lea.vmem %s4137_s0, %s3597_s1 }
 0xa39   : > { %v3026_v16 = vld [vmem:[%s4138_s25] ss:$0 sm:$0xff] }
 0xa3a   : > { %v3364_v35 = vpop.eup %3363 }
 0xa3b   : > { %v1996_v36 = vmul.f32 %v3364_v35, %v3356_v14  ;;  %2112 = vrot.lane.b32.xlu0 %v3870_v30, %s3420_s28 }
 0xa3d   : > { %v1997_v37 = vpack.c.bf16 %v1996_v36, %v1996_v36 }
 0xa3f   : > { %3198 = vmatmul.mubr.msk.bf16.vlgmr.msra.gmra.mrb[28].mxu1 %vm1985_vm8, %v1997_v37 }
 0xa40   : > { %3209 = vmatprep.mubr.msk.bf16.mxu1 %vm3416_vm1, %v3415_v2 }
 0xaa2   : > { %v2108_v38 = vpop.xlane.xlu0 %2107 }
 0xaa3   : > { %3365 = vrcp.f32 %v2108_v38 }
 0xaaa   : > { %v2223_v39 = vpop.xlane.xlu1 %2222 }
 0xaab   : > { %3367 = vrcp.f32 %v2223_v39  ;;  %v3031_v39 = vld [vmem:[%s4142_s21] ss:$0 sm:$0xff] }
 0xaad   : > { %v3366_v40 = vpop.eup %3365 }
 0xaae   : > { %v2110_v42 = vmul.f32 %v3366_v40, %v3358_v22  ;;  %v2228_v45 = vpop.permute.xlu1 %2227 }
 0xaaf   : > { %v2233_v47 = vsel %vm2004_vm9, %v2228_v45, 0  ;;  %v3032_v45 = vld [vmem:[%s1129_s29] ss:$0 sm:$0xff] }
 0xab0   : > { %v2111_v30 = vpack.c.bf16 %v2110_v42, %v2110_v42 }
 0xab2   : > { %v2338_v41 = vpop.xlane.xlu0 %2337  ;;  %v2343_v49 = vpop.permute.xlu1 %2342 }
 0xab3   : > { %3369 = vrcp.f32 %v2338_v41  ;;  %v2348_v52 = vsel %vm2004_vm9, %v2343_v49, 0 }
 0xab5   : > { %v3368_v46 = vpop.eup %3367 }
 0xab6   : > { %v2113_v43 = vpop.permute.xlu0 %2112  ;;  %v2225_v48 = vmul.f32 %v3368_v46, %v3360_v27 }
 0xab7   : > { %v2118_v44 = vsel %vm2004_vm9, %v2113_v43, 0  ;;  %v3335_v43 = vld [vmem:[%s3700_s18 + $0x10] sm:$0xff]  }
 0xab8   : > { %3208 = vmatpush3.bf16.msra.mxu1 %v2118_v44  ;;  %v2226_v50 = vpack.c.bf16 %v2225_v48, %v2225_v48  ;;  %v3336_v44 = vld [vmem:[%s3700_s18 + $0x18] sm:$0xff]  }
 0xab9   : > { %3219 = vmatprep.subr.bf16.mxu1 %v3415_v2 }
 0xabb   : > { %3210 = vmatmul.mubr.msk.bf16.vlgmr.msra.gmra.mrb[32].mxu1 %vm1985_vm8, %v2111_v30 }
 0xabc   : > { %3220 = vmatpush3.bf16.msra.mxu1 %v2233_v47  ;;  %3221 = vmatprep.mubr.msk.bf16.mxu1 %vm3416_vm1, %v3415_v2 }
 0xabd   : > { %3231 = vmatprep.subr.bf16.mxu1 %v3415_v2  ;;  %v3370_v51 = vpop.eup %3369 }
 0xabe   : > { %v2340_v53 = vmul.f32 %v3370_v51, %v3362_v29  ;;  %v3331_v29 = vld [vmem:[%s3690_s6] sm:$0xff]  }
 0xac0   : > { %v2341_v54 = vpack.c.bf16 %v2340_v53, %v2340_v53 }
 0xac3   : > { %3222 = vmatmul.mubr.msk.bf16.vlgmr.msra.gmra.mrb[36].mxu1 %vm1985_vm8, %v2226_v50 }
 0xac4   : > { %3232 = vmatpush3.bf16.msra.mxu1 %v2348_v52  ;;  %3233 = vmatprep.mubr.msk.bf16.mxu1 %vm3416_vm1, %v3415_v2 }
 0xac5   : > { %3245 = vmatprep.subr.bf16.mxu1 %v3415_v2 }
 0xacb   : > { %3234 = vmatmul.mubr.msk.bf16.vlgmr.msra.gmra.mrb[40].mxu1 %vm1985_vm8, %v2341_v54 }
 0xacc   : > { %3249 = vmatprep.mubr.msk.bf16.mxu1 %vm3416_vm1, %v3415_v2  ;;  %3246 = vmatpush3.bf16.msra.mxu1 %v3331_v29 }
 0xacd   : > { %3247 = vmatprep.subr.bf16.mxu1 %v3415_v2 }
 0xad0   : > { %3248 = vmatpush3.bf16.msra.mxu1 %v3332_v31 }
 0xb12   : > { %v2042_v55 = vpop.f32.mrb[28].mxu1 }
 0xb13   : > { %2048 = vst.msk [vmem:[#allocation2] sm:$0xff] %vm1240_vm3, %v2042_v55  ;;  %v3199_v56 = vpop.f32.mrb[29].mxu1 }
 0xb14   : > { %v2045_v57 = vpop.f32.mrb[30].mxu1 }
 0xb15   : > { %v3200_v58 = vpop.f32.mrb[31].mxu1 }
 0xb8e   : > { %v2154_v59 = vpop.f32.mrb[32].mxu1 }
 0xb8f   : > { %2161 = vrot.lane.b32.xlu0 %v2154_v59, %s3428_s22  ;;  %v3211_v60 = vpop.f32.mrb[33].mxu1 }
 0xb90   : > { %v2157_v61 = vpop.f32.mrb[34].mxu1 }
 0xb91   : > { %v3212_v62 = vpop.f32.mrb[35].mxu1 }
 0xb96   : > { %v2269_v1 = vpop.f32.mrb[36].mxu1 }
 0xb97   : > { %2276 = vrot.lane.b32.xlu1 %v2269_v1, %s3429_s13  ;;  %v3223_v3 = vpop.f32.mrb[37].mxu1  ;;  %s4139_s13 = sld [smem:[#allocation27_spill]] }
 0xb98   : > { %v2272_v5 = vpop.f32.mrb[38].mxu1 }
 0xb99   : > { %v3224_v6 = vpop.f32.mrb[39].mxu1 }
 0xb9e   : > { %v2384_v7 = vpop.f32.mrb[40].mxu1 }
 0xb9f   : > { %2391 = vrot.lane.b32.xlu0 %v2384_v7, %s3430_s2  ;;  %v3235_v8 = vpop.f32.mrb[41].mxu1  ;;  %s4140_s2 = scalar_lea.vmem %s4139_s13, %s3597_s1 }
 0xba0   : > { %v2387_v9 = vpop.f32.mrb[42].mxu1  ;;  %v3030_v37 = vld [vmem:[%s4140_s2] ss:$0 sm:$0xff] }
 0xba1   : > { %v3236_v4 = vpop.f32.mrb[43].mxu1  ;;  %v3043_v8 = vld [vmem:[%s4147_s4] ss:$0 sm:$0xff] }
 0xc01   : > { %v2162_v10 = vpop.permute.xlu0 %2161 }
 0xc02   : > { %2164 = vst.msk [vmem:[#allocation2] sm:$0xff] %vm1463_vm5, %v2162_v10 }
 0xc09   : > { %v2277_v12 = vpop.permute.xlu1 %2276 }
 0xc0a   : > { %2279 = vst.msk [vmem:[#allocation2] sm:$0xff] %vm1579_vm6, %v2277_v12 }
 0xc11   : > { %v2392_v13 = vpop.permute.xlu0 %2391 }
 0xc12   : > { %2394 = vst.msk [vmem:[#allocation2] sm:$0xff] %vm1695_vm7, %v2392_v13 }
 0xc19   : > { %v2395_v14 = vld [vmem:[#allocation2] sm:$0xff] }
 0xc1a   : > { %v2396_v15 = vpack.c.bf16 %v2395_v14, %v2395_v14 }
 0xc1c   : > { %3242 = vmatmul.mubr.msk.bf16.vlgmr.msra.gmra.mrb[36].mxu0 %vm1187_vm2, %v2396_v15 }
 0xc1d   : > { %3261 = vmatprep.mubr.msk.bf16.mxu0 %vm3416_vm1, %v3415_v2 }
 0xcef   : > { %v2452_v17 = vpop.f32.mrb[36].mxu0 }
 0xcf0   : > { %v2453_v18 = vadd.f32 %v3026_v16, %v2452_v17  ;;  %v3243_v19 = vpop.f32.mrb[37].mxu0 }
 0xcf1   : > { %v2455_v20 = vpop.f32.mrb[38].mxu0 }
 0xcf2   : > { %v3244_v11 = vpop.f32.mrb[39].mxu0  ;;  %v2458_v22 = vadd.f32 %v2453_v18, %v3858_v21  ;;  %v3333_v21 = vld [vmem:[%s3700_s18] sm:$0xff]  }
 0xcf3   : > { %3254 = vmatpush3.bf16.msra.mxu0 %v3333_v21 }
 0xcf4   : > { %v2461_v23 = vsel %vm1187_vm2, %v2458_v22, 0.0  ;;  %3255 = vmatprep.subr.bf16.mxu0 %v3415_v2 }
 0xcf5   : > { %2462 = vadd.xlane.f32.xlu1 %v2461_v23 }
 0xcf7   : > { %3256 = vmatpush3.bf16.msra.mxu0 %v3334_v32 }
 0xcf8   : > { %3257 = vmatprep.subr.bf16.mxu0 %v3415_v2 }
 0xcfb   : > { %3258 = vmatpush3.bf16.msra.mxu0 %v3335_v43 }
 0xcfc   : > { %3259 = vmatprep.subr.bf16.mxu0 %v3415_v2  ;;  %v3036_v2 = vld [vmem:[%s1137_s26] ss:$0 sm:$0xff]  ;;  %s4145_s26 = scalar_lea.vmem %s4049_s19, %s3597_s1 }
 0xcfd   : > { %v3042_v6 = vld [vmem:[%s4145_s26] ss:$0 sm:$0xff] }
 0xcff   : > { %3260 = vmatpush3.bf16.msra.mxu0 %v3336_v44 }
 0xd82   : > { %v2463_v24 = vpop.xlane.xlu1 %2462 }
 0xd83   : > { %v2464_v25 = vmul.f32 0.03125, %v2463_v24 }
 0xd85   : > { %v2465_v26 = vsub.f32 %v2458_v22, %v2464_v25 }
 0xd87   : > { %v2466_v27 = vmul.f32 %v2465_v26, %v2465_v26 }
 0xd89   : > { %v2467_v28 = vsel %vm1187_vm2, %v2466_v27, 0.0 }
 0xd8a   : > { %2468 = vadd.xlane.f32.xlu0 %v2467_v28 }
 0xe17   : > { %v2469_v33 = vpop.xlane.xlu0 %2468 }
 0xe18   : > { %v2470_v34 = vmul.f32 0.03125, %v2469_v33 }
 0xe1a   : > { %v2471_v35 = vadd.f32 1e-05, %v2470_v34 }
 0xe1c   : > { %3371 = vrsqrt.f32 %v2471_v35 }
 0xe26   : > { %v3372_v36 = vpop.eup %3371 }
 0xe27   : > { %v2473_v38 = vmul.f32 %v3372_v36, %v2465_v26 }
 0xe29   : > { %v2480_v40 = vmul.f32 %v3030_v37, %v2473_v38 }
 0xe2b   : > { %v2487_v41 = vadd.f32 %v3031_v39, %v2480_v40 }
 0xe2d   : > { %v2488_v42 = vpack.c.bf16 %v2487_v41, %v2487_v41 }
 0xe2f   : > { %3250 = vmatmul.mubr.msk.bf16.vlgmr.msra.gmra.mrb[44].mxu1 %vm1187_vm2, %v2488_v42 }
 0xf02   : > { %v2549_v30 = vpop.f32.mrb[44].mxu1 }
 0xf03   : > { %v2550_v46 = vadd.f32 %v3032_v45, %v2549_v30  ;;  %v3251_v47 = vpop.f32.mrb[45].mxu1 }
 0xf04   : > { %v2552_v48 = vpop.f32.mrb[46].mxu1 }
 0xf05   : > { %v2555_v49 = vmax.f32 %v2550_v46, 0.0  ;;  %v3252_v50 = vpop.f32.mrb[47].mxu1 }
 0xf07   : > { %v2556_v51 = vpack.c.bf16 %v2555_v49, %v2555_v49 }
 0xf09   : > { %3262 = vmatmul.mubr.msk.bf16.vlgmr.msra.gmra.mrb[40].mxu0 %vm2596_vm10, %v2556_v51 }
 0xfdc   : > { %v2634_v52 = vpop.f32.mrb[40].mxu0 }
 0xfdd   : > { %v2635_v53 = vadd.f32 %v3036_v2, %v2634_v52  ;;  %v3263_v54 = vpop.f32.mrb[41].mxu0 }
 0xfde   : > { %v2637_v55 = vpop.f32.mrb[42].mxu0 }
 0xfdf   : > { %v3264_v56 = vpop.f32.mrb[43].mxu0  ;;  %v2640_v57 = vadd.f32 %v2635_v53, %v2487_v41 }
 0xfe1   : > { %v2643_v58 = vsel %vm1187_vm2, %v2640_v57, 0.0 }
 0xfe2   : > { %2644 = vadd.xlane.f32.xlu0 %v2643_v58 }
0x106f   : > { %v2645_v59 = vpop.xlane.xlu0 %2644 }
0x1070   : > { %v2646_v60 = vmul.f32 0.03125, %v2645_v59 }
0x1072   : > { %v2647_v61 = vsub.f32 %v2640_v57, %v2646_v60 }
0x1074   : > { %v2648_v62 = vmul.f32 %v2647_v61, %v2647_v61 }
0x1076   : > { %v2649_v63 = vsel %vm1187_vm2, %v2648_v62, 0.0 }
0x1077   : > { %2650 = vadd.xlane.f32.xlu1 %v2649_v63 }
0x1104   : > { %v2651_v0 = vpop.xlane.xlu1 %2650 }
0x1105   : > { %v2652_v1 = vmul.f32 0.03125, %v2651_v0 }
0x1107   : > { %v2653_v3 = vadd.f32 1e-05, %v2652_v1 }
0x1109   : > { %3373 = vrsqrt.f32 %v2653_v3 }
0x1113   : > { %v3374_v5 = vpop.eup %3373 }
0x1114   : > { %v2655_v7 = vmul.f32 %v3374_v5, %v2647_v61 }
0x1116   : > { %v2662_v9 = vmul.f32 %v3042_v6, %v2655_v7 }
0x1118   : > { %v2669_v4 = vadd.f32 %v3043_v8, %v2662_v9 }
0x111a   : > { %2670 = vst.msk [vmem:[%s3709_s14] sm:$0xff] %vm1187_vm2, %v2669_v4 }
0x111b PF: > { %s4148_s24 = sld [smem:[#allocation6_spill]]  ;;  %s4149_s29 = sld [smem:[#allocation4_spill]] }
0x111c   : > { %s4150_s2 = sld [smem:[#allocation5_spill]]  ;;  %s4151_s6 = sld [smem:[#allocation7_spill]] }
0x111d   : > { %s4152_s30 = sld [smem:[#allocation8_spill]] }
0x1121   : > { %s35_s7 = sadd.s32 1, %s4148_s24  }
0x1122   : > { %p32_p8 = scmp.ge.s32.totalorder %s35_s7, 6  }
0x1124   :  { %34 = sbr.rel (!%p32_p8) target bundleno = 23 (0x17), region = 223 }

</bundles_post_ra>
